<compile_context>
chip_gen: v7x
topology: tpu7x:2x2x1
jax: 0.10.0
libtpu: 0.0.40
codegen_flags: <defaults>
</compile_context>

<pallas_src>
import functools
import math

import jax
import jax.numpy as jnp
from jax import lax
from jax.experimental import pallas as pl
from jax.experimental.pallas import tpu as pltpu


# ---------------------------------------------------------------------------
# Kernel 1: fused Upsample-conv + concat + BasicBlock (per image, (C, S) layout)
# ---------------------------------------------------------------------------
def _fused_block_kernel(xup_ref, r_ref, wmask_ref,
                        wup_ref, bup_ref,
                        w1x_ref, w1r_ref, b1_ref,
                        wscx_ref, wscr_ref, bsc_ref,
                        w2_ref, b2_ref,
                        out_ref,
                        hup_scr, y1_scr,
                        *, S, Wo, PAD):
    f32 = jnp.float32
    bf16 = jnp.bfloat16

    def conv_taps(src_ref, w_ref, acc):
        # src_ref: (Ci, S + 2*PAD) halo-padded flattened map (zeros in the halo).
        # w_ref:   (9, Co, Ci) bf16 tap matrices (tap t = di*3 + dj).
        for di in range(3):
            for dj in range(3):
                t = di * 3 + dj
                off = (di - 1) * Wo + (dj - 1)
                xs = src_ref[:, PAD + off:PAD + off + S]            # (Ci, S) f32
                if dj != 1:
                    xs = xs * wmask_ref[dj:dj + 1, :]               # kill row-wrap neighbors
                acc = acc + jnp.dot(w_ref[t], xs.astype(bf16),
                                    preferred_element_type=f32)
        return acc

    cin = hup_scr.shape[0]
    cout = y1_scr.shape[0]

    # Zero the halo regions of the persistent scratch (re-done every grid step).
    hup_scr[:, 0:PAD] = jnp.zeros((cin, PAD), f32)
    hup_scr[:, PAD + S:PAD + S + PAD] = jnp.zeros((cin, PAD), f32)
    y1_scr[:, 0:PAD] = jnp.zeros((cout, PAD), f32)
    y1_scr[:, PAD + S:PAD + S + PAD] = jnp.zeros((cout, PAD), f32)

    # --- Upsample's conv3x3 (input already nearest-2x upsampled + halo padded in HBM) ---
    h_up = conv_taps(xup_ref, wup_ref, jnp.zeros((cin, S), f32)) + bup_ref[...]
    hup_scr[:, PAD:PAD + S] = h_up

    # --- BasicBlock conv1 (3x3) on concat(h_up, r): fused as a K-split, no concat ---
    y1 = conv_taps(hup_scr, w1x_ref, jnp.zeros((cout, S), f32))
    y1 = conv_taps(r_ref, w1r_ref, y1)
    y1 = jnp.maximum(y1 + b1_ref[...], 0.0)

    # --- 1x1 shortcut on the same concatenated input (fused, no HBM round trip) ---
    r_c = r_ref[:, PAD:PAD + S]
    sc = (jnp.dot(wscx_ref[...], h_up.astype(bf16), preferred_element_type=f32)
          + jnp.dot(wscr_ref[...], r_c.astype(bf16), preferred_element_type=f32)
          + bsc_ref[...])

    # --- BasicBlock conv2 (3x3) + shortcut + relu ---
    y1_scr[:, PAD:PAD + S] = y1
    y2 = conv_taps(y1_scr, w2_ref, jnp.zeros((cout, S), f32)) + b2_ref[...] + sc
    out_ref[...] = jnp.maximum(y2, 0.0)


# ---------------------------------------------------------------------------
# Kernel 2: masked single-head spatial self-attention (per image)
# ---------------------------------------------------------------------------
def _attention_kernel(x_ref, mask_ref, wq_ref, wk_ref, wv_ref, wo_ref, o_ref):
    f32 = jnp.float32
    bf16 = jnp.bfloat16
    xc = x_ref[...]                                                  # (C, S) f32
    x = xc.T                                                         # (S, C)
    xb = x.astype(bf16)
    q = jnp.dot(xb, wq_ref[...], preferred_element_type=f32)        # wq pre-scaled by 1/sqrt(C)
    k = jnp.dot(xb, wk_ref[...], preferred_element_type=f32)
    v = jnp.dot(xb, wv_ref[...], preferred_element_type=f32)
    s = jnp.dot(q.astype(bf16), k.T.astype(bf16),
                preferred_element_type=f32)                          # (S, S)
    s = s + mask_ref[...]                                            # additive key mask (1, S)
    m = jnp.max(s, axis=-1, keepdims=True)
    p = jnp.exp(s - m)
    p = p * pl.reciprocal(jnp.sum(p, axis=-1, keepdims=True), approx=True)
    o = jnp.dot(p.astype(bf16), v.astype(bf16), preferred_element_type=f32)
    o = jnp.dot(o.astype(bf16), wo_ref[...], preferred_element_type=f32)
    o_ref[...] = (x + o).T.astype(o_ref.dtype)                       # residual, back to (C, S)


# ---------------------------------------------------------------------------
# pallas_call wrappers
# ---------------------------------------------------------------------------
def fused_block(xup_p, r_p, wmask, wup_t, bup, w1x_t, w1r_t, b1,
                wscx_t, wscr_t, bsc, w2_t, b2, *, S, Wo):
    B, Cin, SP = xup_p.shape
    Cout = b1.shape[0]
    PAD = Wo + 1
    kernel = functools.partial(_fused_block_kernel, S=S, Wo=Wo, PAD=PAD)
    flops = 2 * B * S * (9 * Cin * Cin + 9 * 2 * Cin * Cout + 2 * Cin * Cout
                         + 9 * Cout * Cout)
    bytes_accessed = (4 * (xup_p.size + r_p.size + B * Cout * S + wmask.size)
                      + 2 * (wup_t.size + w1x_t.size + w1r_t.size + wscx_t.size
                             + wscr_t.size + w2_t.size))
    return pl.pallas_call(
        kernel,
        grid=(B,),
        in_specs=[
            pl.BlockSpec((None, Cin, SP), lambda b: (b, 0, 0)),   # upsampled x (halo padded)
            pl.BlockSpec((None, Cin, SP), lambda b: (b, 0, 0)),   # context (halo padded)
            pl.BlockSpec((3, S), lambda b: (0, 0)),               # horizontal tap masks
            pl.BlockSpec((9, Cin, Cin), lambda b: (0, 0, 0)),     # up-conv taps
            pl.BlockSpec((Cin, 1), lambda b: (0, 0)),
            pl.BlockSpec((9, Cout, Cin), lambda b: (0, 0, 0)),    # rc1 taps (x half)
            pl.BlockSpec((9, Cout, Cin), lambda b: (0, 0, 0)),    # rc1 taps (context half)
            pl.BlockSpec((Cout, 1), lambda b: (0, 0)),
            pl.BlockSpec((Cout, Cin), lambda b: (0, 0)),          # 1x1 shortcut (x half)
            pl.BlockSpec((Cout, Cin), lambda b: (0, 0)),          # 1x1 shortcut (context half)
            pl.BlockSpec((Cout, 1), lambda b: (0, 0)),
            pl.BlockSpec((9, Cout, Cout), lambda b: (0, 0, 0)),   # rc2 taps
            pl.BlockSpec((Cout, 1), lambda b: (0, 0)),
        ],
        out_specs=pl.BlockSpec((None, Cout, S), lambda b: (b, 0, 0)),
        out_shape=jax.ShapeDtypeStruct((B, Cout, S), jnp.float32),
        scratch_shapes=[pltpu.VMEM((Cin, SP), jnp.float32),
                        pltpu.VMEM((Cout, SP), jnp.float32)],
        compiler_params=pltpu.CompilerParams(dimension_semantics=("parallel",)),
        cost_estimate=pl.CostEstimate(flops=flops, transcendentals=0,
                                      bytes_accessed=bytes_accessed),
    )(xup_p, r_p, wmask, wup_t, bup, w1x_t, w1r_t, b1, wscx_t, wscr_t, bsc, w2_t, b2)


def attention(xc, mask, wq, wk, wv, wo):
    B, C, S = xc.shape
    flops = 2 * B * (4 * S * C * C + 2 * S * S * C)
    return pl.pallas_call(
        _attention_kernel,
        grid=(B,),
        in_specs=[
            pl.BlockSpec((None, C, S), lambda b: (b, 0, 0)),
            pl.BlockSpec((None, 1, S), lambda b: (b, 0, 0)),
            pl.BlockSpec((C, C), lambda b: (0, 0)),
            pl.BlockSpec((C, C), lambda b: (0, 0)),
            pl.BlockSpec((C, C), lambda b: (0, 0)),
            pl.BlockSpec((C, C), lambda b: (0, 0)),
        ],
        out_specs=pl.BlockSpec((None, C, S), lambda b: (b, 0, 0)),
        out_shape=jax.ShapeDtypeStruct((B, C, S), jnp.float32),
        compiler_params=pltpu.CompilerParams(dimension_semantics=("parallel",)),
        cost_estimate=pl.CostEstimate(flops=flops, transcendentals=B * S * S,
                                      bytes_accessed=4 * (2 * xc.size + mask.size)
                                      + 2 * 4 * wq.size),
    )(xc, mask, wq, wk, wv, wo)


# ---------------------------------------------------------------------------
# Parameters + forward pass
# ---------------------------------------------------------------------------
def init_params(key, in_channels, out_channels):
    ks = jax.random.split(key, 16)

    def w(k, shape, fan_in):
        return jax.random.normal(k, shape, jnp.float32) / math.sqrt(fan_in)

    cin2 = 2 * in_channels
    return {
        # Upsample(in_channels): nearest 2x + conv3x3 (Cin -> Cin)
        "up_w": w(ks[0], (3, 3, in_channels, in_channels), 9 * in_channels),
        "up_b": 0.01 * jax.random.normal(ks[1], (in_channels,), jnp.float32),
        # BasicBlock(2*Cin -> Cout)
        "rc1_w": w(ks[2], (3, 3, cin2, out_channels), 9 * cin2),
        "rc1_b": 0.01 * jax.random.normal(ks[3], (out_channels,), jnp.float32),
        "rc2_w": w(ks[4], (3, 3, out_channels, out_channels), 9 * out_channels),
        "rc2_b": 0.01 * jax.random.normal(ks[5], (out_channels,), jnp.float32),
        "rsc_w": w(ks[6], (1, 1, cin2, out_channels), cin2),
        "rsc_b": 0.01 * jax.random.normal(ks[7], (out_channels,), jnp.float32),
        # AttentionModule(1): single head over spatial positions, feature dim = Cout
        "wq": w(ks[8], (out_channels, out_channels), out_channels),
        "wk": w(ks[9], (out_channels, out_channels), out_channels),
        "wv": w(ks[10], (out_channels, out_channels), out_channels),
        "wo": w(ks[11], (out_channels, out_channels), out_channels),
    }


def res_decoder_block_forward(params, x_nchw, context, mask, stride=1, padding=1):
    """x_nchw: (B, Cin, H, W); context = (r_context, _), r_context (B, Cin, 2H, 2W);
    mask: (B, 1, S) additive key mask, S = (2H)*(2W). Returns (B, Cout, 2H, 2W)."""
    assert stride == 1 and padding == 1  # TODO(synk): general stride/padding unsupported
    B, Cin, H, W = x_nchw.shape
    Ho, Wo = 2 * H, 2 * W
    S = Ho * Wo
    PAD = Wo + 1
    f32, bf16 = jnp.float32, jnp.bfloat16
    Cout = params["rc1_w"].shape[-1]

    # --- host-side weight plumbing (tiny; folded under jit) ---
    def conv_taps_t(w_hwio):          # (3,3,Ci,Co) -> (9, Co, Ci) bf16 tap matrices
        kh, kw, ci, co = w_hwio.shape
        return jnp.transpose(w_hwio.reshape(kh * kw, ci, co), (0, 2, 1)).astype(bf16)

    wup_t = conv_taps_t(params["up_w"])
    w1 = params["rc1_w"]
    w1x_t = conv_taps_t(w1[:, :, :Cin, :])
    w1r_t = conv_taps_t(w1[:, :, Cin:, :])
    w2_t = conv_taps_t(params["rc2_w"])
    wsc = params["rsc_w"].reshape(2 * Cin, Cout)
    wscx_t = wsc[:Cin, :].T.astype(bf16)
    wscr_t = wsc[Cin:, :].T.astype(bf16)
    bup = params["up_b"].reshape(Cin, 1).astype(f32)
    b1 = params["rc1_b"].reshape(Cout, 1).astype(f32)
    b2 = params["rc2_b"].reshape(Cout, 1).astype(f32)
    bsc = params["rsc_b"].reshape(Cout, 1).astype(f32)

    # attention weights: fold 1/sqrt(C) into wq on the host; bf16 MXU inputs
    scale = 1.0 / math.sqrt(Cout)
    wq = (params["wq"] * scale).astype(bf16)
    wk = params["wk"].astype(bf16)
    wv = params["wv"].astype(bf16)
    wo = params["wo"].astype(bf16)

    # horizontal tap-validity masks (kill neighbors that wrap across image rows), (3, S)
    w_idx = jnp.arange(S) % Wo
    wmask = jnp.stack([(w_idx >= 1).astype(f32),
                       jnp.ones((S,), f32),
                       (w_idx <= Wo - 2).astype(f32)], axis=0)

    # nearest-2x upsample of the tiny Cin-channel input, then flatten to (C, S) + halo pad
    xu = jnp.repeat(jnp.repeat(x_nchw, 2, axis=2), 2, axis=3).reshape(B, Cin, S)
    xu_p = jnp.pad(xu, ((0, 0), (0, 0), (PAD, PAD)))
    r_context, _ = context
    r_p = jnp.pad(r_context.reshape(B, Cin, S), ((0, 0), (0, 0), (PAD, PAD)))

    y = fused_block(xu_p, r_p, wmask, wup_t, bup, w1x_t, w1r_t, b1,
                    wscx_t, wscr_t, bsc, w2_t, b2, S=S, Wo=Wo)       # (B, Cout, S)
    o = attention(y, mask, wq, wk, wv, wo)                           # (B, Cout, S)
    return o.reshape(B, Cout, Ho, Wo)                                # NCHW


# ---------------------------------------------------------------------------
# Pure-JAX reference (for correctness checking only)
# ---------------------------------------------------------------------------
def _reference_forward(params, x_nchw, context, mask):
    r_context, _ = context

    def conv(x, w_hwio, b, pad):
        w = jnp.transpose(w_hwio, (3, 2, 0, 1))                      # HWIO -> OIHW
        y = lax.conv_general_dilated(x, w, (1, 1), [(pad, pad), (pad, pad)],
                                     dimension_numbers=("NCHW", "OIHW", "NCHW"))
        return y + b[None, :, None, None]

    xu = jnp.repeat(jnp.repeat(x_nchw, 2, axis=2), 2, axis=3)
    hup = conv(xu, params["up_w"], params["up_b"], 1)
    h = jnp.concatenate([hup, r_context], axis=1)
    y1 = jax.nn.relu(conv(h, params["rc1_w"], params["rc1_b"], 1))
    sc = conv(h, params["rsc_w"], params["rsc_b"], 0)
    y2 = jax.nn.relu(conv(y1, params["rc2_w"], params["rc2_b"], 1) + sc)
    B, C, Ho, Wo = y2.shape
    xs = y2.reshape(B, C, Ho * Wo).transpose(0, 2, 1)                # (B, S, C)
    q = xs @ params["wq"] * (1.0 / math.sqrt(C))
    k = xs @ params["wk"]
    v = xs @ params["wv"]
    s = q @ k.transpose(0, 2, 1) + mask
    p = jax.nn.softmax(s, axis=-1)
    o = (p @ v) @ params["wo"]
    out = xs + o
    return out.transpose(0, 2, 1).reshape(B, C, Ho, Wo)


# ---------------------------------------------------------------------------
if __name__ == "__main__":
    in_channels, out_channels = 4, 4
    B, H, W = 2, 8, 8
    Ho, Wo = 2 * H, 2 * W
    S = Ho * Wo

    key = jax.random.PRNGKey(0)
    kp, kx, kr = jax.random.split(key, 3)

    params = init_params(kp, in_channels, out_channels)
    x = jax.random.normal(kx, (B, in_channels, H, W), jnp.float32)
    r_context = jax.random.normal(kr, (B, in_channels, Ho, Wo), jnp.float32)
    context = (r_context, None)

    # additive key mask: mask out the last 8 spatial positions
    key_valid = jnp.arange(S) < (S - 8)
    mask = jnp.where(key_valid, 0.0, -1e9).astype(jnp.float32)
    mask = jnp.broadcast_to(mask[None, None, :], (B, 1, S))

    fwd = jax.jit(res_decoder_block_forward)
    out = jax.block_until_ready(fwd(params, x, context, mask))
    assert out.shape == (B, out_channels, Ho, Wo), out.shape
    assert bool(jnp.all(jnp.isfinite(out)))

    ref = _reference_forward(params, x, context, mask)
    rel_err = float(jnp.max(jnp.abs(out - ref)) / (jnp.max(jnp.abs(ref)) + 1e-6))
    assert rel_err < 5e-2, f"mismatch vs reference: rel_err={rel_err}"
    print("KERNEL_OK")
</pallas_src>

<mosaic_0001>
module attributes {stable_mosaic.version = 11 : i64} {
  func.func @_attention_kernel(%arg0: i32, %arg1: memref<1x4x256xf32, #tpu.memory_space<vmem>>, %arg2: memref<1x1x256xf32, #tpu.memory_space<vmem>>, %arg3: memref<4x4xbf16, #tpu.memory_space<vmem>>, %arg4: memref<4x4xbf16, #tpu.memory_space<vmem>>, %arg5: memref<4x4xbf16, #tpu.memory_space<vmem>>, %arg6: memref<4x4xbf16, #tpu.memory_space<vmem>>, %arg7: memref<1x4x256xf32, #tpu.memory_space<vmem>>) attributes {dimension_semantics = [#tpu.dimension_semantics<parallel>], iteration_bounds = array<i64: 2>, scalar_prefetch = 0 : i64, scratch_operands = 0 : i64, tpu.core_type = #tpu.core_type<tc>, window_params = [{transform_indices = @transform_0, window_bounds = array<i64: 1, 4, 256>}, {transform_indices = @transform_1, window_bounds = array<i64: 1, 1, 256>}, {pipeline_mode = #tpu.pipeline_mode<synchronous>, transform_indices = @transform_2, window_bounds = array<i64: 4, 4>}, {pipeline_mode = #tpu.pipeline_mode<synchronous>, transform_indices = @transform_3, window_bounds = array<i64: 4, 4>}, {pipeline_mode = #tpu.pipeline_mode<synchronous>, transform_indices = @transform_4, window_bounds = array<i64: 4, 4>}, {pipeline_mode = #tpu.pipeline_mode<synchronous>, transform_indices = @transform_5, window_bounds = array<i64: 4, 4>}, {transform_indices = @transform_6, window_bounds = array<i64: 1, 4, 256>}]} {
    %c0 = arith.constant 0 : index
    %c0_0 = arith.constant 0 : index
    %c0_1 = arith.constant 0 : index
    %0 = vector.load %arg1[%c0, %c0_0, %c0_1] : memref<1x4x256xf32, #tpu.memory_space<vmem>>, vector<1x4x256xf32>
    %1 = vector.shape_cast %0 : vector<1x4x256xf32> to vector<4x256xf32>
    %2 = tpu.transpose %1, [1, 0] : vector<4x256xf32> -> vector<256x4xf32>
    %3 = arith.truncf %2 : vector<256x4xf32> to vector<256x4xbf16>
    %c0_2 = arith.constant 0 : index
    %c0_3 = arith.constant 0 : index
    %4 = vector.load %arg3[%c0_2, %c0_3] : memref<4x4xbf16, #tpu.memory_space<vmem>>, vector<4x4xbf16>
    %cst = arith.constant dense<0.000000e+00> : vector<256x4xf32>
    %5 = tpu.matmul %3, %4, %cst {dimension_numbers = #tpu.dot_dimension_numbers<[1], [0], [0], [1], [0, 0, 1, 1], [], []>} : vector<256x4xbf16>, vector<4x4xbf16>, vector<256x4xf32> -> vector<256x4xf32>
    %c0_4 = arith.constant 0 : index
    %c0_5 = arith.constant 0 : index
    %6 = vector.load %arg4[%c0_4, %c0_5] : memref<4x4xbf16, #tpu.memory_space<vmem>>, vector<4x4xbf16>
    %cst_6 = arith.constant dense<0.000000e+00> : vector<256x4xf32>
    %7 = tpu.matmul %3, %6, %cst_6 {dimension_numbers = #tpu.dot_dimension_numbers<[1], [0], [0], [1], [0, 0, 1, 1], [], []>} : vector<256x4xbf16>, vector<4x4xbf16>, vector<256x4xf32> -> vector<256x4xf32>
    %c0_7 = arith.constant 0 : index
    %c0_8 = arith.constant 0 : index
    %8 = vector.load %arg5[%c0_7, %c0_8] : memref<4x4xbf16, #tpu.memory_space<vmem>>, vector<4x4xbf16>
    %cst_9 = arith.constant dense<0.000000e+00> : vector<256x4xf32>
    %9 = tpu.matmul %3, %8, %cst_9 {dimension_numbers = #tpu.dot_dimension_numbers<[1], [0], [0], [1], [0, 0, 1, 1], [], []>} : vector<256x4xbf16>, vector<4x4xbf16>, vector<256x4xf32> -> vector<256x4xf32>
    %10 = arith.truncf %5 : vector<256x4xf32> to vector<256x4xbf16>
    %11 = tpu.transpose %7, [1, 0] : vector<256x4xf32> -> vector<4x256xf32>
    %12 = arith.truncf %11 : vector<4x256xf32> to vector<4x256xbf16>
    %cst_10 = arith.constant dense<0.000000e+00> : vector<256x256xf32>
    %13 = tpu.matmul %10, %12, %cst_10 {dimension_numbers = #tpu.dot_dimension_numbers<[1], [0], [0], [1], [0, 0, 1, 1], [], []>} : vector<256x4xbf16>, vector<4x256xbf16>, vector<256x256xf32> -> vector<256x256xf32>
    %c0_11 = arith.constant 0 : index
    %c0_12 = arith.constant 0 : index
    %c0_13 = arith.constant 0 : index
    %14 = vector.load %arg2[%c0_11, %c0_12, %c0_13] : memref<1x1x256xf32, #tpu.memory_space<vmem>>, vector<1x1x256xf32>
    %15 = vector.shape_cast %14 : vector<1x1x256xf32> to vector<1x256xf32>
    %16 = vector.broadcast %15 : vector<1x256xf32> to vector<256x256xf32>
    %17 = arith.addf %13, %16 : vector<256x256xf32>
    %cst_14 = arith.constant dense<0xFF800000> : vector<256xf32>
    %18 = vector.multi_reduction <maximumf>, %17, %cst_14 [1] : vector<256x256xf32> to vector<256xf32>
    %19 = vector.shape_cast %18 : vector<256xf32> to vector<256x1xf32>
    %20 = vector.broadcast %19 : vector<256x1xf32> to vector<256x256xf32>
    %21 = arith.subf %17, %20 : vector<256x256xf32>
    %22 = math.exp %21 : vector<256x256xf32>
    %cst_15 = arith.constant dense<0.000000e+00> : vector<256xf32>
    %23 = vector.multi_reduction <add>, %22, %cst_15 [1] : vector<256x256xf32> to vector<256xf32>
    %24 = vector.shape_cast %23 : vector<256xf32> to vector<256x1xf32>
    %25 = tpu.reciprocal %24 {approx = true} : vector<256x1xf32> -> vector<256x1xf32>
    %26 = vector.broadcast %25 : vector<256x1xf32> to vector<256x256xf32>
    %27 = arith.mulf %22, %26 : vector<256x256xf32>
    %28 = arith.truncf %27 : vector<256x256xf32> to vector<256x256xbf16>
    %29 = arith.truncf %9 : vector<256x4xf32> to vector<256x4xbf16>
    %cst_16 = arith.constant dense<0.000000e+00> : vector<256x4xf32>
    %30 = tpu.matmul %28, %29, %cst_16 {dimension_numbers = #tpu.dot_dimension_numbers<[1], [0], [0], [1], [0, 0, 1, 1], [], []>} : vector<256x256xbf16>, vector<256x4xbf16>, vector<256x4xf32> -> vector<256x4xf32>
    %31 = arith.truncf %30 : vector<256x4xf32> to vector<256x4xbf16>
    %c0_17 = arith.constant 0 : index
    %c0_18 = arith.constant 0 : index
    %32 = vector.load %arg6[%c0_17, %c0_18] : memref<4x4xbf16, #tpu.memory_space<vmem>>, vector<4x4xbf16>
    %cst_19 = arith.constant dense<0.000000e+00> : vector<256x4xf32>
    %33 = tpu.matmul %31, %32, %cst_19 {dimension_numbers = #tpu.dot_dimension_numbers<[1], [0], [0], [1], [0, 0, 1, 1], [], []>} : vector<256x4xbf16>, vector<4x4xbf16>, vector<256x4xf32> -> vector<256x4xf32>
    %34 = arith.addf %2, %33 : vector<256x4xf32>
    %35 = tpu.transpose %34, [1, 0] : vector<256x4xf32> -> vector<4x256xf32>
    %c0_20 = arith.constant 0 : index
    %c0_21 = arith.constant 0 : index
    %c0_22 = arith.constant 0 : index
    %36 = vector.load %arg7[%c0_20, %c0_21, %c0_22] : memref<1x4x256xf32, #tpu.memory_space<vmem>>, vector<1x4x256xf32>
    %37 = vector.shape_cast %36 : vector<1x4x256xf32> to vector<4x256xf32>
    %38 = vector.shape_cast %35 : vector<4x256xf32> to vector<1x4x256xf32>
    tpu.vector_store %arg7[%c0_20, %c0_21, %c0_22], %38 {strides = array<i32>} : memref<1x4x256xf32, #tpu.memory_space<vmem>>, vector<1x4x256xf32>,
    return
  }
  func.func @transform_0(%arg0: i32) -> (i32, i32, i32) {
    %c0_i32 = arith.constant 0 : i32
    %c0_i32_0 = arith.constant 0 : i32
    %c0_i32_1 = arith.constant 0 : i32
    return %arg0, %c0_i32, %c0_i32_0 : i32, i32, i32
  }
  func.func @transform_1(%arg0: i32) -> (i32, i32, i32) {
    %c0_i32 = arith.constant 0 : i32
    %c0_i32_0 = arith.constant 0 : i32
    %c0_i32_1 = arith.constant 0 : i32
    return %arg0, %c0_i32, %c0_i32_0 : i32, i32, i32
  }
  func.func @transform_2(%arg0: i32) -> (i32, i32) {
    %c0_i32 = arith.constant 0 : i32
    %c0_i32_0 = arith.constant 0 : i32
    %c0_i32_1 = arith.constant 0 : i32
    return %c0_i32, %c0_i32_0 : i32, i32
  }
  func.func @transform_3(%arg0: i32) -> (i32, i32) {
    %c0_i32 = arith.constant 0 : i32
    %c0_i32_0 = arith.constant 0 : i32
    %c0_i32_1 = arith.constant 0 : i32
    return %c0_i32, %c0_i32_0 : i32, i32
  }
  func.func @transform_4(%arg0: i32) -> (i32, i32) {
    %c0_i32 = arith.constant 0 : i32
    %c0_i32_0 = arith.constant 0 : i32
    %c0_i32_1 = arith.constant 0 : i32
    return %c0_i32, %c0_i32_0 : i32, i32
  }
  func.func @transform_5(%arg0: i32) -> (i32, i32) {
    %c0_i32 = arith.constant 0 : i32
    %c0_i32_0 = arith.constant 0 : i32
    %c0_i32_1 = arith.constant 0 : i32
    return %c0_i32, %c0_i32_0 : i32, i32
  }
  func.func @transform_6(%arg0: i32) -> (i32, i32, i32) {
    %c0_i32 = arith.constant 0 : i32
    %c0_i32_0 = arith.constant 0 : i32
    %c0_i32_1 = arith.constant 0 : i32
    return %arg0, %c0_i32, %c0_i32_0 : i32, i32, i32
  }
}

module attributes {stable_mosaic.version = 11 : i64} {
  func.func @_fused_block_kernel(%arg0: i32, %arg1: memref<1x4x290xf32, #tpu.memory_space<vmem>>, %arg2: memref<1x4x290xf32, #tpu.memory_space<vmem>>, %arg3: memref<3x256xf32, #tpu.memory_space<vmem>>, %arg4: memref<9x4x4xbf16, #tpu.memory_space<vmem>>, %arg5: memref<4x1xf32, #tpu.memory_space<vmem>>, %arg6: memref<9x4x4xbf16, #tpu.memory_space<vmem>>, %arg7: memref<9x4x4xbf16, #tpu.memory_space<vmem>>, %arg8: memref<4x1xf32, #tpu.memory_space<vmem>>, %arg9: memref<4x4xbf16, #tpu.memory_space<vmem>>, %arg10: memref<4x4xbf16, #tpu.memory_space<vmem>>, %arg11: memref<4x1xf32, #tpu.memory_space<vmem>>, %arg12: memref<9x4x4xbf16, #tpu.memory_space<vmem>>, %arg13: memref<4x1xf32, #tpu.memory_space<vmem>>, %arg14: memref<1x4x256xf32, #tpu.memory_space<vmem>>, %arg15: memref<4x290xf32, #tpu.memory_space<vmem>>, %arg16: memref<4x290xf32, #tpu.memory_space<vmem>>) attributes {dimension_semantics = [#tpu.dimension_semantics<parallel>], iteration_bounds = array<i64: 2>, scalar_prefetch = 0 : i64, scratch_operands = 2 : i64, tpu.core_type = #tpu.core_type<tc>, window_params = [{transform_indices = @transform_0, window_bounds = array<i64: 1, 4, 290>}, {transform_indices = @transform_1, window_bounds = array<i64: 1, 4, 290>}, {pipeline_mode = #tpu.pipeline_mode<synchronous>, transform_indices = @transform_2, window_bounds = array<i64: 3, 256>}, {pipeline_mode = #tpu.pipeline_mode<synchronous>, transform_indices = @transform_3, window_bounds = array<i64: 9, 4, 4>}, {pipeline_mode = #tpu.pipeline_mode<synchronous>, transform_indices = @transform_4, window_bounds = array<i64: 4, 1>}, {pipeline_mode = #tpu.pipeline_mode<synchronous>, transform_indices = @transform_5, window_bounds = array<i64: 9, 4, 4>}, {pipeline_mode = #tpu.pipeline_mode<synchronous>, transform_indices = @transform_6, window_bounds = array<i64: 9, 4, 4>}, {pipeline_mode = #tpu.pipeline_mode<synchronous>, transform_indices = @transform_7, window_bounds = array<i64: 4, 1>}, {pipeline_mode = #tpu.pipeline_mode<synchronous>, transform_indices = @transform_8, window_bounds = array<i64: 4, 4>}, {pipeline_mode = #tpu.pipeline_mode<synchronous>, transform_indices = @transform_9, window_bounds = array<i64: 4, 4>}, {pipeline_mode = #tpu.pipeline_mode<synchronous>, transform_indices = @transform_10, window_bounds = array<i64: 4, 1>}, {pipeline_mode = #tpu.pipeline_mode<synchronous>, transform_indices = @transform_11, window_bounds = array<i64: 9, 4, 4>}, {pipeline_mode = #tpu.pipeline_mode<synchronous>, transform_indices = @transform_12, window_bounds = array<i64: 4, 1>}, {transform_indices = @transform_13, window_bounds = array<i64: 1, 4, 256>}]} {
    %cst = arith.constant 0.000000e+00 : f32
    %0 = vector.broadcast %cst : f32 to vector<4x17xf32>
    %c0 = arith.constant 0 : index
    %c0_0 = arith.constant 0 : index
    %1 = vector.load %arg15[%c0, %c0_0] : memref<4x290xf32, #tpu.memory_space<vmem>>, vector<4x17xf32>
    tpu.vector_store %arg15[%c0, %c0_0], %0 {strides = array<i32>} : memref<4x290xf32, #tpu.memory_space<vmem>>, vector<4x17xf32>,
    %cst_1 = arith.constant 0.000000e+00 : f32
    %2 = vector.broadcast %cst_1 : f32 to vector<4x17xf32>
    %c0_2 = arith.constant 0 : index
    %c273 = arith.constant 273 : index
    %3 = vector.load %arg15[%c0_2, %c273] : memref<4x290xf32, #tpu.memory_space<vmem>>, vector<4x17xf32>
    tpu.vector_store %arg15[%c0_2, %c273], %2 {strides = array<i32>} : memref<4x290xf32, #tpu.memory_space<vmem>>, vector<4x17xf32>,
    %cst_3 = arith.constant 0.000000e+00 : f32
    %4 = vector.broadcast %cst_3 : f32 to vector<4x17xf32>
    %c0_4 = arith.constant 0 : index
    %c0_5 = arith.constant 0 : index
    %5 = vector.load %arg16[%c0_4, %c0_5] : memref<4x290xf32, #tpu.memory_space<vmem>>, vector<4x17xf32>
    tpu.vector_store %arg16[%c0_4, %c0_5], %4 {strides = array<i32>} : memref<4x290xf32, #tpu.memory_space<vmem>>, vector<4x17xf32>,
    %cst_6 = arith.constant 0.000000e+00 : f32
    %6 = vector.broadcast %cst_6 : f32 to vector<4x17xf32>
    %c0_7 = arith.constant 0 : index
    %c273_8 = arith.constant 273 : index
    %7 = vector.load %arg16[%c0_7, %c273_8] : memref<4x290xf32, #tpu.memory_space<vmem>>, vector<4x17xf32>
    tpu.vector_store %arg16[%c0_7, %c273_8], %6 {strides = array<i32>} : memref<4x290xf32, #tpu.memory_space<vmem>>, vector<4x17xf32>,
    %cst_9 = arith.constant 0.000000e+00 : f32
    %8 = vector.broadcast %cst_9 : f32 to vector<4x256xf32>
    %c0_10 = arith.constant 0 : index
    %c0_11 = arith.constant 0 : index
    %c0_12 = arith.constant 0 : index
    %9 = vector.load %arg1[%c0_10, %c0_11, %c0_12] : memref<1x4x290xf32, #tpu.memory_space<vmem>>, vector<1x4x256xf32>
    %10 = vector.shape_cast %9 : vector<1x4x256xf32> to vector<4x256xf32>
    %c0_13 = arith.constant 0 : index
    %c0_14 = arith.constant 0 : index
    %11 = vector.load %arg3[%c0_13, %c0_14] : memref<3x256xf32, #tpu.memory_space<vmem>>, vector<1x256xf32>
    %12 = vector.broadcast %11 : vector<1x256xf32> to vector<4x256xf32>
    %13 = arith.mulf %10, %12 : vector<4x256xf32>
    %c0_15 = arith.constant 0 : index
    %c0_16 = arith.constant 0 : index
    %c0_17 = arith.constant 0 : index
    %14 = vector.load %arg4[%c0_15, %c0_16, %c0_17] : memref<9x4x4xbf16, #tpu.memory_space<vmem>>, vector<1x4x4xbf16>
    %15 = vector.shape_cast %14 : vector<1x4x4xbf16> to vector<4x4xbf16>
    %16 = arith.truncf %13 : vector<4x256xf32> to vector<4x256xbf16>
    %cst_18 = arith.constant dense<0.000000e+00> : vector<4x256xf32>
    %17 = tpu.matmul %15, %16, %cst_18 {dimension_numbers = #tpu.dot_dimension_numbers<[1], [0], [0], [1], [0, 0, 1, 1], [], []>} : vector<4x4xbf16>, vector<4x256xbf16>, vector<4x256xf32> -> vector<4x256xf32>
    %18 = arith.addf %8, %17 : vector<4x256xf32>
    %c0_19 = arith.constant 0 : index
    %c0_20 = arith.constant 0 : index
    %c1 = arith.constant 1 : index
    %19 = vector.load %arg1[%c0_19, %c0_20, %c1] : memref<1x4x290xf32, #tpu.memory_space<vmem>>, vector<1x4x256xf32>
    %20 = vector.shape_cast %19 : vector<1x4x256xf32> to vector<4x256xf32>
    %c1_21 = arith.constant 1 : index
    %c0_22 = arith.constant 0 : index
    %c0_23 = arith.constant 0 : index
    %21 = vector.load %arg4[%c1_21, %c0_22, %c0_23] : memref<9x4x4xbf16, #tpu.memory_space<vmem>>, vector<1x4x4xbf16>
    %22 = vector.shape_cast %21 : vector<1x4x4xbf16> to vector<4x4xbf16>
    %23 = arith.truncf %20 : vector<4x256xf32> to vector<4x256xbf16>
    %cst_24 = arith.constant dense<0.000000e+00> : vector<4x256xf32>
    %24 = tpu.matmul %22, %23, %cst_24 {dimension_numbers = #tpu.dot_dimension_numbers<[1], [0], [0], [1], [0, 0, 1, 1], [], []>} : vector<4x4xbf16>, vector<4x256xbf16>, vector<4x256xf32> -> vector<4x256xf32>
    %25 = arith.addf %18, %24 : vector<4x256xf32>
    %c0_25 = arith.constant 0 : index
    %c0_26 = arith.constant 0 : index
    %c2 = arith.constant 2 : index
    %26 = vector.load %arg1[%c0_25, %c0_26, %c2] : memref<1x4x290xf32, #tpu.memory_space<vmem>>, vector<1x4x256xf32>
    %27 = vector.shape_cast %26 : vector<1x4x256xf32> to vector<4x256xf32>
    %c2_27 = arith.constant 2 : index
    %c0_28 = arith.constant 0 : index
    %28 = vector.load %arg3[%c2_27, %c0_28] : memref<3x256xf32, #tpu.memory_space<vmem>>, vector<1x256xf32>
    %29 = vector.broadcast %28 : vector<1x256xf32> to vector<4x256xf32>
    %30 = arith.mulf %27, %29 : vector<4x256xf32>
    %c2_29 = arith.constant 2 : index
    %c0_30 = arith.constant 0 : index
    %c0_31 = arith.constant 0 : index
    %31 = vector.load %arg4[%c2_29, %c0_30, %c0_31] : memref<9x4x4xbf16, #tpu.memory_space<vmem>>, vector<1x4x4xbf16>
    %32 = vector.shape_cast %31 : vector<1x4x4xbf16> to vector<4x4xbf16>
    %33 = arith.truncf %30 : vector<4x256xf32> to vector<4x256xbf16>
    %cst_32 = arith.constant dense<0.000000e+00> : vector<4x256xf32>
    %34 = tpu.matmul %32, %33, %cst_32 {dimension_numbers = #tpu.dot_dimension_numbers<[1], [0], [0], [1], [0, 0, 1, 1], [], []>} : vector<4x4xbf16>, vector<4x256xbf16>, vector<4x256xf32> -> vector<4x256xf32>
    %35 = arith.addf %25, %34 : vector<4x256xf32>
    %c0_33 = arith.constant 0 : index
    %c0_34 = arith.constant 0 : index
    %c16 = arith.constant 16 : index
    %36 = vector.load %arg1[%c0_33, %c0_34, %c16] : memref<1x4x290xf32, #tpu.memory_space<vmem>>, vector<1x4x256xf32>
    %37 = vector.shape_cast %36 : vector<1x4x256xf32> to vector<4x256xf32>
    %c0_35 = arith.constant 0 : index
    %c0_36 = arith.constant 0 : index
    %38 = vector.load %arg3[%c0_35, %c0_36] : memref<3x256xf32, #tpu.memory_space<vmem>>, vector<1x256xf32>
    %39 = vector.broadcast %38 : vector<1x256xf32> to vector<4x256xf32>
    %40 = arith.mulf %37, %39 : vector<4x256xf32>
    %c3 = arith.constant 3 : index
    %c0_37 = arith.constant 0 : index
    %c0_38 = arith.constant 0 : index
    %41 = vector.load %arg4[%c3, %c0_37, %c0_38] : memref<9x4x4xbf16, #tpu.memory_space<vmem>>, vector<1x4x4xbf16>
    %42 = vector.shape_cast %41 : vector<1x4x4xbf16> to vector<4x4xbf16>
    %43 = arith.truncf %40 : vector<4x256xf32> to vector<4x256xbf16>
    %cst_39 = arith.constant dense<0.000000e+00> : vector<4x256xf32>
    %44 = tpu.matmul %42, %43, %cst_39 {dimension_numbers = #tpu.dot_dimension_numbers<[1], [0], [0], [1], [0, 0, 1, 1], [], []>} : vector<4x4xbf16>, vector<4x256xbf16>, vector<4x256xf32> -> vector<4x256xf32>
    %45 = arith.addf %35, %44 : vector<4x256xf32>
    %c0_40 = arith.constant 0 : index
    %c0_41 = arith.constant 0 : index
    %c17 = arith.constant 17 : index
    %46 = vector.load %arg1[%c0_40, %c0_41, %c17] : memref<1x4x290xf32, #tpu.memory_space<vmem>>, vector<1x4x256xf32>
    %47 = vector.shape_cast %46 : vector<1x4x256xf32> to vector<4x256xf32>
    %c4 = arith.constant 4 : index
    %c0_42 = arith.constant 0 : index
    %c0_43 = arith.constant 0 : index
    %48 = vector.load %arg4[%c4, %c0_42, %c0_43] : memref<9x4x4xbf16, #tpu.memory_space<vmem>>, vector<1x4x4xbf16>
    %49 = vector.shape_cast %48 : vector<1x4x4xbf16> to vector<4x4xbf16>
    %50 = arith.truncf %47 : vector<4x256xf32> to vector<4x256xbf16>
    %cst_44 = arith.constant dense<0.000000e+00> : vector<4x256xf32>
    %51 = tpu.matmul %49, %50, %cst_44 {dimension_numbers = #tpu.dot_dimension_numbers<[1], [0], [0], [1], [0, 0, 1, 1], [], []>} : vector<4x4xbf16>, vector<4x256xbf16>, vector<4x256xf32> -> vector<4x256xf32>
    %52 = arith.addf %45, %51 : vector<4x256xf32>
    %c0_45 = arith.constant 0 : index
    %c0_46 = arith.constant 0 : index
    %c18 = arith.constant 18 : index
    %53 = vector.load %arg1[%c0_45, %c0_46, %c18] : memref<1x4x290xf32, #tpu.memory_space<vmem>>, vector<1x4x256xf32>
    %54 = vector.shape_cast %53 : vector<1x4x256xf32> to vector<4x256xf32>
    %c2_47 = arith.constant 2 : index
    %c0_48 = arith.constant 0 : index
    %55 = vector.load %arg3[%c2_47, %c0_48] : memref<3x256xf32, #tpu.memory_space<vmem>>, vector<1x256xf32>
    %56 = vector.broadcast %55 : vector<1x256xf32> to vector<4x256xf32>
    %57 = arith.mulf %54, %56 : vector<4x256xf32>
    %c5 = arith.constant 5 : index
    %c0_49 = arith.constant 0 : index
    %c0_50 = arith.constant 0 : index
    %58 = vector.load %arg4[%c5, %c0_49, %c0_50] : memref<9x4x4xbf16, #tpu.memory_space<vmem>>, vector<1x4x4xbf16>
    %59 = vector.shape_cast %58 : vector<1x4x4xbf16> to vector<4x4xbf16>
    %60 = arith.truncf %57 : vector<4x256xf32> to vector<4x256xbf16>
    %cst_51 = arith.constant dense<0.000000e+00> : vector<4x256xf32>
    %61 = tpu.matmul %59, %60, %cst_51 {dimension_numbers = #tpu.dot_dimension_numbers<[1], [0], [0], [1], [0, 0, 1, 1], [], []>} : vector<4x4xbf16>, vector<4x256xbf16>, vector<4x256xf32> -> vector<4x256xf32>
    %62 = arith.addf %52, %61 : vector<4x256xf32>
    %c0_52 = arith.constant 0 : index
    %c0_53 = arith.constant 0 : index
    %c32 = arith.constant 32 : index
    %63 = vector.load %arg1[%c0_52, %c0_53, %c32] : memref<1x4x290xf32, #tpu.memory_space<vmem>>, vector<1x4x256xf32>
    %64 = vector.shape_cast %63 : vector<1x4x256xf32> to vector<4x256xf32>
    %c0_54 = arith.constant 0 : index
    %c0_55 = arith.constant 0 : index
    %65 = vector.load %arg3[%c0_54, %c0_55] : memref<3x256xf32, #tpu.memory_space<vmem>>, vector<1x256xf32>
    %66 = vector.broadcast %65 : vector<1x256xf32> to vector<4x256xf32>
    %67 = arith.mulf %64, %66 : vector<4x256xf32>
    %c6 = arith.constant 6 : index
    %c0_56 = arith.constant 0 : index
    %c0_57 = arith.constant 0 : index
    %68 = vector.load %arg4[%c6, %c0_56, %c0_57] : memref<9x4x4xbf16, #tpu.memory_space<vmem>>, vector<1x4x4xbf16>
    %69 = vector.shape_cast %68 : vector<1x4x4xbf16> to vector<4x4xbf16>
    %70 = arith.truncf %67 : vector<4x256xf32> to vector<4x256xbf16>
    %cst_58 = arith.constant dense<0.000000e+00> : vector<4x256xf32>
    %71 = tpu.matmul %69, %70, %cst_58 {dimension_numbers = #tpu.dot_dimension_numbers<[1], [0], [0], [1], [0, 0, 1, 1], [], []>} : vector<4x4xbf16>, vector<4x256xbf16>, vector<4x256xf32> -> vector<4x256xf32>
    %72 = arith.addf %62, %71 : vector<4x256xf32>
    %c0_59 = arith.constant 0 : index
    %c0_60 = arith.constant 0 : index
    %c33 = arith.constant 33 : index
    %73 = vector.load %arg1[%c0_59, %c0_60, %c33] : memref<1x4x290xf32, #tpu.memory_space<vmem>>, vector<1x4x256xf32>
    %74 = vector.shape_cast %73 : vector<1x4x256xf32> to vector<4x256xf32>
    %c7 = arith.constant 7 : index
    %c0_61 = arith.constant 0 : index
    %c0_62 = arith.constant 0 : index
    %75 = vector.load %arg4[%c7, %c0_61, %c0_62] : memref<9x4x4xbf16, #tpu.memory_space<vmem>>, vector<1x4x4xbf16>
    %76 = vector.shape_cast %75 : vector<1x4x4xbf16> to vector<4x4xbf16>
    %77 = arith.truncf %74 : vector<4x256xf32> to vector<4x256xbf16>
    %cst_63 = arith.constant dense<0.000000e+00> : vector<4x256xf32>
    %78 = tpu.matmul %76, %77, %cst_63 {dimension_numbers = #tpu.dot_dimension_numbers<[1], [0], [0], [1], [0, 0, 1, 1], [], []>} : vector<4x4xbf16>, vector<4x256xbf16>, vector<4x256xf32> -> vector<4x256xf32>
    %79 = arith.addf %72, %78 : vector<4x256xf32>
    %c0_64 = arith.constant 0 : index
    %c0_65 = arith.constant 0 : index
    %c34 = arith.constant 34 : index
    %80 = vector.load %arg1[%c0_64, %c0_65, %c34] : memref<1x4x290xf32, #tpu.memory_space<vmem>>, vector<1x4x256xf32>
    %81 = vector.shape_cast %80 : vector<1x4x256xf32> to vector<4x256xf32>
    %c2_66 = arith.constant 2 : index
    %c0_67 = arith.constant 0 : index
    %82 = vector.load %arg3[%c2_66, %c0_67] : memref<3x256xf32, #tpu.memory_space<vmem>>, vector<1x256xf32>
    %83 = vector.broadcast %82 : vector<1x256xf32> to vector<4x256xf32>
    %84 = arith.mulf %81, %83 : vector<4x256xf32>
    %c8 = arith.constant 8 : index
    %c0_68 = arith.constant 0 : index
    %c0_69 = arith.constant 0 : index
    %85 = vector.load %arg4[%c8, %c0_68, %c0_69] : memref<9x4x4xbf16, #tpu.memory_space<vmem>>, vector<1x4x4xbf16>
    %86 = vector.shape_cast %85 : vector<1x4x4xbf16> to vector<4x4xbf16>
    %87 = arith.truncf %84 : vector<4x256xf32> to vector<4x256xbf16>
    %cst_70 = arith.constant dense<0.000000e+00> : vector<4x256xf32>
    %88 = tpu.matmul %86, %87, %cst_70 {dimension_numbers = #tpu.dot_dimension_numbers<[1], [0], [0], [1], [0, 0, 1, 1], [], []>} : vector<4x4xbf16>, vector<4x256xbf16>, vector<4x256xf32> -> vector<4x256xf32>
    %89 = arith.addf %79, %88 : vector<4x256xf32>
    %c0_71 = arith.constant 0 : index
    %c0_72 = arith.constant 0 : index
    %90 = vector.load %arg5[%c0_71, %c0_72] : memref<4x1xf32, #tpu.memory_space<vmem>>, vector<4x1xf32>
    %91 = vector.broadcast %90 : vector<4x1xf32> to vector<4x256xf32>
    %92 = arith.addf %89, %91 : vector<4x256xf32>
    %c0_73 = arith.constant 0 : index
    %c17_74 = arith.constant 17 : index
    %93 = vector.load %arg15[%c0_73, %c17_74] : memref<4x290xf32, #tpu.memory_space<vmem>>, vector<4x256xf32>
    tpu.vector_store %arg15[%c0_73, %c17_74], %92 {strides = array<i32>} : memref<4x290xf32, #tpu.memory_space<vmem>>, vector<4x256xf32>,
    %cst_75 = arith.constant 0.000000e+00 : f32
    %94 = vector.broadcast %cst_75 : f32 to vector<4x256xf32>
    %c0_76 = arith.constant 0 : index
    %c0_77 = arith.constant 0 : index
    %95 = vector.load %arg15[%c0_76, %c0_77] : memref<4x290xf32, #tpu.memory_space<vmem>>, vector<4x256xf32>
    %c0_78 = arith.constant 0 : index
    %c0_79 = arith.constant 0 : index
    %96 = vector.load %arg3[%c0_78, %c0_79] : memref<3x256xf32, #tpu.memory_space<vmem>>, vector<1x256xf32>
    %97 = vector.broadcast %96 : vector<1x256xf32> to vector<4x256xf32>
    %98 = arith.mulf %95, %97 : vector<4x256xf32>
    %c0_80 = arith.constant 0 : index
    %c0_81 = arith.constant 0 : index
    %c0_82 = arith.constant 0 : index
    %99 = vector.load %arg6[%c0_80, %c0_81, %c0_82] : memref<9x4x4xbf16, #tpu.memory_space<vmem>>, vector<1x4x4xbf16>
    %100 = vector.shape_cast %99 : vector<1x4x4xbf16> to vector<4x4xbf16>
    %101 = arith.truncf %98 : vector<4x256xf32> to vector<4x256xbf16>
    %cst_83 = arith.constant dense<0.000000e+00> : vector<4x256xf32>
    %102 = tpu.matmul %100, %101, %cst_83 {dimension_numbers = #tpu.dot_dimension_numbers<[1], [0], [0], [1], [0, 0, 1, 1], [], []>} : vector<4x4xbf16>, vector<4x256xbf16>, vector<4x256xf32> -> vector<4x256xf32>
    %103 = arith.addf %94, %102 : vector<4x256xf32>
    %c0_84 = arith.constant 0 : index
    %c1_85 = arith.constant 1 : index
    %104 = vector.load %arg15[%c0_84, %c1_85] : memref<4x290xf32, #tpu.memory_space<vmem>>, vector<4x256xf32>
    %c1_86 = arith.constant 1 : index
    %c0_87 = arith.constant 0 : index
    %c0_88 = arith.constant 0 : index
    %105 = vector.load %arg6[%c1_86, %c0_87, %c0_88] : memref<9x4x4xbf16, #tpu.memory_space<vmem>>, vector<1x4x4xbf16>
    %106 = vector.shape_cast %105 : vector<1x4x4xbf16> to vector<4x4xbf16>
    %107 = arith.truncf %104 : vector<4x256xf32> to vector<4x256xbf16>
    %cst_89 = arith.constant dense<0.000000e+00> : vector<4x256xf32>
    %108 = tpu.matmul %106, %107, %cst_89 {dimension_numbers = #tpu.dot_dimension_numbers<[1], [0], [0], [1], [0, 0, 1, 1], [], []>} : vector<4x4xbf16>, vector<4x256xbf16>, vector<4x256xf32> -> vector<4x256xf32>
    %109 = arith.addf %103, %108 : vector<4x256xf32>
    %c0_90 = arith.constant 0 : index
    %c2_91 = arith.constant 2 : index
    %110 = vector.load %arg15[%c0_90, %c2_91] : memref<4x290xf32, #tpu.memory_space<vmem>>, vector<4x256xf32>
    %c2_92 = arith.constant 2 : index
    %c0_93 = arith.constant 0 : index
    %111 = vector.load %arg3[%c2_92, %c0_93] : memref<3x256xf32, #tpu.memory_space<vmem>>, vector<1x256xf32>
    %112 = vector.broadcast %111 : vector<1x256xf32> to vector<4x256xf32>
    %113 = arith.mulf %110, %112 : vector<4x256xf32>
    %c2_94 = arith.constant 2 : index
    %c0_95 = arith.constant 0 : index
    %c0_96 = arith.constant 0 : index
    %114 = vector.load %arg6[%c2_94, %c0_95, %c0_96] : memref<9x4x4xbf16, #tpu.memory_space<vmem>>, vector<1x4x4xbf16>
    %115 = vector.shape_cast %114 : vector<1x4x4xbf16> to vector<4x4xbf16>
    %116 = arith.truncf %113 : vector<4x256xf32> to vector<4x256xbf16>
    %cst_97 = arith.constant dense<0.000000e+00> : vector<4x256xf32>
    %117 = tpu.matmul %115, %116, %cst_97 {dimension_numbers = #tpu.dot_dimension_numbers<[1], [0], [0], [1], [0, 0, 1, 1], [], []>} : vector<4x4xbf16>, vector<4x256xbf16>, vector<4x256xf32> -> vector<4x256xf32>
    %118 = arith.addf %109, %117 : vector<4x256xf32>
    %c0_98 = arith.constant 0 : index
    %c16_99 = arith.constant 16 : index
    %119 = vector.load %arg15[%c0_98, %c16_99] : memref<4x290xf32, #tpu.memory_space<vmem>>, vector<4x256xf32>
    %c0_100 = arith.constant 0 : index
    %c0_101 = arith.constant 0 : index
    %120 = vector.load %arg3[%c0_100, %c0_101] : memref<3x256xf32, #tpu.memory_space<vmem>>, vector<1x256xf32>
    %121 = vector.broadcast %120 : vector<1x256xf32> to vector<4x256xf32>
    %122 = arith.mulf %119, %121 : vector<4x256xf32>
    %c3_102 = arith.constant 3 : index
    %c0_103 = arith.constant 0 : index
    %c0_104 = arith.constant 0 : index
    %123 = vector.load %arg6[%c3_102, %c0_103, %c0_104] : memref<9x4x4xbf16, #tpu.memory_space<vmem>>, vector<1x4x4xbf16>
    %124 = vector.shape_cast %123 : vector<1x4x4xbf16> to vector<4x4xbf16>
    %125 = arith.truncf %122 : vector<4x256xf32> to vector<4x256xbf16>
    %cst_105 = arith.constant dense<0.000000e+00> : vector<4x256xf32>
    %126 = tpu.matmul %124, %125, %cst_105 {dimension_numbers = #tpu.dot_dimension_numbers<[1], [0], [0], [1], [0, 0, 1, 1], [], []>} : vector<4x4xbf16>, vector<4x256xbf16>, vector<4x256xf32> -> vector<4x256xf32>
    %127 = arith.addf %118, %126 : vector<4x256xf32>
    %c0_106 = arith.constant 0 : index
    %c17_107 = arith.constant 17 : index
    %128 = vector.load %arg15[%c0_106, %c17_107] : memref<4x290xf32, #tpu.memory_space<vmem>>, vector<4x256xf32>
    %c4_108 = arith.constant 4 : index
    %c0_109 = arith.constant 0 : index
    %c0_110 = arith.constant 0 : index
    %129 = vector.load %arg6[%c4_108, %c0_109, %c0_110] : memref<9x4x4xbf16, #tpu.memory_space<vmem>>, vector<1x4x4xbf16>
    %130 = vector.shape_cast %129 : vector<1x4x4xbf16> to vector<4x4xbf16>
    %131 = arith.truncf %128 : vector<4x256xf32> to vector<4x256xbf16>
    %cst_111 = arith.constant dense<0.000000e+00> : vector<4x256xf32>
    %132 = tpu.matmul %130, %131, %cst_111 {dimension_numbers = #tpu.dot_dimension_numbers<[1], [0], [0], [1], [0, 0, 1, 1], [], []>} : vector<4x4xbf16>, vector<4x256xbf16>, vector<4x256xf32> -> vector<4x256xf32>
    %133 = arith.addf %127, %132 : vector<4x256xf32>
    %c0_112 = arith.constant 0 : index
    %c18_113 = arith.constant 18 : index
    %134 = vector.load %arg15[%c0_112, %c18_113] : memref<4x290xf32, #tpu.memory_space<vmem>>, vector<4x256xf32>
    %c2_114 = arith.constant 2 : index
    %c0_115 = arith.constant 0 : index
    %135 = vector.load %arg3[%c2_114, %c0_115] : memref<3x256xf32, #tpu.memory_space<vmem>>, vector<1x256xf32>
    %136 = vector.broadcast %135 : vector<1x256xf32> to vector<4x256xf32>
    %137 = arith.mulf %134, %136 : vector<4x256xf32>
    %c5_116 = arith.constant 5 : index
    %c0_117 = arith.constant 0 : index
    %c0_118 = arith.constant 0 : index
    %138 = vector.load %arg6[%c5_116, %c0_117, %c0_118] : memref<9x4x4xbf16, #tpu.memory_space<vmem>>, vector<1x4x4xbf16>
    %139 = vector.shape_cast %138 : vector<1x4x4xbf16> to vector<4x4xbf16>
    %140 = arith.truncf %137 : vector<4x256xf32> to vector<4x256xbf16>
    %cst_119 = arith.constant dense<0.000000e+00> : vector<4x256xf32>
    %141 = tpu.matmul %139, %140, %cst_119 {dimension_numbers = #tpu.dot_dimension_numbers<[1], [0], [0], [1], [0, 0, 1, 1], [], []>} : vector<4x4xbf16>, vector<4x256xbf16>, vector<4x256xf32> -> vector<4x256xf32>
    %142 = arith.addf %133, %141 : vector<4x256xf32>
    %c0_120 = arith.constant 0 : index
    %c32_121 = arith.constant 32 : index
    %143 = vector.load %arg15[%c0_120, %c32_121] : memref<4x290xf32, #tpu.memory_space<vmem>>, vector<4x256xf32>
    %c0_122 = arith.constant 0 : index
    %c0_123 = arith.constant 0 : index
    %144 = vector.load %arg3[%c0_122, %c0_123] : memref<3x256xf32, #tpu.memory_space<vmem>>, vector<1x256xf32>
    %145 = vector.broadcast %144 : vector<1x256xf32> to vector<4x256xf32>
    %146 = arith.mulf %143, %145 : vector<4x256xf32>
    %c6_124 = arith.constant 6 : index
    %c0_125 = arith.constant 0 : index
    %c0_126 = arith.constant 0 : index
    %147 = vector.load %arg6[%c6_124, %c0_125, %c0_126] : memref<9x4x4xbf16, #tpu.memory_space<vmem>>, vector<1x4x4xbf16>
    %148 = vector.shape_cast %147 : vector<1x4x4xbf16> to vector<4x4xbf16>
    %149 = arith.truncf %146 : vector<4x256xf32> to vector<4x256xbf16>
    %cst_127 = arith.constant dense<0.000000e+00> : vector<4x256xf32>
    %150 = tpu.matmul %148, %149, %cst_127 {dimension_numbers = #tpu.dot_dimension_numbers<[1], [0], [0], [1], [0, 0, 1, 1], [], []>} : vector<4x4xbf16>, vector<4x256xbf16>, vector<4x256xf32> -> vector<4x256xf32>
    %151 = arith.addf %142, %150 : vector<4x256xf32>
    %c0_128 = arith.constant 0 : index
    %c33_129 = arith.constant 33 : index
    %152 = vector.load %arg15[%c0_128, %c33_129] : memref<4x290xf32, #tpu.memory_space<vmem>>, vector<4x256xf32>
    %c7_130 = arith.constant 7 : index
    %c0_131 = arith.constant 0 : index
    %c0_132 = arith.constant 0 : index
    %153 = vector.load %arg6[%c7_130, %c0_131, %c0_132] : memref<9x4x4xbf16, #tpu.memory_space<vmem>>, vector<1x4x4xbf16>
    %154 = vector.shape_cast %153 : vector<1x4x4xbf16> to vector<4x4xbf16>
    %155 = arith.truncf %152 : vector<4x256xf32> to vector<4x256xbf16>
    %cst_133 = arith.constant dense<0.000000e+00> : vector<4x256xf32>
    %156 = tpu.matmul %154, %155, %cst_133 {dimension_numbers = #tpu.dot_dimension_numbers<[1], [0], [0], [1], [0, 0, 1, 1], [], []>} : vector<4x4xbf16>, vector<4x256xbf16>, vector<4x256xf32> -> vector<4x256xf32>
    %157 = arith.addf %151, %156 : vector<4x256xf32>
    %c0_134 = arith.constant 0 : index
    %c34_135 = arith.constant 34 : index
    %158 = vector.load %arg15[%c0_134, %c34_135] : memref<4x290xf32, #tpu.memory_space<vmem>>, vector<4x256xf32>
    %c2_136 = arith.constant 2 : index
    %c0_137 = arith.constant 0 : index
    %159 = vector.load %arg3[%c2_136, %c0_137] : memref<3x256xf32, #tpu.memory_space<vmem>>, vector<1x256xf32>
    %160 = vector.broadcast %159 : vector<1x256xf32> to vector<4x256xf32>
    %161 = arith.mulf %158, %160 : vector<4x256xf32>
    %c8_138 = arith.constant 8 : index
    %c0_139 = arith.constant 0 : index
    %c0_140 = arith.constant 0 : index
    %162 = vector.load %arg6[%c8_138, %c0_139, %c0_140] : memref<9x4x4xbf16, #tpu.memory_space<vmem>>, vector<1x4x4xbf16>
    %163 = vector.shape_cast %162 : vector<1x4x4xbf16> to vector<4x4xbf16>
    %164 = arith.truncf %161 : vector<4x256xf32> to vector<4x256xbf16>
    %cst_141 = arith.constant dense<0.000000e+00> : vector<4x256xf32>
    %165 = tpu.matmul %163, %164, %cst_141 {dimension_numbers = #tpu.dot_dimension_numbers<[1], [0], [0], [1], [0, 0, 1, 1], [], []>} : vector<4x4xbf16>, vector<4x256xbf16>, vector<4x256xf32> -> vector<4x256xf32>
    %166 = arith.addf %157, %165 : vector<4x256xf32>
    %c0_142 = arith.constant 0 : index
    %c0_143 = arith.constant 0 : index
    %c0_144 = arith.constant 0 : index
    %167 = vector.load %arg2[%c0_142, %c0_143, %c0_144] : memref<1x4x290xf32, #tpu.memory_space<vmem>>, vector<1x4x256xf32>
    %168 = vector.shape_cast %167 : vector<1x4x256xf32> to vector<4x256xf32>
    %c0_145 = arith.constant 0 : index
    %c0_146 = arith.constant 0 : index
    %169 = vector.load %arg3[%c0_145, %c0_146] : memref<3x256xf32, #tpu.memory_space<vmem>>, vector<1x256xf32>
    %170 = vector.broadcast %169 : vector<1x256xf32> to vector<4x256xf32>
    %171 = arith.mulf %168, %170 : vector<4x256xf32>
    %c0_147 = arith.constant 0 : index
    %c0_148 = arith.constant 0 : index
    %c0_149 = arith.constant 0 : index
    %172 = vector.load %arg7[%c0_147, %c0_148, %c0_149] : memref<9x4x4xbf16, #tpu.memory_space<vmem>>, vector<1x4x4xbf16>
    %173 = vector.shape_cast %172 : vector<1x4x4xbf16> to vector<4x4xbf16>
    %174 = arith.truncf %171 : vector<4x256xf32> to vector<4x256xbf16>
    %cst_150 = arith.constant dense<0.000000e+00> : vector<4x256xf32>
    %175 = tpu.matmul %173, %174, %cst_150 {dimension_numbers = #tpu.dot_dimension_numbers<[1], [0], [0], [1], [0, 0, 1, 1], [], []>} : vector<4x4xbf16>, vector<4x256xbf16>, vector<4x256xf32> -> vector<4x256xf32>
    %176 = arith.addf %166, %175 : vector<4x256xf32>
    %c0_151 = arith.constant 0 : index
    %c0_152 = arith.constant 0 : index
    %c1_153 = arith.constant 1 : index
    %177 = vector.load %arg2[%c0_151, %c0_152, %c1_153] : memref<1x4x290xf32, #tpu.memory_space<vmem>>, vector<1x4x256xf32>
    %178 = vector.shape_cast %177 : vector<1x4x256xf32> to vector<4x256xf32>
    %c1_154 = arith.constant 1 : index
    %c0_155 = arith.constant 0 : index
    %c0_156 = arith.constant 0 : index
    %179 = vector.load %arg7[%c1_154, %c0_155, %c0_156] : memref<9x4x4xbf16, #tpu.memory_space<vmem>>, vector<1x4x4xbf16>
    %180 = vector.shape_cast %179 : vector<1x4x4xbf16> to vector<4x4xbf16>
    %181 = arith.truncf %178 : vector<4x256xf32> to vector<4x256xbf16>
    %cst_157 = arith.constant dense<0.000000e+00> : vector<4x256xf32>
    %182 = tpu.matmul %180, %181, %cst_157 {dimension_numbers = #tpu.dot_dimension_numbers<[1], [0], [0], [1], [0, 0, 1, 1], [], []>} : vector<4x4xbf16>, vector<4x256xbf16>, vector<4x256xf32> -> vector<4x256xf32>
    %183 = arith.addf %176, %182 : vector<4x256xf32>
    %c0_158 = arith.constant 0 : index
    %c0_159 = arith.constant 0 : index
    %c2_160 = arith.constant 2 : index
    %184 = vector.load %arg2[%c0_158, %c0_159, %c2_160] : memref<1x4x290xf32, #tpu.memory_space<vmem>>, vector<1x4x256xf32>
    %185 = vector.shape_cast %184 : vector<1x4x256xf32> to vector<4x256xf32>
    %c2_161 = arith.constant 2 : index
    %c0_162 = arith.constant 0 : index
    %186 = vector.load %arg3[%c2_161, %c0_162] : memref<3x256xf32, #tpu.memory_space<vmem>>, vector<1x256xf32>
    %187 = vector.broadcast %186 : vector<1x256xf32> to vector<4x256xf32>
    %188 = arith.mulf %185, %187 : vector<4x256xf32>
    %c2_163 = arith.constant 2 : index
    %c0_164 = arith.constant 0 : index
    %c0_165 = arith.constant 0 : index
    %189 = vector.load %arg7[%c2_163, %c0_164, %c0_165] : memref<9x4x4xbf16, #tpu.memory_space<vmem>>, vector<1x4x4xbf16>
    %190 = vector.shape_cast %189 : vector<1x4x4xbf16> to vector<4x4xbf16>
    %191 = arith.truncf %188 : vector<4x256xf32> to vector<4x256xbf16>
    %cst_166 = arith.constant dense<0.000000e+00> : vector<4x256xf32>
    %192 = tpu.matmul %190, %191, %cst_166 {dimension_numbers = #tpu.dot_dimension_numbers<[1], [0], [0], [1], [0, 0, 1, 1], [], []>} : vector<4x4xbf16>, vector<4x256xbf16>, vector<4x256xf32> -> vector<4x256xf32>
    %193 = arith.addf %183, %192 : vector<4x256xf32>
    %c0_167 = arith.constant 0 : index
    %c0_168 = arith.constant 0 : index
    %c16_169 = arith.constant 16 : index
    %194 = vector.load %arg2[%c0_167, %c0_168, %c16_169] : memref<1x4x290xf32, #tpu.memory_space<vmem>>, vector<1x4x256xf32>
    %195 = vector.shape_cast %194 : vector<1x4x256xf32> to vector<4x256xf32>
    %c0_170 = arith.constant 0 : index
    %c0_171 = arith.constant 0 : index
    %196 = vector.load %arg3[%c0_170, %c0_171] : memref<3x256xf32, #tpu.memory_space<vmem>>, vector<1x256xf32>
    %197 = vector.broadcast %196 : vector<1x256xf32> to vector<4x256xf32>
    %198 = arith.mulf %195, %197 : vector<4x256xf32>
    %c3_172 = arith.constant 3 : index
    %c0_173 = arith.constant 0 : index
    %c0_174 = arith.constant 0 : index
    %199 = vector.load %arg7[%c3_172, %c0_173, %c0_174] : memref<9x4x4xbf16, #tpu.memory_space<vmem>>, vector<1x4x4xbf16>
    %200 = vector.shape_cast %199 : vector<1x4x4xbf16> to vector<4x4xbf16>
    %201 = arith.truncf %198 : vector<4x256xf32> to vector<4x256xbf16>
    %cst_175 = arith.constant dense<0.000000e+00> : vector<4x256xf32>
    %202 = tpu.matmul %200, %201, %cst_175 {dimension_numbers = #tpu.dot_dimension_numbers<[1], [0], [0], [1], [0, 0, 1, 1], [], []>} : vector<4x4xbf16>, vector<4x256xbf16>, vector<4x256xf32> -> vector<4x256xf32>
    %203 = arith.addf %193, %202 : vector<4x256xf32>
    %c0_176 = arith.constant 0 : index
    %c0_177 = arith.constant 0 : index
    %c17_178 = arith.constant 17 : index
    %204 = vector.load %arg2[%c0_176, %c0_177, %c17_178] : memref<1x4x290xf32, #tpu.memory_space<vmem>>, vector<1x4x256xf32>
    %205 = vector.shape_cast %204 : vector<1x4x256xf32> to vector<4x256xf32>
    %c4_179 = arith.constant 4 : index
    %c0_180 = arith.constant 0 : index
    %c0_181 = arith.constant 0 : index
    %206 = vector.load %arg7[%c4_179, %c0_180, %c0_181] : memref<9x4x4xbf16, #tpu.memory_space<vmem>>, vector<1x4x4xbf16>
    %207 = vector.shape_cast %206 : vector<1x4x4xbf16> to vector<4x4xbf16>
    %208 = arith.truncf %205 : vector<4x256xf32> to vector<4x256xbf16>
    %cst_182 = arith.constant dense<0.000000e+00> : vector<4x256xf32>
    %209 = tpu.matmul %207, %208, %cst_182 {dimension_numbers = #tpu.dot_dimension_numbers<[1], [0], [0], [1], [0, 0, 1, 1], [], []>} : vector<4x4xbf16>, vector<4x256xbf16>, vector<4x256xf32> -> vector<4x256xf32>
    %210 = arith.addf %203, %209 : vector<4x256xf32>
    %c0_183 = arith.constant 0 : index
    %c0_184 = arith.constant 0 : index
    %c18_185 = arith.constant 18 : index
    %211 = vector.load %arg2[%c0_183, %c0_184, %c18_185] : memref<1x4x290xf32, #tpu.memory_space<vmem>>, vector<1x4x256xf32>
    %212 = vector.shape_cast %211 : vector<1x4x256xf32> to vector<4x256xf32>
    %c2_186 = arith.constant 2 : index
    %c0_187 = arith.constant 0 : index
    %213 = vector.load %arg3[%c2_186, %c0_187] : memref<3x256xf32, #tpu.memory_space<vmem>>, vector<1x256xf32>
    %214 = vector.broadcast %213 : vector<1x256xf32> to vector<4x256xf32>
    %215 = arith.mulf %212, %214 : vector<4x256xf32>
    %c5_188 = arith.constant 5 : index
    %c0_189 = arith.constant 0 : index
    %c0_190 = arith.constant 0 : index
    %216 = vector.load %arg7[%c5_188, %c0_189, %c0_190] : memref<9x4x4xbf16, #tpu.memory_space<vmem>>, vector<1x4x4xbf16>
    %217 = vector.shape_cast %216 : vector<1x4x4xbf16> to vector<4x4xbf16>
    %218 = arith.truncf %215 : vector<4x256xf32> to vector<4x256xbf16>
    %cst_191 = arith.constant dense<0.000000e+00> : vector<4x256xf32>
    %219 = tpu.matmul %217, %218, %cst_191 {dimension_numbers = #tpu.dot_dimension_numbers<[1], [0], [0], [1], [0, 0, 1, 1], [], []>} : vector<4x4xbf16>, vector<4x256xbf16>, vector<4x256xf32> -> vector<4x256xf32>
    %220 = arith.addf %210, %219 : vector<4x256xf32>
    %c0_192 = arith.constant 0 : index
    %c0_193 = arith.constant 0 : index
    %c32_194 = arith.constant 32 : index
    %221 = vector.load %arg2[%c0_192, %c0_193, %c32_194] : memref<1x4x290xf32, #tpu.memory_space<vmem>>, vector<1x4x256xf32>
    %222 = vector.shape_cast %221 : vector<1x4x256xf32> to vector<4x256xf32>
    %c0_195 = arith.constant 0 : index
    %c0_196 = arith.constant 0 : index
    %223 = vector.load %arg3[%c0_195, %c0_196] : memref<3x256xf32, #tpu.memory_space<vmem>>, vector<1x256xf32>
    %224 = vector.broadcast %223 : vector<1x256xf32> to vector<4x256xf32>
    %225 = arith.mulf %222, %224 : vector<4x256xf32>
    %c6_197 = arith.constant 6 : index
    %c0_198 = arith.constant 0 : index
    %c0_199 = arith.constant 0 : index
    %226 = vector.load %arg7[%c6_197, %c0_198, %c0_199] : memref<9x4x4xbf16, #tpu.memory_space<vmem>>, vector<1x4x4xbf16>
    %227 = vector.shape_cast %226 : vector<1x4x4xbf16> to vector<4x4xbf16>
    %228 = arith.truncf %225 : vector<4x256xf32> to vector<4x256xbf16>
    %cst_200 = arith.constant dense<0.000000e+00> : vector<4x256xf32>
    %229 = tpu.matmul %227, %228, %cst_200 {dimension_numbers = #tpu.dot_dimension_numbers<[1], [0], [0], [1], [0, 0, 1, 1], [], []>} : vector<4x4xbf16>, vector<4x256xbf16>, vector<4x256xf32> -> vector<4x256xf32>
    %230 = arith.addf %220, %229 : vector<4x256xf32>
    %c0_201 = arith.constant 0 : index
    %c0_202 = arith.constant 0 : index
    %c33_203 = arith.constant 33 : index
    %231 = vector.load %arg2[%c0_201, %c0_202, %c33_203] : memref<1x4x290xf32, #tpu.memory_space<vmem>>, vector<1x4x256xf32>
    %232 = vector.shape_cast %231 : vector<1x4x256xf32> to vector<4x256xf32>
    %c7_204 = arith.constant 7 : index
    %c0_205 = arith.constant 0 : index
    %c0_206 = arith.constant 0 : index
    %233 = vector.load %arg7[%c7_204, %c0_205, %c0_206] : memref<9x4x4xbf16, #tpu.memory_space<vmem>>, vector<1x4x4xbf16>
    %234 = vector.shape_cast %233 : vector<1x4x4xbf16> to vector<4x4xbf16>
    %235 = arith.truncf %232 : vector<4x256xf32> to vector<4x256xbf16>
    %cst_207 = arith.constant dense<0.000000e+00> : vector<4x256xf32>
    %236 = tpu.matmul %234, %235, %cst_207 {dimension_numbers = #tpu.dot_dimension_numbers<[1], [0], [0], [1], [0, 0, 1, 1], [], []>} : vector<4x4xbf16>, vector<4x256xbf16>, vector<4x256xf32> -> vector<4x256xf32>
    %237 = arith.addf %230, %236 : vector<4x256xf32>
    %c0_208 = arith.constant 0 : index
    %c0_209 = arith.constant 0 : index
    %c34_210 = arith.constant 34 : index
    %238 = vector.load %arg2[%c0_208, %c0_209, %c34_210] : memref<1x4x290xf32, #tpu.memory_space<vmem>>, vector<1x4x256xf32>
    %239 = vector.shape_cast %238 : vector<1x4x256xf32> to vector<4x256xf32>
    %c2_211 = arith.constant 2 : index
    %c0_212 = arith.constant 0 : index
    %240 = vector.load %arg3[%c2_211, %c0_212] : memref<3x256xf32, #tpu.memory_space<vmem>>, vector<1x256xf32>
    %241 = vector.broadcast %240 : vector<1x256xf32> to vector<4x256xf32>
    %242 = arith.mulf %239, %241 : vector<4x256xf32>
    %c8_213 = arith.constant 8 : index
    %c0_214 = arith.constant 0 : index
    %c0_215 = arith.constant 0 : index
    %243 = vector.load %arg7[%c8_213, %c0_214, %c0_215] : memref<9x4x4xbf16, #tpu.memory_space<vmem>>, vector<1x4x4xbf16>
    %244 = vector.shape_cast %243 : vector<1x4x4xbf16> to vector<4x4xbf16>
    %245 = arith.truncf %242 : vector<4x256xf32> to vector<4x256xbf16>
    %cst_216 = arith.constant dense<0.000000e+00> : vector<4x256xf32>
    %246 = tpu.matmul %244, %245, %cst_216 {dimension_numbers = #tpu.dot_dimension_numbers<[1], [0], [0], [1], [0, 0, 1, 1], [], []>} : vector<4x4xbf16>, vector<4x256xbf16>, vector<4x256xf32> -> vector<4x256xf32>
    %247 = arith.addf %237, %246 : vector<4x256xf32>
    %c0_217 = arith.constant 0 : index
    %c0_218 = arith.constant 0 : index
    %248 = vector.load %arg8[%c0_217, %c0_218] : memref<4x1xf32, #tpu.memory_space<vmem>>, vector<4x1xf32>
    %249 = vector.broadcast %248 : vector<4x1xf32> to vector<4x256xf32>
    %250 = arith.addf %247, %249 : vector<4x256xf32>
    %cst_219 = arith.constant 0.000000e+00 : f32
    %251 = vector.broadcast %cst_219 : f32 to vector<4x256xf32>
    %252 = arith.maximumf %250, %251 : vector<4x256xf32>
    %c0_220 = arith.constant 0 : index
    %c0_221 = arith.constant 0 : index
    %c17_222 = arith.constant 17 : index
    %253 = vector.load %arg2[%c0_220, %c0_221, %c17_222] : memref<1x4x290xf32, #tpu.memory_space<vmem>>, vector<1x4x256xf32>
    %254 = vector.shape_cast %253 : vector<1x4x256xf32> to vector<4x256xf32>
    %c0_223 = arith.constant 0 : index
    %c0_224 = arith.constant 0 : index
    %255 = vector.load %arg9[%c0_223, %c0_224] : memref<4x4xbf16, #tpu.memory_space<vmem>>, vector<4x4xbf16>
    %256 = arith.truncf %92 : vector<4x256xf32> to vector<4x256xbf16>
    %cst_225 = arith.constant dense<0.000000e+00> : vector<4x256xf32>
    %257 = tpu.matmul %255, %256, %cst_225 {dimension_numbers = #tpu.dot_dimension_numbers<[1], [0], [0], [1], [0, 0, 1, 1], [], []>} : vector<4x4xbf16>, vector<4x256xbf16>, vector<4x256xf32> -> vector<4x256xf32>
    %c0_226 = arith.constant 0 : index
    %c0_227 = arith.constant 0 : index
    %258 = vector.load %arg10[%c0_226, %c0_227] : memref<4x4xbf16, #tpu.memory_space<vmem>>, vector<4x4xbf16>
    %259 = arith.truncf %254 : vector<4x256xf32> to vector<4x256xbf16>
    %cst_228 = arith.constant dense<0.000000e+00> : vector<4x256xf32>
    %260 = tpu.matmul %258, %259, %cst_228 {dimension_numbers = #tpu.dot_dimension_numbers<[1], [0], [0], [1], [0, 0, 1, 1], [], []>} : vector<4x4xbf16>, vector<4x256xbf16>, vector<4x256xf32> -> vector<4x256xf32>
    %261 = arith.addf %257, %260 : vector<4x256xf32>
    %c0_229 = arith.constant 0 : index
    %c0_230 = arith.constant 0 : index
    %262 = vector.load %arg11[%c0_229, %c0_230] : memref<4x1xf32, #tpu.memory_space<vmem>>, vector<4x1xf32>
    %263 = vector.broadcast %262 : vector<4x1xf32> to vector<4x256xf32>
    %264 = arith.addf %261, %263 : vector<4x256xf32>
    %c0_231 = arith.constant 0 : index
    %c17_232 = arith.constant 17 : index
    %265 = vector.load %arg16[%c0_231, %c17_232] : memref<4x290xf32, #tpu.memory_space<vmem>>, vector<4x256xf32>
    tpu.vector_store %arg16[%c0_231, %c17_232], %252 {strides = array<i32>} : memref<4x290xf32, #tpu.memory_space<vmem>>, vector<4x256xf32>,
    %cst_233 = arith.constant 0.000000e+00 : f32
    %266 = vector.broadcast %cst_233 : f32 to vector<4x256xf32>
    %c0_234 = arith.constant 0 : index
    %c0_235 = arith.constant 0 : index
    %267 = vector.load %arg16[%c0_234, %c0_235] : memref<4x290xf32, #tpu.memory_space<vmem>>, vector<4x256xf32>
    %c0_236 = arith.constant 0 : index
    %c0_237 = arith.constant 0 : index
    %268 = vector.load %arg3[%c0_236, %c0_237] : memref<3x256xf32, #tpu.memory_space<vmem>>, vector<1x256xf32>
    %269 = vector.broadcast %268 : vector<1x256xf32> to vector<4x256xf32>
    %270 = arith.mulf %267, %269 : vector<4x256xf32>
    %c0_238 = arith.constant 0 : index
    %c0_239 = arith.constant 0 : index
    %c0_240 = arith.constant 0 : index
    %271 = vector.load %arg12[%c0_238, %c0_239, %c0_240] : memref<9x4x4xbf16, #tpu.memory_space<vmem>>, vector<1x4x4xbf16>
    %272 = vector.shape_cast %271 : vector<1x4x4xbf16> to vector<4x4xbf16>
    %273 = arith.truncf %270 : vector<4x256xf32> to vector<4x256xbf16>
    %cst_241 = arith.constant dense<0.000000e+00> : vector<4x256xf32>
    %274 = tpu.matmul %272, %273, %cst_241 {dimension_numbers = #tpu.dot_dimension_numbers<[1], [0], [0], [1], [0, 0, 1, 1], [], []>} : vector<4x4xbf16>, vector<4x256xbf16>, vector<4x256xf32> -> vector<4x256xf32>
    %275 = arith.addf %266, %274 : vector<4x256xf32>
    %c0_242 = arith.constant 0 : index
    %c1_243 = arith.constant 1 : index
    %276 = vector.load %arg16[%c0_242, %c1_243] : memref<4x290xf32, #tpu.memory_space<vmem>>, vector<4x256xf32>
    %c1_244 = arith.constant 1 : index
    %c0_245 = arith.constant 0 : index
    %c0_246 = arith.constant 0 : index
    %277 = vector.load %arg12[%c1_244, %c0_245, %c0_246] : memref<9x4x4xbf16, #tpu.memory_space<vmem>>, vector<1x4x4xbf16>
    %278 = vector.shape_cast %277 : vector<1x4x4xbf16> to vector<4x4xbf16>
    %279 = arith.truncf %276 : vector<4x256xf32> to vector<4x256xbf16>
    %cst_247 = arith.constant dense<0.000000e+00> : vector<4x256xf32>
    %280 = tpu.matmul %278, %279, %cst_247 {dimension_numbers = #tpu.dot_dimension_numbers<[1], [0], [0], [1], [0, 0, 1, 1], [], []>} : vector<4x4xbf16>, vector<4x256xbf16>, vector<4x256xf32> -> vector<4x256xf32>
    %281 = arith.addf %275, %280 : vector<4x256xf32>
    %c0_248 = arith.constant 0 : index
    %c2_249 = arith.constant 2 : index
    %282 = vector.load %arg16[%c0_248, %c2_249] : memref<4x290xf32, #tpu.memory_space<vmem>>, vector<4x256xf32>
    %c2_250 = arith.constant 2 : index
    %c0_251 = arith.constant 0 : index
    %283 = vector.load %arg3[%c2_250, %c0_251] : memref<3x256xf32, #tpu.memory_space<vmem>>, vector<1x256xf32>
    %284 = vector.broadcast %283 : vector<1x256xf32> to vector<4x256xf32>
    %285 = arith.mulf %282, %284 : vector<4x256xf32>
    %c2_252 = arith.constant 2 : index
    %c0_253 = arith.constant 0 : index
    %c0_254 = arith.constant 0 : index
    %286 = vector.load %arg12[%c2_252, %c0_253, %c0_254] : memref<9x4x4xbf16, #tpu.memory_space<vmem>>, vector<1x4x4xbf16>
    %287 = vector.shape_cast %286 : vector<1x4x4xbf16> to vector<4x4xbf16>
    %288 = arith.truncf %285 : vector<4x256xf32> to vector<4x256xbf16>
    %cst_255 = arith.constant dense<0.000000e+00> : vector<4x256xf32>
    %289 = tpu.matmul %287, %288, %cst_255 {dimension_numbers = #tpu.dot_dimension_numbers<[1], [0], [0], [1], [0, 0, 1, 1], [], []>} : vector<4x4xbf16>, vector<4x256xbf16>, vector<4x256xf32> -> vector<4x256xf32>
    %290 = arith.addf %281, %289 : vector<4x256xf32>
    %c0_256 = arith.constant 0 : index
    %c16_257 = arith.constant 16 : index
    %291 = vector.load %arg16[%c0_256, %c16_257] : memref<4x290xf32, #tpu.memory_space<vmem>>, vector<4x256xf32>
    %c0_258 = arith.constant 0 : index
    %c0_259 = arith.constant 0 : index
    %292 = vector.load %arg3[%c0_258, %c0_259] : memref<3x256xf32, #tpu.memory_space<vmem>>, vector<1x256xf32>
    %293 = vector.broadcast %292 : vector<1x256xf32> to vector<4x256xf32>
    %294 = arith.mulf %291, %293 : vector<4x256xf32>
    %c3_260 = arith.constant 3 : index
    %c0_261 = arith.constant 0 : index
    %c0_262 = arith.constant 0 : index
    %295 = vector.load %arg12[%c3_260, %c0_261, %c0_262] : memref<9x4x4xbf16, #tpu.memory_space<vmem>>, vector<1x4x4xbf16>
    %296 = vector.shape_cast %295 : vector<1x4x4xbf16> to vector<4x4xbf16>
    %297 = arith.truncf %294 : vector<4x256xf32> to vector<4x256xbf16>
    %cst_263 = arith.constant dense<0.000000e+00> : vector<4x256xf32>
    %298 = tpu.matmul %296, %297, %cst_263 {dimension_numbers = #tpu.dot_dimension_numbers<[1], [0], [0], [1], [0, 0, 1, 1], [], []>} : vector<4x4xbf16>, vector<4x256xbf16>, vector<4x256xf32> -> vector<4x256xf32>
    %299 = arith.addf %290, %298 : vector<4x256xf32>
    %c0_264 = arith.constant 0 : index
    %c17_265 = arith.constant 17 : index
    %300 = vector.load %arg16[%c0_264, %c17_265] : memref<4x290xf32, #tpu.memory_space<vmem>>, vector<4x256xf32>
    %c4_266 = arith.constant 4 : index
    %c0_267 = arith.constant 0 : index
    %c0_268 = arith.constant 0 : index
    %301 = vector.load %arg12[%c4_266, %c0_267, %c0_268] : memref<9x4x4xbf16, #tpu.memory_space<vmem>>, vector<1x4x4xbf16>
    %302 = vector.shape_cast %301 : vector<1x4x4xbf16> to vector<4x4xbf16>
    %303 = arith.truncf %300 : vector<4x256xf32> to vector<4x256xbf16>
    %cst_269 = arith.constant dense<0.000000e+00> : vector<4x256xf32>
    %304 = tpu.matmul %302, %303, %cst_269 {dimension_numbers = #tpu.dot_dimension_numbers<[1], [0], [0], [1], [0, 0, 1, 1], [], []>} : vector<4x4xbf16>, vector<4x256xbf16>, vector<4x256xf32> -> vector<4x256xf32>
    %305 = arith.addf %299, %304 : vector<4x256xf32>
    %c0_270 = arith.constant 0 : index
    %c18_271 = arith.constant 18 : index
    %306 = vector.load %arg16[%c0_270, %c18_271] : memref<4x290xf32, #tpu.memory_space<vmem>>, vector<4x256xf32>
    %c2_272 = arith.constant 2 : index
    %c0_273 = arith.constant 0 : index
    %307 = vector.load %arg3[%c2_272, %c0_273] : memref<3x256xf32, #tpu.memory_space<vmem>>, vector<1x256xf32>
    %308 = vector.broadcast %307 : vector<1x256xf32> to vector<4x256xf32>
    %309 = arith.mulf %306, %308 : vector<4x256xf32>
    %c5_274 = arith.constant 5 : index
    %c0_275 = arith.constant 0 : index
    %c0_276 = arith.constant 0 : index
    %310 = vector.load %arg12[%c5_274, %c0_275, %c0_276] : memref<9x4x4xbf16, #tpu.memory_space<vmem>>, vector<1x4x4xbf16>
    %311 = vector.shape_cast %310 : vector<1x4x4xbf16> to vector<4x4xbf16>
    %312 = arith.truncf %309 : vector<4x256xf32> to vector<4x256xbf16>
    %cst_277 = arith.constant dense<0.000000e+00> : vector<4x256xf32>
    %313 = tpu.matmul %311, %312, %cst_277 {dimension_numbers = #tpu.dot_dimension_numbers<[1], [0], [0], [1], [0, 0, 1, 1], [], []>} : vector<4x4xbf16>, vector<4x256xbf16>, vector<4x256xf32> -> vector<4x256xf32>
    %314 = arith.addf %305, %313 : vector<4x256xf32>
    %c0_278 = arith.constant 0 : index
    %c32_279 = arith.constant 32 : index
    %315 = vector.load %arg16[%c0_278, %c32_279] : memref<4x290xf32, #tpu.memory_space<vmem>>, vector<4x256xf32>
    %c0_280 = arith.constant 0 : index
    %c0_281 = arith.constant 0 : index
    %316 = vector.load %arg3[%c0_280, %c0_281] : memref<3x256xf32, #tpu.memory_space<vmem>>, vector<1x256xf32>
    %317 = vector.broadcast %316 : vector<1x256xf32> to vector<4x256xf32>
    %318 = arith.mulf %315, %317 : vector<4x256xf32>
    %c6_282 = arith.constant 6 : index
    %c0_283 = arith.constant 0 : index
    %c0_284 = arith.constant 0 : index
    %319 = vector.load %arg12[%c6_282, %c0_283, %c0_284] : memref<9x4x4xbf16, #tpu.memory_space<vmem>>, vector<1x4x4xbf16>
    %320 = vector.shape_cast %319 : vector<1x4x4xbf16> to vector<4x4xbf16>
    %321 = arith.truncf %318 : vector<4x256xf32> to vector<4x256xbf16>
    %cst_285 = arith.constant dense<0.000000e+00> : vector<4x256xf32>
    %322 = tpu.matmul %320, %321, %cst_285 {dimension_numbers = #tpu.dot_dimension_numbers<[1], [0], [0], [1], [0, 0, 1, 1], [], []>} : vector<4x4xbf16>, vector<4x256xbf16>, vector<4x256xf32> -> vector<4x256xf32>
    %323 = arith.addf %314, %322 : vector<4x256xf32>
    %c0_286 = arith.constant 0 : index
    %c33_287 = arith.constant 33 : index
    %324 = vector.load %arg16[%c0_286, %c33_287] : memref<4x290xf32, #tpu.memory_space<vmem>>, vector<4x256xf32>
    %c7_288 = arith.constant 7 : index
    %c0_289 = arith.constant 0 : index
    %c0_290 = arith.constant 0 : index
    %325 = vector.load %arg12[%c7_288, %c0_289, %c0_290] : memref<9x4x4xbf16, #tpu.memory_space<vmem>>, vector<1x4x4xbf16>
    %326 = vector.shape_cast %325 : vector<1x4x4xbf16> to vector<4x4xbf16>
    %327 = arith.truncf %324 : vector<4x256xf32> to vector<4x256xbf16>
    %cst_291 = arith.constant dense<0.000000e+00> : vector<4x256xf32>
    %328 = tpu.matmul %326, %327, %cst_291 {dimension_numbers = #tpu.dot_dimension_numbers<[1], [0], [0], [1], [0, 0, 1, 1], [], []>} : vector<4x4xbf16>, vector<4x256xbf16>, vector<4x256xf32> -> vector<4x256xf32>
    %329 = arith.addf %323, %328 : vector<4x256xf32>
    %c0_292 = arith.constant 0 : index
    %c34_293 = arith.constant 34 : index
    %330 = vector.load %arg16[%c0_292, %c34_293] : memref<4x290xf32, #tpu.memory_space<vmem>>, vector<4x256xf32>
    %c2_294 = arith.constant 2 : index
    %c0_295 = arith.constant 0 : index
    %331 = vector.load %arg3[%c2_294, %c0_295] : memref<3x256xf32, #tpu.memory_space<vmem>>, vector<1x256xf32>
    %332 = vector.broadcast %331 : vector<1x256xf32> to vector<4x256xf32>
    %333 = arith.mulf %330, %332 : vector<4x256xf32>
    %c8_296 = arith.constant 8 : index
    %c0_297 = arith.constant 0 : index
    %c0_298 = arith.constant 0 : index
    %334 = vector.load %arg12[%c8_296, %c0_297, %c0_298] : memref<9x4x4xbf16, #tpu.memory_space<vmem>>, vector<1x4x4xbf16>
    %335 = vector.shape_cast %334 : vector<1x4x4xbf16> to vector<4x4xbf16>
    %336 = arith.truncf %333 : vector<4x256xf32> to vector<4x256xbf16>
    %cst_299 = arith.constant dense<0.000000e+00> : vector<4x256xf32>
    %337 = tpu.matmul %335, %336, %cst_299 {dimension_numbers = #tpu.dot_dimension_numbers<[1], [0], [0], [1], [0, 0, 1, 1], [], []>} : vector<4x4xbf16>, vector<4x256xbf16>, vector<4x256xf32> -> vector<4x256xf32>
    %338 = arith.addf %329, %337 : vector<4x256xf32>
    %c0_300 = arith.constant 0 : index
    %c0_301 = arith.constant 0 : index
    %339 = vector.load %arg13[%c0_300, %c0_301] : memref<4x1xf32, #tpu.memory_space<vmem>>, vector<4x1xf32>
    %340 = vector.broadcast %339 : vector<4x1xf32> to vector<4x256xf32>
    %341 = arith.addf %338, %340 : vector<4x256xf32>
    %342 = arith.addf %341, %264 : vector<4x256xf32>
    %cst_302 = arith.constant 0.000000e+00 : f32
    %343 = vector.broadcast %cst_302 : f32 to vector<4x256xf32>
    %344 = arith.maximumf %342, %343 : vector<4x256xf32>
    %c0_303 = arith.constant 0 : index
    %c0_304 = arith.constant 0 : index
    %c0_305 = arith.constant 0 : index
    %345 = vector.load %arg14[%c0_303, %c0_304, %c0_305] : memref<1x4x256xf32, #tpu.memory_space<vmem>>, vector<1x4x256xf32>
    %346 = vector.shape_cast %345 : vector<1x4x256xf32> to vector<4x256xf32>
    %347 = vector.shape_cast %344 : vector<4x256xf32> to vector<1x4x256xf32>
    tpu.vector_store %arg14[%c0_303, %c0_304, %c0_305], %347 {strides = array<i32>} : memref<1x4x256xf32, #tpu.memory_space<vmem>>, vector<1x4x256xf32>,
    return
  }
  func.func @transform_0(%arg0: i32) -> (i32, i32, i32) {
    %c0_i32 = arith.constant 0 : i32
    %c0_i32_0 = arith.constant 0 : i32
    %c0_i32_1 = arith.constant 0 : i32
    return %arg0, %c0_i32, %c0_i32_0 : i32, i32, i32
  }
  func.func @transform_1(%arg0: i32) -> (i32, i32, i32) {
    %c0_i32 = arith.constant 0 : i32
    %c0_i32_0 = arith.constant 0 : i32
    %c0_i32_1 = arith.constant 0 : i32
    return %arg0, %c0_i32, %c0_i32_0 : i32, i32, i32
  }
  func.func @transform_2(%arg0: i32) -> (i32, i32) {
    %c0_i32 = arith.constant 0 : i32
    %c0_i32_0 = arith.constant 0 : i32
    %c0_i32_1 = arith.constant 0 : i32
    return %c0_i32, %c0_i32_0 : i32, i32
  }
  func.func @transform_3(%arg0: i32) -> (i32, i32, i32) {
    %c0_i32 = arith.constant 0 : i32
    %c0_i32_0 = arith.constant 0 : i32
    %c0_i32_1 = arith.constant 0 : i32
    %c0_i32_2 = arith.constant 0 : i32
    return %c0_i32, %c0_i32_0, %c0_i32_1 : i32, i32, i32
  }
  func.func @transform_4(%arg0: i32) -> (i32, i32) {
    %c0_i32 = arith.constant 0 : i32
    %c0_i32_0 = arith.constant 0 : i32
    %c0_i32_1 = arith.constant 0 : i32
    return %c0_i32, %c0_i32_0 : i32, i32
  }
  func.func @transform_5(%arg0: i32) -> (i32, i32, i32) {
    %c0_i32 = arith.constant 0 : i32
    %c0_i32_0 = arith.constant 0 : i32
    %c0_i32_1 = arith.constant 0 : i32
    %c0_i32_2 = arith.constant 0 : i32
    return %c0_i32, %c0_i32_0, %c0_i32_1 : i32, i32, i32
  }
  func.func @transform_6(%arg0: i32) -> (i32, i32, i32) {
    %c0_i32 = arith.constant 0 : i32
    %c0_i32_0 = arith.constant 0 : i32
    %c0_i32_1 = arith.constant 0 : i32
    %c0_i32_2 = arith.constant 0 : i32
    return %c0_i32, %c0_i32_0, %c0_i32_1 : i32, i32, i32
  }
  func.func @transform_7(%arg0: i32) -> (i32, i32) {
    %c0_i32 = arith.constant 0 : i32
    %c0_i32_0 = arith.constant 0 : i32
    %c0_i32_1 = arith.constant 0 : i32
    return %c0_i32, %c0_i32_0 : i32, i32
  }
  func.func @transform_8(%arg0: i32) -> (i32, i32) {
    %c0_i32 = arith.constant 0 : i32
    %c0_i32_0 = arith.constant 0 : i32
    %c0_i32_1 = arith.constant 0 : i32
    return %c0_i32, %c0_i32_0 : i32, i32
  }
  func.func @transform_9(%arg0: i32) -> (i32, i32) {
    %c0_i32 = arith.constant 0 : i32
    %c0_i32_0 = arith.constant 0 : i32
    %c0_i32_1 = arith.constant 0 : i32
    return %c0_i32, %c0_i32_0 : i32, i32
  }
  func.func @transform_10(%arg0: i32) -> (i32, i32) {
    %c0_i32 = arith.constant 0 : i32
    %c0_i32_0 = arith.constant 0 : i32
    %c0_i32_1 = arith.constant 0 : i32
    return %c0_i32, %c0_i32_0 : i32, i32
  }
  func.func @transform_11(%arg0: i32) -> (i32, i32, i32) {
    %c0_i32 = arith.constant 0 : i32
    %c0_i32_0 = arith.constant 0 : i32
    %c0_i32_1 = arith.constant 0 : i32
    %c0_i32_2 = arith.constant 0 : i32
    return %c0_i32, %c0_i32_0, %c0_i32_1 : i32, i32, i32
  }
  func.func @transform_12(%arg0: i32) -> (i32, i32) {
    %c0_i32 = arith.constant 0 : i32
    %c0_i32_0 = arith.constant 0 : i32
    %c0_i32_1 = arith.constant 0 : i32
    return %c0_i32, %c0_i32_0 : i32, i32
  }
  func.func @transform_13(%arg0: i32) -> (i32, i32, i32) {
    %c0_i32 = arith.constant 0 : i32
    %c0_i32_0 = arith.constant 0 : i32
    %c0_i32_1 = arith.constant 0 : i32
    return %arg0, %c0_i32, %c0_i32_0 : i32, i32, i32
  }
}

</mosaic_0001>

<bundles_post_ra>
// kernel: res_decoder_block_forward.3
= control target key start
LH: loop header
LB: loop body
LE: loop exit
PB: predicated region body
PF: predicated region fallthrough
CT: control target
= control target key end

     0   :  { %s3025_s21 = smov 0   ;;  %s4106_s0 = inlined_call_operand.vmem [shape: f32[2,4,256], index: 0, kind: input, shape index: {}]   ;;  %s4107_s1 = inlined_call_operand.vmem [shape: f32[2,1,256], index: 1, kind: input, shape index: {}]   ;;  %s4108_s2 = inlined_call_operand.vmem [shape: bf16[4,4], index: 2, kind: input, shape index: {}]   ;;  %s4109_s3 = inlined_call_operand.vmem [shape: bf16[4,4], index: 3, kind: input, shape index: {}]   ;;  %s4110_s4 = inlined_call_operand.vmem [shape: bf16[4,4], index: 4, kind: input, shape index: {}]   ;;  %s4111_s5 = inlined_call_operand.vmem [shape: bf16[4,4], index: 5, kind: input, shape index: {}]   ;;  %s4112_s6 = inlined_call_operand.vmem [shape: f32[2,4,256], index: 6, kind: output, shape index: {}]  }
   0x1 LB: > { %s2326_s22 = sadd.s32 4294967295, %s2987_s21   ;;  %p2330_p0 = scmp.ge.s32.totalorder %s2987_s21, 1  ;;  %s2987_s21 = sphi %s3025_s21, %s16_s21  }
   0x2   : > { %p221_p1 = scmp.lt.s32.totalorder %s2987_s21, 3 }
   0x4   : > { %p222_p2 = pnand %p2330_p0, %p221_p1 }
   0x6   : > { %225 = sbr.rel (%p222_p2) target bundleno = 1823 (0x71f), region = 44 }
   0xd   : > { %p255_p3 = scmp.lt.s32.totalorder %s2326_s22, 1  ;;  %v354_v1 = vld [vmem:[%s4108_s2] sm:$0x3]  ;;  %vm404_vm0 = vcmask 1041408   ;;  %vm355_vm1 = vcmask 31744  }
   0xe   : > { %v569_v2 = vld [vmem:[%s4109_s3] sm:$0x3]  ;;  %2737 = vmatprep.subr.msk.bf16.mxu0 %vm404_vm0, %v354_v1  ;;  %v406_v3 = vsel %vm404_vm0, %v354_v1, 0 }
   0xf   : > { %s4316_s22 = smov (!%p255_p3, %s2326_s22), 1  ;;  %2738 = vmatprep.subr.msk.bf16.mxu1 %vm404_vm0, %v569_v2  ;;  %v571_v4 = vsel %vm404_vm0, %v569_v2, 0  ;;  %2602 = vmatpush3.bf16.msra.mxu0 %v406_v3  ;;  %v734_v7 = vld [vmem:[%s4110_s4] sm:$0x3] }
  0x10   : > { %s2419_s23 = sshll.u32 %s4316_s22, 3  ;;  %2636 = vmatpush3.bf16.msra.mxu1 %v571_v4  ;;  %2739 = vmatprep.subr.msk.bf16.mxu0 %vm404_vm0, %v734_v7  ;;  %v736_v13 = vsel %vm404_vm0, %v734_v7, 0  ;;  %s2333_s9 = sshll.u32 %s4316_s22, 1 }
  0x11   : > { %s259_s26 = scalar_lea.vmem %s4106_s0, %s2419_s23  ;;  %s263_s12 = scalar_lea.vmem %s4107_s1, %s2333_s9 }
  0x12   : > { %v270_v0 = vld [vmem:[%s259_s26] sm:$0xff]  ;;  %s268_s17 = scalar_lea.vmem %s4112_s6, %s2419_s23 }
  0x13   : > { %274 = vxpose.xlu0.b32.start.end [1/1] (short) %v270_v0, 128  ;;  %v272_v5 = vcombine.high %v270_v0, %v270_v0 }
  0x50   : > { %306 = vxpose.xlu0.b32.start.end [1/1] (short) %v272_v5, 128 }
  0x93   : > { %v3051_v6 = vpop.trf.xlu0 }
  0x94   : > { %4176 = vst [vmem:[#allocation2_spill] sm:$0xff] %v3051_v6 }
  0x97   : > { %v3057_v8 = vpop.trf.xlu0 }
  0x98   : > { %4177 = vst [vmem:[#allocation3_spill] sm:$0xff] %v3057_v8  ;;  %v3061_v9 = vpack.c.bf16 %v3057_v8, %v3051_v6 }
  0x9a   : > { %2603 = vmatprep.mubr.msk.bf16.mxu0 %vm355_vm1, %v3061_v9  ;;  %2637 = vmatprep.mubr.msk.bf16.mxu1 %vm355_vm1, %v3061_v9 }
  0x9b   : > { %v3067_v10 = vpop.trf.xlu0 }
  0x9c   : > { %4178 = vst [vmem:[#allocation4_spill] sm:$0xff] %v3067_v10 }
  0x9f   : > { %v3069_v11 = vpop.trf.xlu0 }
  0xa0   : > { %4179 = vst [vmem:[#allocation5_spill] sm:$0xff] %v3069_v11  ;;  %v3073_v12 = vpack.c.bf16 %v3069_v11, %v3067_v10 }
  0xa2   : > { %2604 = vmatmul.mubr.msk.bf16.vlgmr.msra.gmra.mrb[0].mxu0 %vm355_vm1, %v3073_v12  ;;  %2638 = vmatmul.mubr.msk.bf16.vlgmr.msra.gmra.mrb[0].mxu1 %vm355_vm1, %v3073_v12 }
  0xa3   : > { %v3080_v14 = vpop.trf.xlu0  ;;  %2670 = vmatpush3.bf16.msra.mxu0 %v736_v13 }
  0xa4   : > { %4180 = vst [vmem:[#allocation6_spill] sm:$0xff] %v3080_v14 }
  0xa7   : > { %v3082_v15 = vpop.trf.xlu0 }
  0xa8   : > { %4181 = vst [vmem:[#allocation7_spill] sm:$0xff] %v3082_v15  ;;  %v3086_v16 = vpack.c.bf16 %v3082_v15, %v3080_v14 }
  0xaa   : > { %2607 = vmatprep.mubr.msk.bf16.mxu0 %vm355_vm1, %v3086_v16  ;;  %2641 = vmatprep.mubr.msk.bf16.mxu1 %vm355_vm1, %v3086_v16 }
  0xab   : > { %v3092_v17 = vpop.trf.xlu0 }
  0xac   : > { %4182 = vst [vmem:[#allocation8_spill] sm:$0xff] %v3092_v17 }
  0xaf   : > { %v3094_v18 = vpop.trf.xlu0 }
  0xb0   : > { %4183 = vst [vmem:[#allocation9_spill] sm:$0xff] %v3094_v18  ;;  %v3098_v19 = vpack.c.bf16 %v3094_v18, %v3092_v17 }
  0xb2   : > { %2608 = vmatmul.mubr.msk.bf16.gmra.mrb[4].mxu0 %vm355_vm1, %v3098_v19  ;;  %2642 = vmatmul.mubr.msk.bf16.gmra.mrb[4].mxu1 %vm355_vm1, %v3098_v19 }
  0xb3   : > { %v3104_v20 = vpop.trf.xlu0 }
  0xb4   : > { %4184 = vst [vmem:[#allocation10_spill] sm:$0xff] %v3104_v20 }
  0xb7   : > { %v3106_v21 = vpop.trf.xlu0 }
  0xb8   : > { %4185 = vst [vmem:[#allocation11_spill] sm:$0xff] %v3106_v21  ;;  %v342_v22 = vpack.c.bf16 %v3106_v21, %v3104_v20 }
  0xba   : > { %2611 = vmatprep.mubr.msk.bf16.mxu0 %vm355_vm1, %v342_v22  ;;  %2645 = vmatprep.mubr.msk.bf16.mxu1 %vm355_vm1, %v342_v22 }
  0xbb   : > { %v3112_v23 = vpop.trf.xlu0 }
  0xbc   : > { %4186 = vst [vmem:[#allocation12_spill] sm:$0xff] %v3112_v23 }
  0xbf   : > { %v3114_v24 = vpop.trf.xlu0 }
  0xc0   : > { %4187 = vst [vmem:[#allocation13_spill] sm:$0xff] %v3114_v24  ;;  %v343_v25 = vpack.c.bf16 %v3114_v24, %v3112_v23 }
  0xc2   : > { %2612 = vmatmul.mubr.msk.bf16.gmra.mrb[8].mxu0 %vm355_vm1, %v343_v25  ;;  %2646 = vmatmul.mubr.msk.bf16.gmra.mrb[8].mxu1 %vm355_vm1, %v343_v25 }
  0xc3   : > { %v3120_v26 = vpop.trf.xlu0 }
  0xc4   : > { %4188 = vst [vmem:[#allocation14_spill] sm:$0xff] %v3120_v26 }
  0xc7   : > { %v3122_v27 = vpop.trf.xlu0 }
  0xc8   : > { %4189 = vst [vmem:[#allocation15_spill] sm:$0xff] %v3122_v27  ;;  %v344_v28 = vpack.c.bf16 %v3122_v27, %v3120_v26 }
  0xca   : > { %2615 = vmatprep.mubr.msk.bf16.mxu0 %vm355_vm1, %v344_v28  ;;  %2649 = vmatprep.mubr.msk.bf16.mxu1 %vm355_vm1, %v344_v28 }
  0xcb   : > { %v3128_v29 = vpop.trf.xlu0 }
  0xcc   : > { %4190 = vst [vmem:[#allocation16_spill] sm:$0xff] %v3128_v29 }
  0xcf   : > { %v3130_v30 = vpop.trf.xlu0 }
  0xd0   : > { %4191 = vst [vmem:[#allocation17_spill] sm:$0xff] %v3130_v30  ;;  %v345_v31 = vpack.c.bf16 %v3130_v30, %v3128_v29 }
  0xd2   : > { %2616 = vmatmul.mubr.msk.bf16.gmra.mrb[12].mxu0 %vm355_vm1, %v345_v31  ;;  %2650 = vmatmul.mubr.msk.bf16.gmra.mrb[12].mxu1 %vm355_vm1, %v345_v31 }
  0xd3   : > { %v3136_v32 = vpop.trf.xlu0 }
  0xd4   : > { %4192 = vst [vmem:[#allocation18_spill] sm:$0xff] %v3136_v32 }
  0xd7   : > { %v3138_v33 = vpop.trf.xlu0 }
  0xd8   : > { %4193 = vst [vmem:[#allocation19_spill] sm:$0xff] %v3138_v33  ;;  %v346_v34 = vpack.c.bf16 %v3138_v33, %v3136_v32 }
  0xda   : > { %2619 = vmatprep.mubr.msk.bf16.mxu0 %vm355_vm1, %v346_v34  ;;  %2653 = vmatprep.mubr.msk.bf16.mxu1 %vm355_vm1, %v346_v34 }
  0xdb   : > { %v3144_v35 = vpop.trf.xlu0 }
  0xdc   : > { %4194 = vst [vmem:[#allocation20_spill] sm:$0xff] %v3144_v35 }
  0xdf   : > { %v3146_v36 = vpop.trf.xlu0 }
  0xe0   : > { %4195 = vst [vmem:[#allocation21_spill] sm:$0xff] %v3146_v36  ;;  %v347_v37 = vpack.c.bf16 %v3146_v36, %v3144_v35 }
  0xe2   : > { %2620 = vmatmul.mubr.msk.bf16.gmra.mrb[16].mxu0 %vm355_vm1, %v347_v37  ;;  %2654 = vmatmul.mubr.msk.bf16.gmra.mrb[16].mxu1 %vm355_vm1, %v347_v37 }
  0xe3   : > { %v3152_v38 = vpop.trf.xlu0 }
  0xe4   : > { %4196 = vst [vmem:[#allocation22_spill] sm:$0xff] %v3152_v38 }
  0xe7   : > { %v3154_v39 = vpop.trf.xlu0 }
  0xe8   : > { %4197 = vst [vmem:[#allocation23_spill] sm:$0xff] %v3154_v39  ;;  %v348_v40 = vpack.c.bf16 %v3154_v39, %v3152_v38 }
  0xea   : > { %2623 = vmatprep.mubr.msk.bf16.mxu0 %vm355_vm1, %v348_v40  ;;  %2657 = vmatprep.mubr.msk.bf16.mxu1 %vm355_vm1, %v348_v40 }
  0xeb   : > { %v3160_v41 = vpop.trf.xlu0 }
  0xec   : > { %4198 = vst [vmem:[#allocation24_spill] sm:$0xff] %v3160_v41 }
  0xef   : > { %v3162_v42 = vpop.trf.xlu0 }
  0xf0   : > { %4199 = vst [vmem:[#allocation25_spill] sm:$0xff] %v3162_v42  ;;  %v349_v43 = vpack.c.bf16 %v3162_v42, %v3160_v41 }
  0xf2   : > { %2624 = vmatmul.mubr.msk.bf16.gmra.mrb[20].mxu0 %vm355_vm1, %v349_v43  ;;  %2658 = vmatmul.mubr.msk.bf16.gmra.mrb[20].mxu1 %vm355_vm1, %v349_v43 }
  0xf3   : > { %v3168_v44 = vpop.trf.xlu0 }
  0xf4   : > { %4200 = vst [vmem:[#allocation26_spill] sm:$0xff] %v3168_v44 }
  0xf7   : > { %v3170_v45 = vpop.trf.xlu0 }
  0xf8   : > { %4201 = vst [vmem:[#allocation27_spill] sm:$0xff] %v3170_v45  ;;  %v350_v46 = vpack.c.bf16 %v3170_v45, %v3168_v44 }
  0xfa   : > { %2627 = vmatprep.mubr.msk.bf16.mxu0 %vm355_vm1, %v350_v46  ;;  %2661 = vmatprep.mubr.msk.bf16.mxu1 %vm355_vm1, %v350_v46 }
  0xfb   : > { %v3176_v47 = vpop.trf.xlu0 }
  0xfc   : > { %4202 = vst [vmem:[#allocation28_spill] sm:$0xff] %v3176_v47 }
  0xff   : > { %v3178_v48 = vpop.trf.xlu0 }
 0x100   : > { %4203 = vst [vmem:[#allocation29_spill] sm:$0xff] %v3178_v48  ;;  %v351_v49 = vpack.c.bf16 %v3178_v48, %v3176_v47 }
 0x102   : > { %2628 = vmatmul.mubr.msk.bf16.gmra.mrb[24].mxu0 %vm355_vm1, %v351_v49  ;;  %2662 = vmatmul.mubr.msk.bf16.gmra.mrb[24].mxu1 %vm355_vm1, %v351_v49 }
 0x103   : > { %v3184_v50 = vpop.trf.xlu0 }
 0x104   : > { %4204 = vst [vmem:[#allocation30_spill] sm:$0xff] %v3184_v50 }
 0x107   : > { %v3186_v51 = vpop.trf.xlu0 }
 0x108   : > { %4205 = vst [vmem:[#allocation31_spill] sm:$0xff] %v3186_v51  ;;  %v352_v52 = vpack.c.bf16 %v3186_v51, %v3184_v50 }
 0x10a   : > { %2631 = vmatprep.mubr.msk.bf16.mxu0 %vm355_vm1, %v352_v52  ;;  %2665 = vmatprep.mubr.msk.bf16.mxu1 %vm355_vm1, %v352_v52 }
 0x10b   : > { %v3192_v53 = vpop.trf.xlu0 }
 0x10c   : > { %4206 = vst [vmem:[#allocation32_spill] sm:$0xff] %v3192_v53 }
 0x10f   : > { %v3194_v54 = vpop.trf.xlu0 }
 0x110   : > { %4207 = vst [vmem:[#allocation33_spill] sm:$0xff] %v3194_v54  ;;  %v353_v55 = vpack.c.bf16 %v3194_v54, %v3192_v53 }
 0x112   : > { %2632 = vmatmul.mubr.msk.bf16.gmra.mrb[28].mxu0 %vm355_vm1, %v353_v55  ;;  %2666 = vmatmul.mubr.msk.bf16.gmra.mrb[28].mxu1 %vm355_vm1, %v353_v55 }
 0x113   : > { %2671 = vmatprep.mubr.msk.bf16.mxu0 %vm355_vm1, %v3061_v9 }
 0x11a   : > { %2672 = vmatmul.mubr.msk.bf16.vlgmr.msra.gmra.mrb[32].mxu0 %vm355_vm1, %v3073_v12 }
 0x11b   : > { %2675 = vmatprep.mubr.msk.bf16.mxu0 %vm355_vm1, %v3086_v16 }
 0x122   : > { %2676 = vmatmul.mubr.msk.bf16.gmra.mrb[36].mxu0 %vm355_vm1, %v3098_v19 }
 0x123   : > { %2679 = vmatprep.mubr.msk.bf16.mxu0 %vm355_vm1, %v342_v22 }
 0x12a   : > { %2680 = vmatmul.mubr.msk.bf16.gmra.mrb[40].mxu0 %vm355_vm1, %v343_v25 }
 0x12b   : > { %2683 = vmatprep.mubr.msk.bf16.mxu0 %vm355_vm1, %v344_v28 }
 0x132   : > { %2684 = vmatmul.mubr.msk.bf16.gmra.mrb[44].mxu0 %vm355_vm1, %v345_v31 }
 0x133   : > { %2687 = vmatprep.mubr.msk.bf16.mxu0 %vm355_vm1, %v346_v34 }
 0x13a   : > { %2688 = vmatmul.mubr.msk.bf16.gmra.mrb[48].mxu0 %vm355_vm1, %v347_v37 }
 0x13b   : > { %2691 = vmatprep.mubr.msk.bf16.mxu0 %vm355_vm1, %v348_v40 }
 0x142   : > { %2692 = vmatmul.mubr.msk.bf16.gmra.mrb[52].mxu0 %vm355_vm1, %v349_v43 }
 0x143   : > { %2695 = vmatprep.mubr.msk.bf16.mxu0 %vm355_vm1, %v350_v46 }
 0x14a   : > { %2696 = vmatmul.mubr.msk.bf16.gmra.mrb[56].mxu0 %vm355_vm1, %v351_v49 }
 0x14b   : > { %2699 = vmatprep.mubr.msk.bf16.mxu0 %vm355_vm1, %v352_v52 }
 0x152   : > { %2700 = vmatmul.mubr.msk.bf16.gmra.mrb[60].mxu0 %vm355_vm1, %v353_v55 }
 0x175   : > { %v3220_v56 = vpop.f32.mrb[0].mxu0  ;;  %v2639_v57 = vpop.f32.mrb[0].mxu1 }
 0x176   : > { %v3222_v58 = vpop.f32.mrb[1].mxu0  ;;  %v607_v59 = vpop.f32.mrb[1].mxu1 }
 0x177   : > { %v3224_v60 = vpop.f32.mrb[2].mxu0  ;;  %v2640_v61 = vpop.f32.mrb[2].mxu1 }
 0x178   : > { %v3228_v63 = vpop.f32.mrb[3].mxu0  ;;  %v610_v0 = vpop.f32.mrb[3].mxu1 }
 0x185   : > { %v3232_v2 = vpop.f32.mrb[4].mxu0  ;;  %v3234_v3 = vpop.f32.mrb[4].mxu1 }
 0x186   : > { %v3236_v4 = vpop.f32.mrb[5].mxu0  ;;  %v623_v5 = vpop.f32.mrb[5].mxu1 }
 0x187   : > { %v3238_v7 = vpop.f32.mrb[6].mxu0  ;;  %v2644_v9 = vpop.f32.mrb[6].mxu1 }
 0x188   : > { %v3242_v13 = vpop.f32.mrb[7].mxu0  ;;  %v626_v16 = vpop.f32.mrb[7].mxu1 }
 0x195   : > { %v3246_v22 = vpop.f32.mrb[8].mxu0  ;;  %v3248_v25 = vpop.f32.mrb[8].mxu1 }
 0x196   : > { %v3250_v28 = vpop.f32.mrb[9].mxu0  ;;  %v3252_v31 = vpop.f32.mrb[9].mxu1 }
 0x197   : > { %v3254_v34 = vpop.f32.mrb[10].mxu0  ;;  %v3256_v37 = vpop.f32.mrb[10].mxu1 }
 0x198   : > { %v3260_v43 = vpop.f32.mrb[11].mxu0  ;;  %v3262_v46 = vpop.f32.mrb[11].mxu1 }
 0x1a5   : > { %v3266_v52 = vpop.f32.mrb[12].mxu0  ;;  %v3268_v55 = vpop.f32.mrb[12].mxu1 }
 0x1a6   : > { %v3270_v12 = vpop.f32.mrb[13].mxu0  ;;  %v3272_v19 = vpop.f32.mrb[13].mxu1 }
 0x1a7   : > { %v3274_v62 = vpop.f32.mrb[14].mxu0  ;;  %v3276_v1 = vpop.f32.mrb[14].mxu1 }
 0x1a8   : > { %v3280_v54 = vpop.f32.mrb[15].mxu0  ;;  %v3282_v53 = vpop.f32.mrb[15].mxu1 }
 0x1b5   : > { %v3286_v51 = vpop.f32.mrb[16].mxu0  ;;  %v2655_v50 = vpop.f32.mrb[16].mxu1 }
 0x1b6   : > { %v2755_v48 = vpack.i.bf16 %v2655_v50, %v2639_v57  ;;  %v3288_v47 = vpop.f32.mrb[17].mxu0  ;;  %v671_v45 = vpop.f32.mrb[17].mxu1  ;;  %v4128_v50 = vmov 0  }
 0x1b7   : > { %v3290_v44 = vpop.f32.mrb[18].mxu0  ;;  %v2656_v42 = vpop.f32.mrb[18].mxu1  ;;  %v2751_v41 = vpack.i.bf16 %v671_v45, %v607_v59  ;;  %1079 = vmatprep.mubr.bf16.mxu1 %v4128_v50 }
 0x1b8   : > { %v2757_v39 = vpack.i.bf16 %v2656_v42, %v2640_v61  ;;  %v3294_v38 = vpop.f32.mrb[19].mxu0  ;;  %v674_v36 = vpop.f32.mrb[19].mxu1 }
 0x1b9   : > { %v2753_v35 = vpack.i.bf16 %v674_v36, %v610_v0  ;;  %2752 = vxpose.xlu1.b32.start [1/16] (narrow) %v2751_v41, 8 }
 0x1bd   : > { %2754 = vxpose.xlu1.b32.cont [2/16] (narrow) %v2753_v35, 8 }
 0x1c1   : > { %2756 = vxpose.xlu1.b32.cont [3/16] (narrow) %v2755_v48, 8 }
 0x1c5   : > { %2758 = vxpose.xlu1.b32.cont [4/16] (narrow) %v2757_v39, 8  ;;  %v3299_v57 = vpop.f32.mrb[20].mxu0  ;;  %v2659_v45 = vpop.f32.mrb[20].mxu1 }
 0x1c6   : > { %v2763_v59 = vpack.i.bf16 %v2659_v45, %v3234_v3  ;;  %v3302_v42 = vpop.f32.mrb[21].mxu0  ;;  %v687_v61 = vpop.f32.mrb[21].mxu1 }
 0x1c7   : > { %v2759_v40 = vpack.i.bf16 %v687_v61, %v623_v5  ;;  %v3304_v33 = vpop.f32.mrb[22].mxu0  ;;  %v2660_v49 = vpop.f32.mrb[22].mxu1 }
 0x1c8   : > { %v2765_v36 = vpack.i.bf16 %v2660_v49, %v2644_v9  ;;  %v3308_v41 = vpop.f32.mrb[23].mxu0  ;;  %v690_v48 = vpop.f32.mrb[23].mxu1 }
 0x1c9   : > { %v2761_v0 = vpack.i.bf16 %v690_v48, %v626_v16  ;;  %2760 = vxpose.xlu1.b32.cont [5/16] (narrow) %v2759_v40, 8 }
 0x1cd   : > { %2762 = vxpose.xlu1.b32.cont [6/16] (narrow) %v2761_v0, 8 }
 0x1d1   : > { %2764 = vxpose.xlu1.b32.cont [7/16] (narrow) %v2763_v59, 8 }
 0x1d5   : > { %2766 = vxpose.xlu1.b32.cont [8/16] (narrow) %v2765_v36, 8  ;;  %v3312_v3 = vpop.f32.mrb[24].mxu0  ;;  %v2663_v5 = vpop.f32.mrb[24].mxu1 }
 0x1d6   : > { %v2771_v45 = vpack.i.bf16 %v2663_v5, %v3248_v25  ;;  %v3315_v61 = vpop.f32.mrb[25].mxu0  ;;  %v703_v35 = vpop.f32.mrb[25].mxu1 }
 0x1d7   : > { %v2767_v9 = vpack.i.bf16 %v703_v35, %v3252_v31  ;;  %v3318_v49 = vpop.f32.mrb[26].mxu0  ;;  %v2664_v50 = vpop.f32.mrb[26].mxu1 }
 0x1d8   : > { %v2773_v40 = vpack.i.bf16 %v2664_v50, %v3256_v37  ;;  %v3323_v59 = vpop.f32.mrb[27].mxu0  ;;  %v706_v36 = vpop.f32.mrb[27].mxu1 }
 0x1d9   : > { %v2769_v25 = vpack.i.bf16 %v706_v36, %v3262_v46  ;;  %2768 = vxpose.xlu1.b32.cont [9/16] (narrow) %v2767_v9, 8 }
 0x1dd   : > { %2770 = vxpose.xlu1.b32.cont [10/16] (narrow) %v2769_v25, 8 }
 0x1e1   : > { %2772 = vxpose.xlu1.b32.cont [11/16] (narrow) %v2771_v45, 8 }
 0x1e5   : > { %2774 = vxpose.xlu1.b32.cont [12/16] (narrow) %v2773_v40, 8  ;;  %v3328_v31 = vpop.f32.mrb[28].mxu0  ;;  %v2667_v35 = vpop.f32.mrb[28].mxu1 }
 0x1e6   : > { %v2779_v0 = vpack.i.bf16 %v2667_v35, %v3268_v55  ;;  %v3331_v5 = vpop.f32.mrb[29].mxu0  ;;  %v719_v37 = vpop.f32.mrb[29].mxu1 }
 0x1e7   : > { %v2775_v50 = vpack.i.bf16 %v719_v37, %v3272_v19  ;;  %v3334_v16 = vpop.f32.mrb[30].mxu0  ;;  %v2668_v39 = vpop.f32.mrb[30].mxu1 }
 0x1e8   : > { %v2781_v9 = vpack.i.bf16 %v2668_v39, %v3276_v1  ;;  %v3339_v45 = vpop.f32.mrb[31].mxu0  ;;  %v722_v40 = vpop.f32.mrb[31].mxu1 }
 0x1e9   : > { %v2777_v55 = vpack.i.bf16 %v722_v40, %v3282_v53  ;;  %2776 = vxpose.xlu1.b32.cont [13/16] (narrow) %v2775_v50, 8 }
 0x1ed   : > { %2778 = vxpose.xlu1.b32.cont [14/16] (narrow) %v2777_v55, 8  ;;  %v2673_v25 = vpop.f32.mrb[32].mxu0 }
 0x1ee   : > { %v772_v19 = vpop.f32.mrb[33].mxu0 }
 0x1ef   : > { %v2674_v35 = vpop.f32.mrb[34].mxu0 }
 0x1f0   : > { %v1753_v37 = vpack.c.bf16 %v2674_v35, %v2673_v25  ;;  %v775_v48 = vpop.f32.mrb[35].mxu0 }
 0x1f1   : > { %v1752_v32 = vpack.c.bf16 %v775_v48, %v772_v19  ;;  %2780 = vxpose.xlu1.b32.cont [15/16] (narrow) %v2779_v0, 8 }
 0x1f5   : > { %2782 = vxpose.xlu1.b32.end [16/16] (narrow) %v2781_v9, 8  ;;  %v2677_v46 = vpop.f32.mrb[36].mxu0 }
 0x1f6   : > { %v788_v1 = vpop.f32.mrb[37].mxu0 }
 0x1f7   : > { %v2678_v39 = vpop.f32.mrb[38].mxu0 }
 0x1f8   : > { %v1755_v30 = vpack.c.bf16 %v2678_v39, %v2677_v46  ;;  %v791_v29 = vpop.f32.mrb[39].mxu0 }
 0x1f9   : > { %v1754_v27 = vpack.c.bf16 %v791_v29, %v788_v1 }
 0x1fd   : > { %v2681_v26 = vpop.f32.mrb[40].mxu0 }
 0x1fe   : > { %v804_v36 = vpop.f32.mrb[41].mxu0 }
 0x1ff   : > { %v2682_v24 = vpop.f32.mrb[42].mxu0 }
 0x200   : > { %v1757_v53 = vpack.c.bf16 %v2682_v24, %v2681_v26  ;;  %v807_v50 = vpop.f32.mrb[43].mxu0 }
 0x201   : > { %v1756_v40 = vpack.c.bf16 %v807_v50, %v804_v36 }
 0x205   : > { %v2685_v55 = vpop.f32.mrb[44].mxu0 }
 0x206   : > { %v820_v23 = vpop.f32.mrb[45].mxu0 }
 0x207   : > { %v2686_v21 = vpop.f32.mrb[46].mxu0 }
 0x208   : > { %v1759_v25 = vpack.c.bf16 %v2686_v21, %v2685_v55  ;;  %v823_v35 = vpop.f32.mrb[47].mxu0 }
 0x209   : > { %v1758_v48 = vpack.c.bf16 %v823_v35, %v820_v23 }
 0x20d   : > { %v2689_v0 = vpop.f32.mrb[48].mxu0 }
 0x20e   : > { %v836_v9 = vpop.f32.mrb[49].mxu0 }
 0x20f   : > { %v2690_v19 = vpop.f32.mrb[50].mxu0 }
 0x210   : > { %v1761_v20 = vpack.c.bf16 %v2690_v19, %v2689_v0  ;;  %v839_v18 = vpop.f32.mrb[51].mxu0 }
 0x211   : > { %v1760_v46 = vpack.c.bf16 %v839_v18, %v836_v9 }
 0x213   : > { %2472 = vmatprep.subr.bf16.mxu0 %v1760_v46 }
 0x214   : > { %2473 = vmatpush3.bf16.msra.mxu0 %v1752_v32 }
 0x215   : > { %v2693_v29 = vpop.f32.mrb[52].mxu0  ;;  %2474 = vmatprep.subr.bf16.mxu0 %v1761_v20 }
 0x216   : > { %v852_v1 = vpop.f32.mrb[53].mxu0 }
 0x217   : > { %v2694_v24 = vpop.f32.mrb[54].mxu0 }
 0x218   : > { %v1763_v26 = vpack.c.bf16 %v2694_v24, %v2693_v29  ;;  %v855_v36 = vpop.f32.mrb[55].mxu0  ;;  %2475 = vmatpush3.bf16.msra.mxu0 %v1753_v37  ;;  %v4208_v24 = vpack.c.bf16 %v3228_v63, %v3222_v58  ;;  %v4212_v58 = vpack.c.bf16 %v3238_v7, %v3232_v2  ;;  %v4215_v63 = vpack.c.bf16 %v3280_v54, %v3270_v12 }
 0x219   : > { %v1762_v39 = vpack.c.bf16 %v855_v36, %v852_v1  ;;  %v4216_v2 = vpack.c.bf16 %v3274_v62, %v3266_v52  ;;  %v4218_v54 = vpack.c.bf16 %v3290_v44, %v3286_v51  ;;  %v4219_v62 = vpack.c.bf16 %v3308_v41, %v3302_v42 }
 0x21a   : > { %v4221_v44 = vpack.c.bf16 %v3323_v59, %v3315_v61  ;;  %v4224_v51 = vpack.c.bf16 %v3334_v16, %v3328_v31  ;;  %v983_v7 = vlaneseq }
 0x21b   : > { %2476 = vmatprep.subr.bf16.mxu0 %v1762_v39 }
 0x21c   : > { %2477 = vmatpush3.bf16.msra.mxu0 %v1754_v27  ;;  %v984_v12 = vshrl.u32 %v983_v7, 7 }
 0x21d   : > { %v2697_v21 = vpop.f32.mrb[56].mxu0  ;;  %2478 = vmatprep.subr.bf16.mxu0 %v1763_v26 }
 0x21e   : > { %v868_v23 = vpop.f32.mrb[57].mxu0 }
 0x21f   : > { %v2698_v50 = vpop.f32.mrb[58].mxu0 }
 0x220   : > { %v1765_v55 = vpack.c.bf16 %v2698_v50, %v2697_v21  ;;  %v871_v35 = vpop.f32.mrb[59].mxu0  ;;  %2479 = vmatpush3.bf16.msra.mxu0 %v1755_v30 }
 0x221   : > { %v1764_v18 = vpack.c.bf16 %v871_v35, %v868_v23 }
 0x223   : > { %2480 = vmatprep.subr.bf16.mxu0 %v1764_v18 }
 0x224   : > { %2481 = vmatpush3.bf16.msra.mxu0 %v1756_v40 }
 0x225   : > { %v2701_v32 = vpop.f32.mrb[60].mxu0  ;;  %2482 = vmatprep.subr.bf16.mxu0 %v1765_v55 }
 0x226   : > { %v884_v20 = vpop.f32.mrb[61].mxu0 }
 0x227   : > { %v2702_v0 = vpop.f32.mrb[62].mxu0 }
 0x228   : > { %v1767_v9 = vpack.c.bf16 %v2702_v0, %v2701_v32  ;;  %v887_v19 = vpop.f32.mrb[63].mxu0  ;;  %2483 = vmatpush3.bf16.msra.mxu0 %v1757_v53  ;;  %v4209_v53 = vmov 0  }
 0x229   : > { %v1766_v37 = vpack.c.bf16 %v887_v19, %v884_v20 }
 0x22b   : > { %2484 = vmatprep.subr.bf16.mxu0 %v1766_v37 }
 0x22c   : > { %2485 = vmatpush3.bf16.msra.mxu0 %v1758_v48  ;;  %v4211_v48 = vpack.c.bf16 %v3242_v13, %v3236_v4  ;;  %v4217_v4 = vpack.c.bf16 %v3294_v38, %v3288_v47  ;;  %v4220_v38 = vpack.c.bf16 %v3304_v33, %v3299_v57  ;;  %v4222_v47 = vpack.c.bf16 %v3318_v49, %v3312_v3 }
 0x22d   : > { %2486 = vmatprep.subr.bf16.mxu0 %v1767_v9  ;;  %v4223_v33 = vpack.c.bf16 %v3339_v45, %v3331_v5  ;;  %v985_v13 = vsub.s32 0, %v984_v12 }
 0x230   : > { %2487 = vmatpush3.bf16.msra.mxu0 %v1759_v25  ;;  %v4210_v25 = vpack.c.bf16 %v3224_v60, %v3220_v56  ;;  %v4213_v56 = vpack.c.bf16 %v3260_v43, %v3250_v28  ;;  %v4214_v60 = vpack.c.bf16 %v3254_v34, %v3246_v22  ;;  %v981_v22 = vld [vmem:[%s263_s12] sm:$0x3]  ;;  %v989_v28 = vsub.s32 1, %v984_v12 }
 0x231   : > { %v3429_v34 = vrot.slane %v981_v22, %v985_v13 }
 0x232   : > { %v3431_v43 = vrot.slane %v981_v22, %v989_v28 }
 0x239   : > { %v2783_v27 = vpop.trf.xlu1 }
 0x23a   : > { %v2787_v46 = vunpack.i.h.bf16 %v2783_v27  ;;  %v2784_v29 = vunpack.i.l.bf16 %v2783_v27 }
 0x23c   : > { %v980_v1 = vpack.c.bf16 %v2787_v46, %v2787_v46  ;;  %v979_v30 = vpack.c.bf16 %v2784_v29, %v2784_v29 }
 0x23e   : > { %2384 = vmatprep.subr.msk.bf16.mxu1 %vm404_vm0, %v980_v1  ;;  %v1042_v40 = vsel %vm404_vm0, %v979_v30, 0 }
 0x23f   : > { %1048 = vmatpush1.bf16.msra.mxu1 %v1042_v40 }
 0x242   : > { %2385 = vmatmul.mubr.msk.bf16.vlgmr.msra.gmra.mrb[32].mxu1 %vm355_vm1, %v4208_v24 }
 0x243   : > { %1089 = vmatprep.mubr.bf16.mxu1 %v4209_v53 }
 0x24a   : > { %2386 = vmatmul.mubr.msk.bf16.gmra.mrb[36].mxu1 %vm355_vm1, %v4210_v25 }
 0x24b   : > { %1099 = vmatprep.mubr.bf16.mxu1 %v4209_v53 }
 0x252   : > { %2387 = vmatmul.mubr.msk.bf16.gmra.mrb[40].mxu1 %vm355_vm1, %v4211_v48 }
 0x253   : > { %1109 = vmatprep.mubr.bf16.mxu1 %v4209_v53 }
 0x25a   : > { %2388 = vmatmul.mubr.msk.bf16.gmra.mrb[44].mxu1 %vm355_vm1, %v4212_v58 }
 0x25b   : > { %1119 = vmatprep.mubr.bf16.mxu1 %v4209_v53 }
 0x262   : > { %2389 = vmatmul.mubr.msk.bf16.gmra.mrb[48].mxu1 %vm355_vm1, %v4213_v56 }
 0x263   : > { %1129 = vmatprep.mubr.bf16.mxu1 %v4209_v53 }
 0x26a   : > { %2390 = vmatmul.mubr.msk.bf16.gmra.mrb[52].mxu1 %vm355_vm1, %v4214_v60 }
 0x26b   : > { %1139 = vmatprep.mubr.bf16.mxu1 %v4209_v53 }
 0x272   : > { %2391 = vmatmul.mubr.msk.bf16.gmra.mrb[56].mxu1 %vm355_vm1, %v4215_v63 }
 0x273   : > { %1149 = vmatprep.mubr.bf16.mxu1 %v4209_v53 }
 0x27a   : > { %2392 = vmatmul.mubr.msk.bf16.gmra.mrb[60].mxu1 %vm355_vm1, %v4216_v2 }
 0x27b   : > { %1159 = vmatprep.mubr.bf16.mxu1 %v4209_v53 }
 0x282   : > { %2393 = vmatmul.mubr.msk.bf16.gmra.mrb[64].mxu1 %vm355_vm1, %v4217_v4 }
 0x283   : > { %1169 = vmatprep.mubr.bf16.mxu1 %v4209_v53 }
 0x28a   : > { %2394 = vmatmul.mubr.msk.bf16.gmra.mrb[68].mxu1 %vm355_vm1, %v4218_v54 }
 0x28b   : > { %1179 = vmatprep.mubr.bf16.mxu1 %v4209_v53 }
 0x292   : > { %2395 = vmatmul.mubr.msk.bf16.gmra.mrb[72].mxu1 %vm355_vm1, %v4219_v62 }
 0x293   : > { %1189 = vmatprep.mubr.bf16.mxu1 %v4209_v53 }
 0x29a   : > { %2396 = vmatmul.mubr.msk.bf16.gmra.mrb[76].mxu1 %vm355_vm1, %v4220_v38 }
 0x29b   : > { %1199 = vmatprep.mubr.bf16.mxu1 %v4209_v53 }
 0x2a2   : > { %2397 = vmatmul.mubr.msk.bf16.gmra.mrb[80].mxu1 %vm355_vm1, %v4221_v44 }
 0x2a3   : > { %1209 = vmatprep.mubr.bf16.mxu1 %v4209_v53 }
 0x2aa   : > { %2398 = vmatmul.mubr.msk.bf16.gmra.mrb[84].mxu1 %vm355_vm1, %v4222_v47 }
 0x2ab   : > { %1219 = vmatprep.mubr.bf16.mxu1 %v4209_v53 }
 0x2b2   : > { %2399 = vmatmul.mubr.msk.bf16.gmra.mrb[88].mxu1 %vm355_vm1, %v4223_v33 }
 0x2b3   : > { %1229 = vmatprep.mubr.bf16.mxu1 %v4209_v53 }
 0x2ba   : > { %2400 = vmatmul.mubr.msk.bf16.gmra.mrb[92].mxu1 %vm355_vm1, %v4224_v51 }
 0x315   : > { %v1081_v52 = vpop.f32.mrb[32].mxu1 }
 0x316   : > { %v3434_v57 = vadd.f32 %v1081_v52, %v3429_v34  ;;  %v1083_v42 = vpop.f32.mrb[33].mxu1 }
 0x317   : > { %v3437_v41 = vadd.f32 %v1083_v42, %v3431_v43  ;;  %v1085_v3 = vpop.f32.mrb[34].mxu1 }
 0x318   : > { %v3440_v61 = vadd.f32 %v1085_v3, %v3429_v34  ;;  %v1087_v49 = vpop.f32.mrb[35].mxu1 }
 0x319   : > { %v3443_v16 = vadd.f32 %v1087_v49, %v3431_v43  ;;  %v1240_v59 = vmax.f32 %v3434_v57, %v3437_v41 }
 0x31b   : > { %1241 = vmax.xlane.f32.xlu1 %v1240_v59  ;;  %v1243_v31 = vmax.f32 %v3440_v61, %v3443_v16 }
 0x31d   : > { %v1091_v5 = vpop.f32.mrb[36].mxu1  ;;  %1244 = vmax.xlane.f32.xlu0 %v1243_v31 }
 0x31e   : > { %v3450_v45 = vadd.f32 %v1091_v5, %v3429_v34  ;;  %v1093_v26 = vpop.f32.mrb[37].mxu1 }
 0x31f   : > { %v3453_v36 = vadd.f32 %v1093_v26, %v3431_v43  ;;  %v1095_v39 = vpop.f32.mrb[38].mxu1 }
 0x320   : > { %v1097_v21 = vpop.f32.mrb[39].mxu1  ;;  %v3456_v23 = vadd.f32 %v1095_v39, %v3429_v34 }
 0x321   : > { %v3459_v50 = vadd.f32 %v1097_v21, %v3431_v43  ;;  %v1246_v55 = vmax.f32 %v3450_v45, %v3453_v36 }
 0x323   : > { %1247 = vmax.xlane.f32.xlu1 %v1246_v55  ;;  %v1249_v18 = vmax.f32 %v3456_v23, %v3459_v50 }
 0x325   : > { %v1101_v35 = vpop.f32.mrb[40].mxu1 }
 0x326   : > { %v3466_v32 = vadd.f32 %v1101_v35, %v3429_v34  ;;  %v1103_v20 = vpop.f32.mrb[41].mxu1 }
 0x327   : > { %v3469_v0 = vadd.f32 %v1103_v20, %v3431_v43  ;;  %v1105_v9 = vpop.f32.mrb[42].mxu1  ;;  %1250 = vmax.xlane.f32.xlu1 %v1249_v18 }
 0x328   : > { %v1107_v19 = vpop.f32.mrb[43].mxu1  ;;  %v3472_v37 = vadd.f32 %v1105_v9, %v3429_v34 }
 0x329   : > { %v3475_v27 = vadd.f32 %v1107_v19, %v3431_v43  ;;  %v1252_v46 = vmax.f32 %v3466_v32, %v3469_v0 }
 0x32b   : > { %1253 = vmax.xlane.f32.xlu1 %v1252_v46  ;;  %v1255_v1 = vmax.f32 %v3472_v37, %v3475_v27 }
 0x32d   : > { %v1111_v29 = vpop.f32.mrb[44].mxu1 }
 0x32e   : > { %v3482_v30 = vadd.f32 %v1111_v29, %v3429_v34  ;;  %v1113_v40 = vpop.f32.mrb[45].mxu1 }
 0x32f   : > { %v3485_v24 = vadd.f32 %v1113_v40, %v3431_v43  ;;  %v1115_v53 = vpop.f32.mrb[46].mxu1  ;;  %1256 = vmax.xlane.f32.xlu1 %v1255_v1 }
 0x330   : > { %v1117_v25 = vpop.f32.mrb[47].mxu1  ;;  %v3488_v48 = vadd.f32 %v1115_v53, %v3429_v34 }
 0x331   : > { %v3491_v58 = vadd.f32 %v1117_v25, %v3431_v43  ;;  %v1258_v56 = vmax.f32 %v3482_v30, %v3485_v24 }
 0x333   : > { %1259 = vmax.xlane.f32.xlu1 %v1258_v56  ;;  %v1261_v63 = vmax.f32 %v3488_v48, %v3491_v58 }
 0x335   : > { %v1121_v60 = vpop.f32.mrb[48].mxu1 }
 0x336   : > { %v3498_v2 = vadd.f32 %v1121_v60, %v3429_v34  ;;  %v1123_v4 = vpop.f32.mrb[49].mxu1 }
 0x337   : > { %v3501_v54 = vadd.f32 %v1123_v4, %v3431_v43  ;;  %v1125_v62 = vpop.f32.mrb[50].mxu1  ;;  %1262 = vmax.xlane.f32.xlu1 %v1261_v63 }
 0x338   : > { %v1127_v38 = vpop.f32.mrb[51].mxu1  ;;  %v3504_v44 = vadd.f32 %v1125_v62, %v3429_v34 }
 0x339   : > { %v3507_v47 = vadd.f32 %v1127_v38, %v3431_v43  ;;  %v1264_v33 = vmax.f32 %v3498_v2, %v3501_v54 }
 0x33b   : > { %1265 = vmax.xlane.f32.xlu1 %v1264_v33  ;;  %v1267_v7 = vmax.f32 %v3504_v44, %v3507_v47 }
 0x33d   : > { %v1131_v51 = vpop.f32.mrb[52].mxu1 }
 0x33e   : > { %v3514_v12 = vadd.f32 %v1131_v51, %v3429_v34  ;;  %v1133_v13 = vpop.f32.mrb[53].mxu1 }
 0x33f   : > { %v3517_v22 = vadd.f32 %v1133_v13, %v3431_v43  ;;  %v1135_v28 = vpop.f32.mrb[54].mxu1  ;;  %1268 = vmax.xlane.f32.xlu1 %v1267_v7 }
 0x340   : > { %v1137_v52 = vpop.f32.mrb[55].mxu1  ;;  %v3520_v42 = vadd.f32 %v1135_v28, %v3429_v34 }
 0x341   : > { %v3523_v3 = vadd.f32 %v1137_v52, %v3431_v43  ;;  %v1270_v49 = vmax.f32 %v3514_v12, %v3517_v22 }
 0x343   : > { %1271 = vmax.xlane.f32.xlu1 %v1270_v49  ;;  %v1273_v31 = vmax.f32 %v3520_v42, %v3523_v3 }
 0x345   : > { %v1141_v59 = vpop.f32.mrb[56].mxu1 }
 0x346   : > { %v3530_v5 = vadd.f32 %v1141_v59, %v3429_v34  ;;  %v1143_v26 = vpop.f32.mrb[57].mxu1 }
 0x347   : > { %v3533_v39 = vadd.f32 %v1143_v26, %v3431_v43  ;;  %v1145_v21 = vpop.f32.mrb[58].mxu1  ;;  %1274 = vmax.xlane.f32.xlu1 %v1273_v31 }
 0x348   : > { %v1147_v55 = vpop.f32.mrb[59].mxu1  ;;  %v3536_v35 = vadd.f32 %v1145_v21, %v3429_v34 }
 0x349   : > { %v3539_v18 = vadd.f32 %v1147_v55, %v3431_v43  ;;  %v1276_v20 = vmax.f32 %v3530_v5, %v3533_v39 }
 0x34b   : > { %1277 = vmax.xlane.f32.xlu1 %v1276_v20  ;;  %v1279_v19 = vmax.f32 %v3536_v35, %v3539_v18 }
 0x34d   : > { %v1151_v9 = vpop.f32.mrb[60].mxu1 }
 0x34e   : > { %v3546_v46 = vadd.f32 %v1151_v9, %v3429_v34  ;;  %v1153_v29 = vpop.f32.mrb[61].mxu1 }
 0x34f   : > { %v3549_v1 = vadd.f32 %v1153_v29, %v3431_v43  ;;  %v1155_v40 = vpop.f32.mrb[62].mxu1  ;;  %1280 = vmax.xlane.f32.xlu1 %v1279_v19 }
 0x350   : > { %v1157_v53 = vpop.f32.mrb[63].mxu1  ;;  %v3552_v25 = vadd.f32 %v1155_v40, %v3429_v34 }
 0x351   : > { %v3555_v56 = vadd.f32 %v1157_v53, %v3431_v43  ;;  %v1282_v60 = vmax.f32 %v3546_v46, %v3549_v1 }
 0x353   : > { %1283 = vmax.xlane.f32.xlu1 %v1282_v60  ;;  %v1285_v4 = vmax.f32 %v3552_v25, %v3555_v56 }
 0x355   : > { %v1161_v63 = vpop.f32.mrb[64].mxu1 }
 0x356   : > { %v3562_v62 = vadd.f32 %v1161_v63, %v3429_v34  ;;  %v1163_v38 = vpop.f32.mrb[65].mxu1 }
 0x357   : > { %v3565_v33 = vadd.f32 %v1163_v38, %v3431_v43  ;;  %v1165_v51 = vpop.f32.mrb[66].mxu1  ;;  %1286 = vmax.xlane.f32.xlu1 %v1285_v4 }
 0x358   : > { %v1167_v7 = vpop.f32.mrb[67].mxu1  ;;  %v3568_v13 = vadd.f32 %v1165_v51, %v3429_v34 }
 0x359   : > { %4225 = vst [vmem:[#allocation34_spill] sm:$0xff] %v3565_v33  ;;  %v3571_v28 = vadd.f32 %v1167_v7, %v3431_v43  ;;  %v1288_v52 = vmax.f32 %v3562_v62, %v3565_v33 }
 0x35a   : > { %4226 = vst [vmem:[#allocation35_spill] sm:$0xff] %v3568_v13 }
 0x35b   : > { %4227 = vst [vmem:[#allocation36_spill] sm:$0xff] %v3571_v28  ;;  %1289 = vmax.xlane.f32.xlu1 %v1288_v52  ;;  %v1291_v59 = vmax.f32 %v3568_v13, %v3571_v28 }
 0x35d   : > { %v1171_v49 = vpop.f32.mrb[68].mxu1 }
 0x35e   : > { %v3578_v31 = vadd.f32 %v1171_v49, %v3429_v34  ;;  %v1173_v26 = vpop.f32.mrb[69].mxu1 }
 0x35f   : > { %v3581_v21 = vadd.f32 %v1173_v26, %v3431_v43  ;;  %v1175_v55 = vpop.f32.mrb[70].mxu1  ;;  %1292 = vmax.xlane.f32.xlu1 %v1291_v59 }
 0x360   : > { %4228 = vst [vmem:[#allocation37_spill] sm:$0xff] %v3578_v31  ;;  %v3584_v20 = vadd.f32 %v1175_v55, %v3429_v34  ;;  %v1177_v9 = vpop.f32.mrb[71].mxu1 }
 0x361   : > { %4229 = vst [vmem:[#allocation38_spill] sm:$0xff] %v3581_v21  ;;  %v3587_v19 = vadd.f32 %v1177_v9, %v3431_v43  ;;  %v1294_v29 = vmax.f32 %v3578_v31, %v3581_v21 }
 0x362   : > { %4230 = vst [vmem:[#allocation39_spill] sm:$0xff] %v3584_v20 }
 0x363   : > { %4231 = vst [vmem:[#allocation40_spill] sm:$0xff] %v3587_v19  ;;  %1295 = vmax.xlane.f32.xlu1 %v1294_v29  ;;  %v1297_v40 = vmax.f32 %v3584_v20, %v3587_v19 }
 0x365   : > { %v1181_v53 = vpop.f32.mrb[72].mxu1  ;;  %1298 = vmax.xlane.f32.xlu0 %v1297_v40 }
 0x366   : > { %v3594_v60 = vadd.f32 %v1181_v53, %v3429_v34  ;;  %v1183_v63 = vpop.f32.mrb[73].mxu1 }
 0x367   : > { %v3597_v4 = vadd.f32 %v1183_v63, %v3431_v43  ;;  %v1185_v38 = vpop.f32.mrb[74].mxu1 }
 0x368   : > { %4232 = vst [vmem:[#allocation41_spill] sm:$0xff] %v3594_v60  ;;  %v3600_v51 = vadd.f32 %v1185_v38, %v3429_v34  ;;  %v1187_v7 = vpop.f32.mrb[75].mxu1 }
 0x369   : > { %4233 = vst [vmem:[#allocation42_spill] sm:$0xff] %v3597_v4  ;;  %v3603_v52 = vadd.f32 %v1187_v7, %v3431_v43  ;;  %v1300_v49 = vmax.f32 %v3594_v60, %v3597_v4 }
 0x36a   : > { %4234 = vst [vmem:[#allocation43_spill] sm:$0xff] %v3600_v51 }
 0x36b   : > { %4235 = vst [vmem:[#allocation44_spill] sm:$0xff] %v3603_v52  ;;  %1301 = vmax.xlane.f32.xlu1 %v1300_v49  ;;  %v1303_v59 = vmax.f32 %v3600_v51, %v3603_v52 }
 0x36d   : > { %v1191_v26 = vpop.f32.mrb[76].mxu1  ;;  %1304 = vmax.xlane.f32.xlu0 %v1303_v59 }
 0x36e   : > { %v3610_v55 = vadd.f32 %v1191_v26, %v3429_v34  ;;  %v1193_v9 = vpop.f32.mrb[77].mxu1 }
 0x36f   : > { %v3613_v29 = vadd.f32 %v1193_v9, %v3431_v43  ;;  %v1195_v40 = vpop.f32.mrb[78].mxu1 }
 0x370   : > { %4236 = vst [vmem:[#allocation45_spill] sm:$0xff] %v3610_v55  ;;  %v3616_v53 = vadd.f32 %v1195_v40, %v3429_v34  ;;  %v1197_v63 = vpop.f32.mrb[79].mxu1 }
 0x371   : > { %4237 = vst [vmem:[#allocation46_spill] sm:$0xff] %v3613_v29  ;;  %v3619_v38 = vadd.f32 %v1197_v63, %v3431_v43  ;;  %v1306_v7 = vmax.f32 %v3610_v55, %v3613_v29 }
 0x372   : > { %4238 = vst [vmem:[#allocation47_spill] sm:$0xff] %v3616_v53 }
 0x373   : > { %4239 = vst [vmem:[#allocation48_spill] sm:$0xff] %v3619_v38  ;;  %1307 = vmax.xlane.f32.xlu1 %v1306_v7  ;;  %v1309_v49 = vmax.f32 %v3616_v53, %v3619_v38 }
 0x375   : > { %v1201_v59 = vpop.f32.mrb[80].mxu1  ;;  %1310 = vmax.xlane.f32.xlu0 %v1309_v49 }
 0x376   : > { %v1203_v26 = vpop.f32.mrb[81].mxu1 }
 0x377   : > { %v1205_v9 = vpop.f32.mrb[82].mxu1 }
 0x378   : > { %v1207_v17 = vpop.f32.mrb[83].mxu1 }
 0x37d   : > { %v3625_v15 = vpop.f32.mrb[84].mxu1 }
 0x37e   : > { %v3627_v40 = vpop.f32.mrb[85].mxu1 }
 0x37f   : > { %v3629_v14 = vpop.f32.mrb[86].mxu1 }
 0x380   : > { %v3631_v63 = vpop.f32.mrb[87].mxu1 }
 0x385   : > { %v3633_v11 = vpop.f32.mrb[88].mxu1 }
 0x386   : > { %v3635_v10 = vpop.f32.mrb[89].mxu1 }
 0x387   : > { %v3637_v7 = vpop.f32.mrb[90].mxu1 }
 0x388   : > { %v3639_v8 = vpop.f32.mrb[91].mxu1 }
 0x38d   : > { %v3641_v49 = vpop.f32.mrb[92].mxu1 }
 0x38e   : > { %v3643_v6 = vpop.f32.mrb[93].mxu1 }
 0x38f   : > { %v3645_v38 = vpop.f32.mrb[94].mxu1 }
 0x390   : > { %v3647_v53 = vpop.f32.mrb[95].mxu1 }
 0x3a8   : > { %v1242_v29 = vpop.xlane.xlu1 %1241 }
 0x3a9   : > { %v1336_v55 = vsub.f32 %v3434_v57, %v1242_v29  ;;  %v1337_v52 = vsub.f32 %v3437_v41, %v1242_v29 }
 0x3aa   : > { %v1245_v51 = vpop.xlane.xlu0 %1244 }
 0x3ab   : > { %v1400_v4 = vmul.f32 1.442695, %v1336_v55  ;;  %v1402_v60 = vmul.f32 1.442695, %v1337_v52  ;;  %v1338_v19 = vsub.f32 %v3440_v61, %v1245_v51  ;;  %v1339_v20 = vsub.f32 %v3443_v16, %v1245_v51 }
 0x3ad   : > { %2789 = vpow2.f32 %v1400_v4  ;;  %v1404_v21 = vmul.f32 1.442695, %v1338_v19  ;;  %v1406_v31 = vmul.f32 1.442695, %v1339_v20  ;;  %v3679_v4 = vadd.f32 %v1207_v17, %v3431_v43 }
 0x3ae   : > { %2791 = vpow2.f32 %v1402_v60  ;;  %v3676_v60 = vadd.f32 %v1205_v9, %v3429_v34 }
 0x3af   : > { %2793 = vpow2.f32 %v1404_v21 }
 0x3b0   : > { %2795 = vpow2.f32 %v1406_v31  ;;  %v1248_v28 = vpop.xlane.xlu1 %1247  ;;  %v3662_v31 = vadd.f32 %v1201_v59, %v3429_v34 }
 0x3b1   : > { %v1340_v13 = vsub.f32 %v3450_v45, %v1248_v28  ;;  %v1341_v57 = vsub.f32 %v3453_v36, %v1248_v28  ;;  %v3665_v45 = vadd.f32 %v1203_v26, %v3431_v43 }
 0x3b3   : > { %v1408_v33 = vmul.f32 1.442695, %v1340_v13  ;;  %v1410_v41 = vmul.f32 1.442695, %v1341_v57  ;;  %v1312_v9 = vmax.f32 %v3662_v31, %v3665_v45 }
 0x3b4   : > { %v1251_v29 = vpop.xlane.xlu1 %1250 }
 0x3b5   : > { %2797 = vpow2.f32 %v1408_v33  ;;  %v1342_v52 = vsub.f32 %v3456_v23, %v1251_v29  ;;  %v1343_v61 = vsub.f32 %v3459_v50, %v1251_v29  ;;  %v1315_v29 = vmax.f32 %v3676_v60, %v3679_v4 }
 0x3b6   : > { %2799 = vpow2.f32 %v1410_v41 }
 0x3b7   : > { %v3657_v16 = vpop.eup %2789  ;;  %v1412_v20 = vmul.f32 1.442695, %v1342_v52  ;;  %v1414_v19 = vmul.f32 1.442695, %v1343_v61  ;;  %v3695_v61 = vadd.f32 %v3625_v15, %v3429_v34 }
 0x3b8   : > { %v3659_v21 = vpop.eup %2791  ;;  %v1254_v36 = vpop.xlane.xlu1 %1253 }
 0x3b9   : > { %v3667_v13 = vpop.eup %2793  ;;  %2801 = vpow2.f32 %v1412_v20  ;;  %v1344_v23 = vsub.f32 %v3466_v32, %v1254_v36  ;;  %v1345_v50 = vsub.f32 %v3469_v0, %v1254_v36  ;;  %v1528_v33 = vadd.f32 %v3659_v21, %v3657_v16 }
 0x3ba   : > { %v3673_v28 = vpop.eup %2795  ;;  %2803 = vpow2.f32 %v1414_v19 }
 0x3bb   : > { %v1416_v51 = vmul.f32 1.442695, %v1344_v23  ;;  %v1418_v55 = vmul.f32 1.442695, %v1345_v50  ;;  %1529 = vadd.xlane.f32.xlu1 %v1528_v33  ;;  %v1531_v32 = vadd.f32 %v3673_v28, %v3667_v13 }
 0x3bc   : > { %v1257_v59 = vpop.xlane.xlu1 %1256 }
 0x3bd   : > { %2805 = vpow2.f32 %v1416_v51  ;;  %1532 = vadd.xlane.f32.xlu0 %v1531_v32  ;;  %v1346_v0 = vsub.f32 %v3472_v37, %v1257_v59  ;;  %v1347_v26 = vsub.f32 %v3475_v27, %v1257_v59  ;;  %v3699_v37 = vadd.f32 %v3627_v40, %v3431_v43 }
 0x3be   : > { %2807 = vpow2.f32 %v1418_v55  ;;  %v3711_v40 = vadd.f32 %v3629_v14, %v3429_v34 }
 0x3bf   : > { %v3687_v57 = vpop.eup %2797  ;;  %v1420_v17 = vmul.f32 1.442695, %v1346_v0  ;;  %v1422_v41 = vmul.f32 1.442695, %v1347_v26  ;;  %1313 = vmax.xlane.f32.xlu1 %v1312_v9  ;;  %v1318_v51 = vmax.f32 %v3695_v61, %v3699_v37  ;;  %v3729_v9 = vadd.f32 %v3633_v11, %v3429_v34 }
 0x3c0   : > { %v3691_v52 = vpop.eup %2799  ;;  %v1260_v27 = vpop.xlane.xlu1 %1259 }
 0x3c1   : > { %2809 = vpow2.f32 %v1420_v17  ;;  %1316 = vmax.xlane.f32.xlu0 %v1315_v29  ;;  %v1348_v20 = vsub.f32 %v3482_v30, %v1260_v27  ;;  %v1349_v19 = vsub.f32 %v3485_v24, %v1260_v27  ;;  %v1534_v36 = vadd.f32 %v3691_v52, %v3687_v57 }
 0x3c2   : > { %2811 = vpow2.f32 %v1422_v41  ;;  %v3715_v30 = vadd.f32 %v3631_v63, %v3431_v43 }
 0x3c3   : > { %v3705_v23 = vpop.eup %2801  ;;  %v1424_v50 = vmul.f32 1.442695, %v1348_v20  ;;  %v1426_v15 = vmul.f32 1.442695, %v1349_v19  ;;  %1535 = vadd.xlane.f32.xlu1 %v1534_v36  ;;  %v3747_v36 = vadd.f32 %v3637_v7, %v3429_v34 }
 0x3c4   : > { %v3707_v33 = vpop.eup %2803  ;;  %v1263_v24 = vpop.xlane.xlu1 %1262  ;;  %v1321_v17 = vmax.f32 %v3711_v40, %v3715_v30 }
 0x3c5   : > { %2813 = vpow2.f32 %v1424_v50  ;;  %v1350_v55 = vsub.f32 %v3488_v48, %v1263_v24  ;;  %v1351_v32 = vsub.f32 %v3491_v58, %v1263_v24  ;;  %v1537_v59 = vadd.f32 %v3707_v33, %v3705_v23 }
 0x3c6   : > { %2815 = vpow2.f32 %v1426_v15  ;;  %v3733_v48 = vadd.f32 %v3635_v10, %v3431_v43 }
 0x3c7   : > { %v3723_v0 = vpop.eup %2805  ;;  %v1428_v14 = vmul.f32 1.442695, %v1350_v55  ;;  %v1430_v26 = vmul.f32 1.442695, %v1351_v32  ;;  %1319 = vmax.xlane.f32.xlu1 %v1318_v51  ;;  %1538 = vadd.xlane.f32.xlu0 %v1537_v59  ;;  %v3765_v59 = vadd.f32 %v3641_v49, %v3429_v34 }
 0x3c8   : > { %v3725_v63 = vpop.eup %2807  ;;  %v1266_v58 = vpop.xlane.xlu1 %1265  ;;  %v1324_v50 = vmax.f32 %v3729_v9, %v3733_v48 }
 0x3c9   : > { %2817 = vpow2.f32 %v1428_v14  ;;  %v1352_v41 = vsub.f32 %v3498_v2, %v1266_v58  ;;  %v1353_v29 = vsub.f32 %v3501_v54, %v1266_v58  ;;  %v1540_v27 = vadd.f32 %v3725_v63, %v3723_v0 }
 0x3ca   : > { %2819 = vpow2.f32 %v1430_v26  ;;  %v3751_v2 = vadd.f32 %v3639_v8, %v3431_v43 }
 0x3cb   : > { %v3741_v20 = vpop.eup %2809  ;;  %v1432_v11 = vmul.f32 1.442695, %v1352_v41  ;;  %v1434_v19 = vmul.f32 1.442695, %v1353_v29  ;;  %1322 = vmax.xlane.f32.xlu0 %v1321_v17  ;;  %1541 = vadd.xlane.f32.xlu1 %v1540_v27  ;;  %v3783_v27 = vadd.f32 %v3645_v38, %v3429_v34 }
 0x3cc   : > { %v3743_v10 = vpop.eup %2811  ;;  %v1269_v54 = vpop.xlane.xlu1 %1268  ;;  %v1327_v14 = vmax.f32 %v3747_v36, %v3751_v2 }
 0x3cd   : > { %2821 = vpow2.f32 %v1432_v11  ;;  %v1354_v15 = vsub.f32 %v3504_v44, %v1269_v54  ;;  %v1355_v24 = vsub.f32 %v3507_v47, %v1269_v54  ;;  %v1543_v51 = vadd.f32 %v3743_v10, %v3741_v20 }
 0x3ce   : > { %2823 = vpow2.f32 %v1434_v19  ;;  %v3769_v44 = vadd.f32 %v3643_v6, %v3431_v43 }
 0x3cf   : > { %v3759_v55 = vpop.eup %2813  ;;  %v1436_v7 = vmul.f32 1.442695, %v1354_v15  ;;  %v1438_v32 = vmul.f32 1.442695, %v1355_v24  ;;  %1544 = vadd.xlane.f32.xlu0 %v1543_v51  ;;  %1325 = vmax.xlane.f32.xlu1 %v1324_v50 }
 0x3d0   : > { %v3761_v8 = vpop.eup %2815  ;;  %v1272_v47 = vpop.xlane.xlu1 %1271  ;;  %v1330_v11 = vmax.f32 %v3765_v59, %v3769_v44 }
 0x3d1   : > { %2825 = vpow2.f32 %v1436_v7  ;;  %v1356_v26 = vsub.f32 %v3514_v12, %v1272_v47  ;;  %v1357_v58 = vsub.f32 %v3517_v22, %v1272_v47  ;;  %v1546_v17 = vadd.f32 %v3761_v8, %v3759_v55 }
 0x3d2   : > { %2827 = vpow2.f32 %v1438_v32  ;;  %v3787_v12 = vadd.f32 %v3647_v53, %v3431_v43 }
 0x3d3   : > { %v3777_v41 = vpop.eup %2817  ;;  %v1440_v49 = vmul.f32 1.442695, %v1356_v26  ;;  %v1442_v29 = vmul.f32 1.442695, %v1357_v58  ;;  %1328 = vmax.xlane.f32.xlu0 %v1327_v14  ;;  %1547 = vadd.xlane.f32.xlu1 %v1546_v17 }
 0x3d4   : > { %v3779_v6 = vpop.eup %2819  ;;  %v1275_v22 = vpop.xlane.xlu1 %1274  ;;  %v1333_v24 = vmax.f32 %v3783_v27, %v3787_v12 }
 0x3d5   : > { %2829 = vpow2.f32 %v1440_v49  ;;  %v1358_v19 = vsub.f32 %v3520_v42, %v1275_v22  ;;  %v1359_v54 = vsub.f32 %v3523_v3, %v1275_v22  ;;  %v1549_v50 = vadd.f32 %v3779_v6, %v3777_v41 }
 0x3d6   : > { %2831 = vpow2.f32 %v1442_v29 }
 0x3d7   : > { %v3795_v15 = vpop.eup %2821  ;;  %v1444_v34 = vmul.f32 1.442695, %v1358_v19  ;;  %v1446_v38 = vmul.f32 1.442695, %v1359_v54  ;;  %1550 = vadd.xlane.f32.xlu0 %v1549_v50  ;;  %1331 = vmax.xlane.f32.xlu1 %v1330_v11 }
 0x3d8   : > { %v3797_v43 = vpop.eup %2823  ;;  %v1278_v53 = vpop.xlane.xlu1 %1277 }
 0x3d9   : > { %2833 = vpow2.f32 %v1444_v34  ;;  %v1360_v42 = vsub.f32 %v3530_v5, %v1278_v53  ;;  %v1361_v3 = vsub.f32 %v3533_v39, %v1278_v53  ;;  %v1552_v51 = vadd.f32 %v3797_v43, %v3795_v15 }
 0x3da   : > { %2835 = vpow2.f32 %v1446_v38 }
 0x3db   : > { %v3805_v7 = vpop.eup %2825  ;;  %v1448_v32 = vmul.f32 1.442695, %v1360_v42  ;;  %v1450_v47 = vmul.f32 1.442695, %v1361_v3  ;;  %1334 = vmax.xlane.f32.xlu0 %v1333_v24  ;;  %1553 = vadd.xlane.f32.xlu1 %v1552_v51 }
 0x3dc   : > { %v3807_v14 = vpop.eup %2827  ;;  %v1281_v26 = vpop.xlane.xlu1 %1280 }
 0x3dd   : > { %2837 = vpow2.f32 %v1448_v32  ;;  %v1362_v58 = vsub.f32 %v3536_v35, %v1281_v26  ;;  %v1363_v5 = vsub.f32 %v3539_v18, %v1281_v26  ;;  %v1555_v39 = vadd.f32 %v3807_v14, %v3805_v7 }
 0x3de   : > { %2839 = vpow2.f32 %v1450_v47 }
 0x3df   : > { %v3813_v17 = vpop.eup %2829  ;;  %v1452_v49 = vmul.f32 1.442695, %v1362_v58  ;;  %v1454_v29 = vmul.f32 1.442695, %v1363_v5  ;;  %1556 = vadd.xlane.f32.xlu0 %v1555_v39  ;;  %v4240_v58 = vld [vmem:[#allocation34_spill] sm:$0xff] }
 0x3e0   : > { %v3815_v22 = vpop.eup %2831  ;;  %v1284_v11 = vpop.xlane.xlu1 %1283 }
 0x3e1   : > { %2841 = vpow2.f32 %v1452_v49  ;;  %v1364_v19 = vsub.f32 %v3546_v46, %v1284_v11  ;;  %v1365_v54 = vsub.f32 %v3549_v1, %v1284_v11  ;;  %v1558_v35 = vadd.f32 %v3815_v22, %v3813_v17 }
 0x3e2   : > { %2843 = vpow2.f32 %v1454_v29 }
 0x3e3   : > { %v3821_v18 = vpop.eup %2833  ;;  %v1456_v50 = vmul.f32 1.442695, %v1364_v19  ;;  %v1458_v34 = vmul.f32 1.442695, %v1365_v54  ;;  %1559 = vadd.xlane.f32.xlu1 %v1558_v35  ;;  %v4241_v19 = vld [vmem:[#allocation35_spill] sm:$0xff]  ;;  %v4242_v35 = vld [vmem:[#allocation36_spill] sm:$0xff] }
 0x3e4   : > { %v3823_v38 = vpop.eup %2835  ;;  %v1287_v53 = vpop.xlane.xlu1 %1286 }
 0x3e5   : > { %2845 = vpow2.f32 %v1456_v50  ;;  %v1366_v24 = vsub.f32 %v3552_v25, %v1287_v53  ;;  %v1367_v42 = vsub.f32 %v3555_v56, %v1287_v53  ;;  %v1561_v46 = vadd.f32 %v3823_v38, %v3821_v18 }
 0x3e6   : > { %2847 = vpow2.f32 %v1458_v34 }
 0x3e7   : > { %v3829_v1 = vpop.eup %2837  ;;  %v1460_v3 = vmul.f32 1.442695, %v1366_v24  ;;  %v1462_v51 = vmul.f32 1.442695, %v1367_v42  ;;  %1562 = vadd.xlane.f32.xlu0 %v1561_v46 }
 0x3e8   : > { %v3831_v32 = vpop.eup %2839  ;;  %v1290_v47 = vpop.xlane.xlu1 %1289 }
 0x3e9   : > { %2849 = vpow2.f32 %v1460_v3  ;;  %v1368_v26 = vsub.f32 %v3562_v62, %v1290_v47  ;;  %v1369_v5 = vsub.f32 %v4240_v58, %v1290_v47  ;;  %v1564_v25 = vadd.f32 %v3831_v32, %v3829_v1  ;;  %v4244_v3 = vld [vmem:[#allocation37_spill] sm:$0xff]  ;;  %v4245_v47 = vld [vmem:[#allocation38_spill] sm:$0xff] }
 0x3ea   : > { %2851 = vpow2.f32 %v1462_v51 }
 0x3eb   : > { %v3837_v56 = vpop.eup %2841  ;;  %v1464_v39 = vmul.f32 1.442695, %v1368_v26  ;;  %v1466_v49 = vmul.f32 1.442695, %v1369_v5  ;;  %1565 = vadd.xlane.f32.xlu1 %v1564_v25 }
 0x3ec   : > { %v3839_v29 = vpop.eup %2843  ;;  %v1293_v11 = vpop.xlane.xlu1 %1292 }
 0x3ed   : > { %2853 = vpow2.f32 %v1464_v39  ;;  %v1370_v54 = vsub.f32 %v4241_v19, %v1293_v11  ;;  %v1371_v50 = vsub.f32 %v4242_v35, %v1293_v11  ;;  %v1567_v62 = vadd.f32 %v3839_v29, %v3837_v56  ;;  %v4247_v11 = vld [vmem:[#allocation39_spill] sm:$0xff] }
 0x3ee   : > { %2855 = vpow2.f32 %v1466_v49 }
 0x3ef   : > { %v3845_v34 = vpop.eup %2845  ;;  %v1468_v53 = vmul.f32 1.442695, %v1370_v54  ;;  %v1470_v24 = vmul.f32 1.442695, %v1371_v50  ;;  %1568 = vadd.xlane.f32.xlu0 %v1567_v62  ;;  %v4248_v54 = vld [vmem:[#allocation40_spill] sm:$0xff] }
 0x3f0   : > { %4243 = vst [vmem:[#allocation34_spill] sm:$0xff] %v3845_v34  ;;  %v3847_v42 = vpop.eup %2847  ;;  %v1296_v46 = vpop.xlane.xlu1 %1295 }
 0x3f1   : > { %2857 = vpow2.f32 %v1468_v53  ;;  %v1372_v51 = vsub.f32 %v4244_v3, %v1296_v46  ;;  %v1373_v26 = vsub.f32 %v4245_v47, %v1296_v46  ;;  %v1570_v58 = vadd.f32 %v3847_v42, %v3845_v34  ;;  %v4252_v47 = vld [vmem:[#allocation41_spill] sm:$0xff] }
 0x3f2   : > { %2859 = vpow2.f32 %v1470_v24  ;;  %v1299_v5 = vpop.xlane.xlu0 %1298 }
 0x3f3   : > { %v3853_v25 = vpop.eup %2849  ;;  %v1472_v39 = vmul.f32 1.442695, %v1372_v51  ;;  %v1474_v49 = vmul.f32 1.442695, %v1373_v26  ;;  %v1374_v19 = vsub.f32 %v4247_v11, %v1299_v5  ;;  %v1375_v35 = vsub.f32 %v4248_v54, %v1299_v5  ;;  %1571 = vadd.xlane.f32.xlu1 %v1570_v58  ;;  %v4253_v58 = vld [vmem:[#allocation42_spill] sm:$0xff] }
 0x3f4   : > { %4246 = vst [vmem:[#allocation35_spill] sm:$0xff] %v3853_v25  ;;  %v3857_v50 = vpop.eup %2851 }
 0x3f5   : > { %4249 = vst [vmem:[#allocation36_spill] sm:$0xff] %v3857_v50  ;;  %2861 = vpow2.f32 %v1472_v39  ;;  %v1476_v62 = vmul.f32 1.442695, %v1374_v19  ;;  %v1478_v53 = vmul.f32 1.442695, %v1375_v35  ;;  %v1573_v46 = vadd.f32 %v3857_v50, %v3853_v25  ;;  %v4255_v35 = vld [vmem:[#allocation43_spill] sm:$0xff] }
 0x3f6   : > { %2863 = vpow2.f32 %v1474_v49 }
 0x3f7   : > { %v3861_v24 = vpop.eup %2853  ;;  %2865 = vpow2.f32 %v1476_v62  ;;  %1574 = vadd.xlane.f32.xlu0 %v1573_v46  ;;  %v4256_v62 = vld [vmem:[#allocation44_spill] sm:$0xff] }
 0x3f8   : > { %4250 = vst [vmem:[#allocation37_spill] sm:$0xff] %v3861_v24  ;;  %v3863_v3 = vpop.eup %2855  ;;  %2867 = vpow2.f32 %v1478_v53  ;;  %v1302_v51 = vpop.xlane.xlu1 %1301 }
 0x3f9   : > { %4251 = vst [vmem:[#allocation38_spill] sm:$0xff] %v3863_v3  ;;  %v1376_v26 = vsub.f32 %v4252_v47, %v1302_v51  ;;  %v1377_v5 = vsub.f32 %v4253_v58, %v1302_v51  ;;  %v1576_v39 = vadd.f32 %v3863_v3, %v3861_v24 }
 0x3fa   : > { %v1305_v11 = vpop.xlane.xlu0 %1304 }
 0x3fb   : > { %v3869_v19 = vpop.eup %2857  ;;  %v1480_v54 = vmul.f32 1.442695, %v1376_v26  ;;  %v1482_v49 = vmul.f32 1.442695, %v1377_v5  ;;  %v1378_v34 = vsub.f32 %v4255_v35, %v1305_v11  ;;  %v1379_v46 = vsub.f32 %v4256_v62, %v1305_v11  ;;  %1577 = vadd.xlane.f32.xlu1 %v1576_v39  ;;  %v4258_v39 = vld [vmem:[#allocation45_spill] sm:$0xff]  ;;  %v4259_v62 = vld [vmem:[#allocation46_spill] sm:$0xff] }
 0x3fc   : > { %4254 = vst [vmem:[#allocation39_spill] sm:$0xff] %v3869_v19  ;;  %v3873_v25 = vpop.eup %2859 }
 0x3fd   : > { %4257 = vst [vmem:[#allocation40_spill] sm:$0xff] %v3873_v25  ;;  %2869 = vpow2.f32 %v1480_v54  ;;  %v1484_v53 = vmul.f32 1.442695, %v1378_v34  ;;  %v1486_v47 = vmul.f32 1.442695, %v1379_v46  ;;  %v1579_v51 = vadd.f32 %v3873_v25, %v3869_v19  ;;  %v4261_v25 = vld [vmem:[#allocation48_spill] sm:$0xff] }
 0x3fe   : > { %2871 = vpow2.f32 %v1482_v49 }
 0x3ff   : > { %v3877_v58 = vpop.eup %2861  ;;  %2873 = vpow2.f32 %v1484_v53  ;;  %1580 = vadd.xlane.f32.xlu0 %v1579_v51  ;;  %v4260_v53 = vld [vmem:[#allocation47_spill] sm:$0xff] }
 0x400   : > { %v3879_v26 = vpop.eup %2863  ;;  %2875 = vpow2.f32 %v1486_v47  ;;  %v1308_v5 = vpop.xlane.xlu1 %1307 }
 0x401   : > { %v3881_v35 = vpop.eup %2865  ;;  %v1380_v11 = vsub.f32 %v4258_v39, %v1308_v5  ;;  %v1381_v54 = vsub.f32 %v4259_v62, %v1308_v5  ;;  %v1582_v34 = vadd.f32 %v3879_v26, %v3877_v58 }
 0x402   : > { %v3887_v46 = vpop.eup %2867  ;;  %v1311_v49 = vpop.xlane.xlu0 %1310 }
 0x403   : > { %v1488_v24 = vmul.f32 1.442695, %v1380_v11  ;;  %v1490_v19 = vmul.f32 1.442695, %v1381_v54  ;;  %v1382_v51 = vsub.f32 %v4260_v53, %v1311_v49  ;;  %v1383_v3 = vsub.f32 %v4261_v25, %v1311_v49  ;;  %1583 = vadd.xlane.f32.xlu1 %v1582_v34 }
 0x404   : > { %v1585_v47 = vadd.f32 %v3887_v46, %v3881_v35 }
 0x405   : > { %2877 = vpow2.f32 %v1488_v24  ;;  %v1492_v39 = vmul.f32 1.442695, %v1382_v51  ;;  %v1494_v50 = vmul.f32 1.442695, %v1383_v3 }
 0x406   : > { %2879 = vpow2.f32 %v1490_v19  ;;  %1586 = vadd.xlane.f32.xlu0 %v1585_v47 }
 0x407   : > { %v3893_v5 = vpop.eup %2869  ;;  %2881 = vpow2.f32 %v1492_v39 }
 0x408   : > { %4262 = vst [vmem:[#allocation41_spill] sm:$0xff] %v3893_v5  ;;  %v3895_v62 = vpop.eup %2871  ;;  %2883 = vpow2.f32 %v1494_v50 }
 0x409   : > { %v3897_v11 = vpop.eup %2873  ;;  %v1588_v25 = vadd.f32 %v3895_v62, %v3893_v5 }
 0x40a   : > { %4263 = vst [vmem:[#allocation42_spill] sm:$0xff] %v3897_v11  ;;  %v3901_v54 = vpop.eup %2875 }
 0x40b   : > { %4264 = vst [vmem:[#allocation43_spill] sm:$0xff] %v3901_v54  ;;  %1589 = vadd.xlane.f32.xlu1 %v1588_v25  ;;  %v1591_v24 = vadd.f32 %v3901_v54, %v3897_v11 }
 0x40d   : > { %1592 = vadd.xlane.f32.xlu0 %v1591_v24 }
 0x40f   : > { %v3905_v3 = vpop.eup %2877 }
 0x410   : > { %4265 = vst [vmem:[#allocation44_spill] sm:$0xff] %v3905_v3  ;;  %v3907_v19 = vpop.eup %2879 }
 0x411   : > { %4266 = vst [vmem:[#allocation45_spill] sm:$0xff] %v3907_v19  ;;  %v3909_v34 = vpop.eup %2881  ;;  %v1594_v50 = vadd.f32 %v3907_v19, %v3905_v3 }
 0x412   : > { %4267 = vst [vmem:[#allocation46_spill] sm:$0xff] %v3909_v34  ;;  %v3913_v49 = vpop.eup %2883 }
 0x413   : > { %4268 = vst [vmem:[#allocation47_spill] sm:$0xff] %v3913_v49  ;;  %1595 = vadd.xlane.f32.xlu1 %v1594_v50  ;;  %v1597_v53 = vadd.f32 %v3913_v49, %v3909_v34 }
 0x415   : > { %1598 = vadd.xlane.f32.xlu0 %v1597_v53 }
 0x448   : > { %v1530_v51 = vpop.xlane.xlu1 %1529 }
 0x449   : > { %2885 = vrcp.f32 %v1530_v51 }
 0x44a   : > { %v1533_v47 = vpop.xlane.xlu0 %1532 }
 0x44b   : > { %2887 = vrcp.f32 %v1533_v47 }
 0x44c   : > { %v1314_v39 = vpop.xlane.xlu1 %1313 }
 0x44d   : > { %v1384_v25 = vsub.f32 %v3662_v31, %v1314_v39  ;;  %v1385_v24 = vsub.f32 %v3665_v45, %v1314_v39 }
 0x44e   : > { %v1317_v5 = vpop.xlane.xlu0 %1316 }
 0x44f   : > { %v1496_v11 = vmul.f32 1.442695, %v1384_v25  ;;  %v1498_v54 = vmul.f32 1.442695, %v1385_v24  ;;  %v1386_v3 = vsub.f32 %v3676_v60, %v1317_v5  ;;  %v1387_v50 = vsub.f32 %v3679_v4, %v1317_v5 }
 0x450   : > { %v1536_v19 = vpop.xlane.xlu1 %1535 }
 0x451   : > { %2889 = vpow2.f32 %v1496_v11  ;;  %v1500_v34 = vmul.f32 1.442695, %v1386_v3  ;;  %v1502_v53 = vmul.f32 1.442695, %v1387_v50 }
 0x452   : > { %2891 = vpow2.f32 %v1498_v54 }
 0x453   : > { %v2886_v51 = vpop.eup %2885  ;;  %2893 = vpow2.f32 %v1500_v34 }
 0x454   : > { %2895 = vpow2.f32 %v1502_v53  ;;  %v1539_v47 = vpop.xlane.xlu0 %1538  ;;  %v1320_v49 = vpop.xlane.xlu1 %1319  ;;  %v1656_v45 = vmul.f32 %v2886_v51, %v3657_v16  ;;  %v1657_v5 = vmul.f32 %v2886_v51, %v3659_v21 }
 0x455   : > { %v2888_v31 = vpop.eup %2887  ;;  %2897 = vrcp.f32 %v1536_v19  ;;  %v1388_v39 = vsub.f32 %v3695_v61, %v1320_v49  ;;  %v1389_v60 = vsub.f32 %v3699_v37, %v1320_v49 }
 0x456   : > { %v1658_v4 = vmul.f32 %v2888_v31, %v3667_v13  ;;  %2899 = vrcp.f32 %v1539_v47  ;;  %v1659_v11 = vmul.f32 %v2888_v31, %v3673_v28 }
 0x457   : > { %v1504_v54 = vmul.f32 1.442695, %v1388_v39  ;;  %v1506_v3 = vmul.f32 1.442695, %v1389_v60 }
 0x458   : > { %v1323_v34 = vpop.xlane.xlu0 %1322  ;;  %v1542_v25 = vpop.xlane.xlu1 %1541  ;;  %v1721_v24 = vpack.c.bf16 %v1659_v11, %v1657_v5  ;;  %v1720_v50 = vpack.c.bf16 %v1658_v4, %v1656_v45 }
 0x459   : > { %2901 = vpow2.f32 %v1504_v54  ;;  %v1390_v16 = vsub.f32 %v3711_v40, %v1323_v34  ;;  %v1391_v61 = vsub.f32 %v3715_v30, %v1323_v34 }
 0x45a   : > { %2903 = vpow2.f32 %v1506_v3  ;;  %1800 = vmatprep.mubr.bf16.mxu0 %v1721_v24 }
 0x45b   : > { %v3929_v37 = vpop.eup %2889  ;;  %v1508_v13 = vmul.f32 1.442695, %v1390_v16  ;;  %v1510_v19 = vmul.f32 1.442695, %v1391_v61  ;;  %2905 = vrcp.f32 %v1542_v25  ;;  %1801 = vmatmul.mubr.bf16.vlgmr.msra.gmra.mrb[64].mxu0 %v1720_v50 }
 0x45c   : > { %v3931_v21 = vpop.eup %2891  ;;  %v1545_v28 = vpop.xlane.xlu0 %1544 }
 0x45d   : > { %v1326_v49 = vpop.xlane.xlu1 %1325  ;;  %v3933_v53 = vpop.eup %2893  ;;  %2907 = vpow2.f32 %v1508_v13  ;;  %v1600_v30 = vadd.f32 %v3931_v21, %v3929_v37 }
 0x45e   : > { %v1392_v51 = vsub.f32 %v3729_v9, %v1326_v49  ;;  %v1393_v40 = vsub.f32 %v3733_v48, %v1326_v49  ;;  %v3939_v47 = vpop.eup %2895  ;;  %2909 = vpow2.f32 %v1510_v19 }
 0x45f   : > { %v2898_v31 = vpop.eup %2897  ;;  %2911 = vrcp.f32 %v1545_v28  ;;  %1601 = vadd.xlane.f32.xlu1 %v1600_v30  ;;  %v1603_v60 = vadd.f32 %v3939_v47, %v3933_v53 }
 0x460   : > { %v1512_v45 = vmul.f32 1.442695, %v1392_v51  ;;  %v1514_v39 = vmul.f32 1.442695, %v1393_v40  ;;  %v2900_v4 = vpop.eup %2899  ;;  %v1329_v5 = vpop.xlane.xlu0 %1328  ;;  %v1661_v9 = vmul.f32 %v2898_v31, %v3691_v52  ;;  %v1660_v34 = vmul.f32 %v2898_v31, %v3687_v57 }
 0x461   : > { %v1548_v11 = vpop.xlane.xlu1 %1547  ;;  %1604 = vadd.xlane.f32.xlu0 %v1603_v60  ;;  %v1394_v48 = vsub.f32 %v3747_v36, %v1329_v5  ;;  %v1395_v54 = vsub.f32 %v3751_v2, %v1329_v5  ;;  %v1663_v3 = vmul.f32 %v2900_v4, %v3707_v33  ;;  %v1662_v25 = vmul.f32 %v2900_v4, %v3705_v23 }
 0x462   : > { %2913 = vpow2.f32 %v1512_v45 }
 0x463   : > { %2915 = vpow2.f32 %v1514_v39  ;;  %v3949_v24 = vpop.eup %2901  ;;  %v1516_v50 = vmul.f32 1.442695, %v1394_v48  ;;  %v1518_v16 = vmul.f32 1.442695, %v1395_v54  ;;  %v1723_v61 = vpack.c.bf16 %v1663_v3, %v1661_v9 }
 0x464   : > { %v3951_v13 = vpop.eup %2903  ;;  %2917 = vrcp.f32 %v1548_v11  ;;  %v1551_v52 = vpop.xlane.xlu0 %1550  ;;  %v1722_v36 = vpack.c.bf16 %v1662_v25, %v1660_v34 }
 0x465   : > { %v1332_v19 = vpop.xlane.xlu1 %1331  ;;  %v2906_v28 = vpop.eup %2905  ;;  %2919 = vpow2.f32 %v1516_v50  ;;  %1808 = vmatprep.mubr.bf16.mxu0 %v1723_v61  ;;  %v1606_v57 = vadd.f32 %v3951_v13, %v3949_v24 }
 0x466   : > { %v1396_v33 = vsub.f32 %v3765_v59, %v1332_v19  ;;  %v1397_v2 = vsub.f32 %v3769_v44, %v1332_v19  ;;  %2921 = vpow2.f32 %v1518_v16  ;;  %1809 = vmatmul.mubr.bf16.gmra.mrb[68].mxu0 %v1722_v36  ;;  %v1665_v31 = vmul.f32 %v2906_v28, %v3725_v63 }
 0x467   : > { %v3957_v23 = vpop.eup %2907  ;;  %2923 = vrcp.f32 %v1551_v52  ;;  %1607 = vadd.xlane.f32.xlu1 %v1606_v57  ;;  %v1664_v5 = vmul.f32 %v2906_v28, %v3723_v0 }
 0x468   : > { %v1520_v49 = vmul.f32 1.442695, %v1396_v33  ;;  %v1522_v51 = vmul.f32 1.442695, %v1397_v2  ;;  %v3959_v40 = vpop.eup %2909  ;;  %v1335_v30 = vpop.xlane.xlu0 %1334 }
 0x469   : > { %v2912_v59 = vpop.eup %2911  ;;  %v1398_v44 = vsub.f32 %v3783_v27, %v1335_v30  ;;  %v1399_v45 = vsub.f32 %v3787_v12, %v1335_v30  ;;  %v1554_v39 = vpop.xlane.xlu1 %1553  ;;  %v1609_v60 = vadd.f32 %v3959_v40, %v3957_v23 }
 0x46a   : > { %2925 = vpow2.f32 %v1520_v49  ;;  %v1667_v4 = vmul.f32 %v2912_v59, %v3743_v10  ;;  %v1666_v11 = vmul.f32 %v2912_v59, %v3741_v20 }
 0x46b   : > { %2927 = vpow2.f32 %v1522_v51  ;;  %v1524_v63 = vmul.f32 1.442695, %v1398_v44  ;;  %v1526_v48 = vmul.f32 1.442695, %v1399_v45  ;;  %1610 = vadd.xlane.f32.xlu0 %v1609_v60 }
 0x46c   : > { %v3969_v9 = vpop.eup %2913  ;;  %2929 = vrcp.f32 %v1554_v39  ;;  %v1557_v27 = vpop.xlane.xlu0 %1556  ;;  %v1725_v12 = vpack.c.bf16 %v1667_v4, %v1665_v31  ;;  %v1724_v3 = vpack.c.bf16 %v1666_v11, %v1664_v5 }
 0x46d   : > { %v3971_v54 = vpop.eup %2915  ;;  %2931 = vpow2.f32 %v1524_v63 }
 0x46e   : > { %v1612_v34 = vadd.f32 %v3971_v54, %v3969_v9  ;;  %v2918_v10 = vpop.eup %2917  ;;  %2933 = vpow2.f32 %v1526_v48  ;;  %1816 = vmatprep.mubr.bf16.mxu0 %v1725_v12 }
 0x46f   : > { %v3975_v0 = vpop.eup %2919  ;;  %2935 = vrcp.f32 %v1557_v27  ;;  %1817 = vmatmul.mubr.bf16.gmra.mrb[72].mxu0 %v1724_v3  ;;  %v1669_v61 = vmul.f32 %v2918_v10, %v3761_v8  ;;  %v1668_v19 = vmul.f32 %v2918_v10, %v3759_v55 }
 0x470   : > { %1613 = vadd.xlane.f32.xlu1 %v1612_v34  ;;  %v3977_v20 = vpop.eup %2921  ;;  %v1560_v25 = vpop.xlane.xlu1 %1559 }
 0x471   : > { %v2924_v50 = vpop.eup %2923  ;;  %v1615_v16 = vadd.f32 %v3977_v20, %v3975_v0  ;;  %2937 = vrcp.f32 %v1560_v25 }
 0x472   : > { %v1671_v52 = vmul.f32 %v2924_v50, %v3779_v6  ;;  %v1670_v36 = vmul.f32 %v2924_v50, %v3777_v41 }
 0x473   : > { %1616 = vadd.xlane.f32.xlu0 %v1615_v16 }
 0x474   : > { %v3985_v28 = vpop.eup %2925  ;;  %v1563_v2 = vpop.xlane.xlu0 %1562  ;;  %v1727_v57 = vpack.c.bf16 %v1671_v52, %v1669_v61  ;;  %v1726_v49 = vpack.c.bf16 %v1670_v36, %v1668_v19 }
 0x475   : > { %v3987_v33 = vpop.eup %2927  ;;  %2939 = vrcp.f32 %v1563_v2 }
 0x476   : > { %v1618_v51 = vadd.f32 %v3987_v33, %v3985_v28  ;;  %v2930_v8 = vpop.eup %2929  ;;  %1824 = vmatprep.mubr.bf16.mxu0 %v1727_v57  ;;  %v4269_v57 = vld [vmem:[#allocation36_spill] sm:$0xff] }
 0x477   : > { %v3991_v6 = vpop.eup %2931  ;;  %1825 = vmatmul.mubr.bf16.gmra.mrb[76].mxu0 %v1726_v49  ;;  %v1673_v59 = vmul.f32 %v2930_v8, %v3797_v43  ;;  %v1672_v45 = vmul.f32 %v2930_v8, %v3795_v15  ;;  %v4270_v49 = vld [vmem:[#allocation35_spill] sm:$0xff] }
 0x478   : > { %1619 = vadd.xlane.f32.xlu1 %v1618_v51  ;;  %v3993_v55 = vpop.eup %2933  ;;  %v1566_v41 = vpop.xlane.xlu1 %1565  ;;  %v4271_v51 = vld [vmem:[#allocation34_spill] sm:$0xff] }
 0x479   : > { %v2936_v30 = vpop.eup %2935  ;;  %v1621_v31 = vadd.f32 %v3993_v55, %v3991_v6  ;;  %2941 = vrcp.f32 %v1566_v41 }
 0x47a   : > { %v1675_v44 = vmul.f32 %v2936_v30, %v3807_v14  ;;  %v1674_v39 = vmul.f32 %v2936_v30, %v3805_v7 }
 0x47b   : > { %1622 = vadd.xlane.f32.xlu0 %v1621_v31  ;;  %v2938_v11 = vpop.eup %2937 }
 0x47c   : > { %v1569_v60 = vpop.xlane.xlu0 %1568  ;;  %v1729_v4 = vpack.c.bf16 %v1675_v44, %v1673_v59  ;;  %v1728_v5 = vpack.c.bf16 %v1674_v39, %v1672_v45  ;;  %v1677_v27 = vmul.f32 %v2938_v11, %v3815_v22  ;;  %v1676_v15 = vmul.f32 %v2938_v11, %v3813_v17  ;;  %v4272_v44 = vld [vmem:[#allocation38_spill] sm:$0xff]  ;;  %v4273_v39 = vld [vmem:[#allocation40_spill] sm:$0xff] }
 0x47d   : > { %2943 = vrcp.f32 %v1569_v60  ;;  %v4274_v60 = vld [vmem:[#allocation39_spill] sm:$0xff] }
 0x47e   : > { %1832 = vmatprep.mubr.bf16.mxu0 %v1729_v4 }
 0x47f   : > { %v2940_v63 = vpop.eup %2939  ;;  %1833 = vmatmul.mubr.bf16.gmra.mrb[80].mxu0 %v1728_v5  ;;  %v4275_v5 = vld [vmem:[#allocation37_spill] sm:$0xff] }
 0x480   : > { %v1572_v48 = vpop.xlane.xlu1 %1571  ;;  %v1679_v43 = vmul.f32 %v2940_v63, %v3823_v38  ;;  %v1678_v14 = vmul.f32 %v2940_v63, %v3821_v18 }
 0x481   : > { %2945 = vrcp.f32 %v1572_v48 }
 0x482   : > { %v1731_v7 = vpack.c.bf16 %v1679_v43, %v1677_v27  ;;  %v1730_v12 = vpack.c.bf16 %v1678_v14, %v1676_v15 }
 0x483   : > { %v2942_v34 = vpop.eup %2941 }
 0x484   : > { %v1575_v3 = vpop.xlane.xlu0 %1574  ;;  %1840 = vmatprep.mubr.bf16.mxu0 %v1731_v7  ;;  %v1681_v50 = vmul.f32 %v2942_v34, %v3831_v32  ;;  %v1680_v18 = vmul.f32 %v2942_v34, %v3829_v1 }
 0x485   : > { %2947 = vrcp.f32 %v1575_v3 }
 0x487   : > { %v2944_v10 = vpop.eup %2943  ;;  %1841 = vmatmul.mubr.bf16.gmra.mrb[84].mxu0 %v1730_v12 }
 0x488   : > { %v1578_v25 = vpop.xlane.xlu1 %1577  ;;  %v1683_v22 = vmul.f32 %v2944_v10, %v3839_v29  ;;  %v1682_v38 = vmul.f32 %v2944_v10, %v3837_v56 }
 0x489   : > { %2949 = vrcp.f32 %v1578_v25 }
 0x48a   : > { %v1733_v16 = vpack.c.bf16 %v1683_v22, %v1681_v50  ;;  %v1732_v17 = vpack.c.bf16 %v1682_v38, %v1680_v18 }
 0x48b   : > { %v2946_v52 = vpop.eup %2945 }
 0x48c   : > { %v1581_v61 = vpop.xlane.xlu0 %1580  ;;  %1848 = vmatprep.mubr.bf16.mxu0 %v1733_v16  ;;  %v1685_v2 = vmul.f32 %v2946_v52, %v3847_v42  ;;  %v1684_v56 = vmul.f32 %v2946_v52, %v4271_v51  ;;  %v4276_v16 = vld [vmem:[#allocation43_spill] sm:$0xff]  ;;  %v4281_v51 = vld [vmem:[#allocation46_spill] sm:$0xff] }
 0x48d   : > { %2951 = vrcp.f32 %v1581_v61 }
 0x48f   : > { %v2948_v19 = vpop.eup %2947  ;;  %1849 = vmatmul.mubr.bf16.gmra.mrb[88].mxu0 %v1732_v17 }
 0x490   : > { %v1584_v36 = vpop.xlane.xlu1 %1583  ;;  %v1687_v32 = vmul.f32 %v2948_v19, %v4269_v57  ;;  %v1686_v29 = vmul.f32 %v2948_v19, %v4270_v49  ;;  %v4278_v19 = vld [vmem:[#allocation41_spill] sm:$0xff]  ;;  %v4280_v49 = vld [vmem:[#allocation47_spill] sm:$0xff] }
 0x491   : > { %2953 = vrcp.f32 %v1584_v36  ;;  %v4279_v57 = vld [vmem:[#allocation45_spill] sm:$0xff] }
 0x492   : > { %v1735_v1 = vpack.c.bf16 %v1687_v32, %v1685_v2  ;;  %v1734_v41 = vpack.c.bf16 %v1686_v29, %v1684_v56  ;;  %v4282_v56 = vld [vmem:[#allocation44_spill] sm:$0xff] }
 0x493   : > { %v1587_v8 = vpop.xlane.xlu0 %1586  ;;  %v2950_v30 = vpop.eup %2949 }
 0x494   : > { %2955 = vrcp.f32 %v1587_v8  ;;  %1856 = vmatprep.mubr.bf16.mxu0 %v1735_v1  ;;  %v1689_v45 = vmul.f32 %v2950_v30, %v4272_v44  ;;  %v1688_v11 = vmul.f32 %v2950_v30, %v4275_v5 }
 0x497   : > { %v2952_v31 = vpop.eup %2951  ;;  %1857 = vmatmul.mubr.bf16.gmra.mrb[92].mxu0 %v1734_v41  ;;  %v1945_v41 = vld [vmem:[%s4111_s5] sm:$0x3] }
 0x498   : > { %v1590_v59 = vpop.xlane.xlu1 %1589  ;;  %v1691_v42 = vmul.f32 %v2952_v31, %v4273_v39  ;;  %v1690_v4 = vmul.f32 %v2952_v31, %v4274_v60  ;;  %2740 = vmatprep.subr.msk.bf16.mxu1 %vm404_vm0, %v1945_v41  ;;  %v1995_v30 = vsel %vm404_vm0, %v1945_v41, 0 }
 0x499   : > { %2957 = vrcp.f32 %v1590_v59  ;;  %2704 = vmatpush3.bf16.msra.mxu1 %v1995_v30 }
 0x49a   : > { %v1593_v63 = vpop.xlane.xlu0 %1592  ;;  %v1737_v48 = vpack.c.bf16 %v1691_v42, %v1689_v45  ;;  %v1736_v27 = vpack.c.bf16 %v1690_v4, %v1688_v11 }
 0x49b   : > { %2959 = vrcp.f32 %v1593_v63  ;;  %v2954_v43 = vpop.eup %2953 }
 0x49c   : > { %1864 = vmatprep.mubr.bf16.mxu0 %v1737_v48  ;;  %v1693_v15 = vmul.f32 %v2954_v43, %v3879_v26  ;;  %v1692_v50 = vmul.f32 %v2954_v43, %v3877_v58 }
 0x49e   : > { %v2956_v14 = vpop.eup %2955 }
 0x49f   : > { %1865 = vmatmul.mubr.bf16.gmra.mrb[96].mxu0 %v1736_v27  ;;  %v1695_v7 = vmul.f32 %v2956_v14, %v3887_v46  ;;  %v1694_v34 = vmul.f32 %v2956_v14, %v3881_v35  ;;  %v4277_v46 = vld [vmem:[#allocation42_spill] sm:$0xff] }
 0x4a0   : > { %v1596_v12 = vpop.xlane.xlu1 %1595 }
 0x4a1   : > { %2961 = vrcp.f32 %v1596_v12  ;;  %v1739_v3 = vpack.c.bf16 %v1695_v7, %v1693_v15  ;;  %v1738_v38 = vpack.c.bf16 %v1694_v34, %v1692_v50 }
 0x4a2   : > { %v1599_v10 = vpop.xlane.xlu0 %1598 }
 0x4a3   : > { %v2958_v25 = vpop.eup %2957  ;;  %2963 = vrcp.f32 %v1599_v10  ;;  %1872 = vmatprep.mubr.bf16.mxu0 %v1739_v3 }
 0x4a4   : > { %v1697_v18 = vmul.f32 %v2958_v25, %v3895_v62  ;;  %v1696_v35 = vmul.f32 %v2958_v25, %v4278_v19 }
 0x4a5   : > { %v2960_v22 = vpop.eup %2959 }
 0x4a6   : > { %v1699_v17 = vmul.f32 %v2960_v22, %v4276_v16  ;;  %v1698_v61 = vmul.f32 %v2960_v22, %v4277_v46 }
 0x4a7   : > { %1873 = vmatmul.mubr.bf16.gmra.mrb[100].mxu0 %v1738_v38 }
 0x4a8   : > { %v1741_v26 = vpack.c.bf16 %v1699_v17, %v1697_v18  ;;  %v1740_v2 = vpack.c.bf16 %v1698_v61, %v1696_v35 }
 0x4aa   : > { %1880 = vmatprep.mubr.bf16.mxu0 %v1741_v26 }
 0x4ab   : > { %v2962_v52 = vpop.eup %2961 }
 0x4ac   : > { %v1701_v32 = vmul.f32 %v2962_v52, %v4279_v57  ;;  %v1700_v1 = vmul.f32 %v2962_v52, %v4282_v56 }
 0x4ad   : > { %v2964_v36 = vpop.eup %2963 }
 0x4ae   : > { %v1703_v58 = vmul.f32 %v2964_v36, %v4280_v49  ;;  %v1702_v62 = vmul.f32 %v2964_v36, %v4281_v51 }
 0x4af   : > { %1881 = vmatmul.mubr.bf16.gmra.mrb[104].mxu0 %v1740_v2 }
 0x4b0   : > { %v1743_v29 = vpack.c.bf16 %v1703_v58, %v1701_v32  ;;  %v1742_v8 = vpack.c.bf16 %v1702_v62, %v1700_v1 }
 0x4b2   : > { %1888 = vmatprep.mubr.bf16.mxu0 %v1743_v29 }
 0x4b7   : > { %1889 = vmatmul.mubr.bf16.gmra.mrb[108].mxu0 %v1742_v8 }
 0x4ec   : > { %v1602_v31 = vpop.xlane.xlu1 %1601 }
 0x4ed   : > { %2965 = vrcp.f32 %v1602_v31 }
 0x4ee   : > { %v1605_v59 = vpop.xlane.xlu0 %1604 }
 0x4ef   : > { %2967 = vrcp.f32 %v1605_v59 }
 0x4f4   : > { %v1608_v44 = vpop.xlane.xlu1 %1607 }
 0x4f5   : > { %2969 = vrcp.f32 %v1608_v44 }
 0x4f7   : > { %v2966_v45 = vpop.eup %2965 }
 0x4f8   : > { %v1611_v39 = vpop.xlane.xlu0 %1610  ;;  %v1705_v60 = vmul.f32 %v2966_v45, %v3931_v21  ;;  %v1704_v5 = vmul.f32 %v2966_v45, %v3929_v37 }
 0x4f9   : > { %v2968_v42 = vpop.eup %2967  ;;  %2971 = vrcp.f32 %v1611_v39 }
 0x4fa   : > { %v1707_v4 = vmul.f32 %v2968_v42, %v3939_v47  ;;  %v1706_v11 = vmul.f32 %v2968_v42, %v3933_v53 }
 0x4fc   : > { %v1745_v48 = vpack.c.bf16 %v1707_v4, %v1705_v60  ;;  %v1744_v27 = vpack.c.bf16 %v1706_v11, %v1704_v5 }
 0x4fd   : > { %v1614_v63 = vpop.xlane.xlu1 %1613 }
 0x4fe   : > { %1896 = vmatprep.mubr.bf16.mxu0 %v1745_v48  ;;  %2973 = vrcp.f32 %v1614_v63 }
 0x4ff   : > { %1897 = vmatmul.mubr.bf16.gmra.mrb[112].mxu0 %v1744_v27  ;;  %v2970_v14 = vpop.eup %2969 }
 0x500   : > { %v1617_v43 = vpop.xlane.xlu0 %1616  ;;  %v1709_v12 = vmul.f32 %v2970_v14, %v3951_v13  ;;  %v1708_v47 = vmul.f32 %v2970_v14, %v3949_v24 }
 0x501   : > { %2975 = vrcp.f32 %v1617_v43 }
 0x503   : > { %v2972_v15 = vpop.eup %2971 }
 0x504   : > { %v1711_v21 = vmul.f32 %v2972_v15, %v3959_v40  ;;  %v1710_v37 = vmul.f32 %v2972_v15, %v3957_v23 }
 0x505   : > { %v1620_v7 = vpop.xlane.xlu1 %1619 }
 0x506   : > { %v1747_v53 = vpack.c.bf16 %v1711_v21, %v1709_v12  ;;  %v1746_v3 = vpack.c.bf16 %v1710_v37, %v1708_v47  ;;  %2977 = vrcp.f32 %v1620_v7 }
 0x508   : > { %v1623_v34 = vpop.xlane.xlu0 %1622  ;;  %1904 = vmatprep.mubr.bf16.mxu0 %v1747_v53  ;;  %v2974_v10 = vpop.eup %2973 }
 0x509   : > { %2979 = vrcp.f32 %v1623_v34  ;;  %1905 = vmatmul.mubr.bf16.gmra.mrb[116].mxu0 %v1746_v3  ;;  %v1713_v50 = vmul.f32 %v2974_v10, %v3971_v54  ;;  %v1712_v13 = vmul.f32 %v2974_v10, %v3969_v9 }
 0x50b   : > { %v2976_v25 = vpop.eup %2975 }
 0x50c   : > { %v1715_v22 = vmul.f32 %v2976_v25, %v3977_v20  ;;  %v1714_v40 = vmul.f32 %v2976_v25, %v3975_v0 }
 0x50e   : > { %v1749_v24 = vpack.c.bf16 %v1715_v22, %v1713_v50  ;;  %v1748_v38 = vpack.c.bf16 %v1714_v40, %v1712_v13 }
 0x510   : > { %1912 = vmatprep.mubr.bf16.mxu0 %v1749_v24  ;;  %v2978_v23 = vpop.eup %2977 }
 0x511   : > { %1913 = vmatmul.mubr.bf16.gmra.mrb[120].mxu0 %v1748_v38  ;;  %v1717_v16 = vmul.f32 %v2978_v23, %v3987_v33  ;;  %v1716_v26 = vmul.f32 %v2978_v23, %v3985_v28 }
 0x513   : > { %v2980_v18 = vpop.eup %2979 }
 0x514   : > { %v1719_v17 = vmul.f32 %v2980_v18, %v3993_v55  ;;  %v1718_v54 = vmul.f32 %v2980_v18, %v3991_v6 }
 0x516   : > { %v1751_v46 = vpack.c.bf16 %v1719_v17, %v1717_v16  ;;  %v1750_v20 = vpack.c.bf16 %v1718_v54, %v1716_v26 }
 0x518   : > { %1920 = vmatprep.mubr.bf16.mxu0 %v1751_v46 }
 0x519   : > { %1921 = vmatmul.mubr.bf16.gmra.mrb[124].mxu0 %v1750_v20 }
 0x52e   : > { %v2488_v9 = vpop.f32.mrb[64].mxu0 }
 0x52f   : > { %v2489_v0 = vpop.f32.mrb[65].mxu0 }
 0x530   : > { %v2490_v61 = vadd.f32 %v2489_v0, %v2488_v9  ;;  %v2491_v52 = vpop.f32.mrb[66].mxu0 }
 0x531   : > { %v2492_v19 = vpop.f32.mrb[67].mxu0 }
 0x532   : > { %v2493_v35 = vadd.f32 %v2492_v19, %v2491_v52 }
 0x534   : > { %v1929_v36 = vpack.c.bf16 %v2493_v35, %v2490_v61 }
 0x536   : > { %2705 = vmatprep.mubr.msk.bf16.mxu1 %vm355_vm1, %v1929_v36 }
 0x539   : > { %v2494_v33 = vpop.f32.mrb[68].mxu0 }
 0x53a   : > { %v2495_v2 = vpop.f32.mrb[69].mxu0 }
 0x53b   : > { %v2496_v55 = vadd.f32 %v2495_v2, %v2494_v33  ;;  %v2497_v57 = vpop.f32.mrb[70].mxu0 }
 0x53c   : > { %v2498_v28 = vpop.f32.mrb[71].mxu0 }
 0x53d   : > { %v2499_v32 = vadd.f32 %v2498_v28, %v2497_v57 }
 0x53f   : > { %v1930_v6 = vpack.c.bf16 %v2499_v32, %v2496_v55 }
 0x541   : > { %2706 = vmatmul.mubr.msk.bf16.vlgmr.msra.gmra.mrb[96].mxu1 %vm355_vm1, %v1930_v6 }
 0x542   : > { %v2500_v49 = vpop.f32.mrb[72].mxu0 }
 0x543   : > { %v2501_v58 = vpop.f32.mrb[73].mxu0 }
 0x544   : > { %v2502_v29 = vadd.f32 %v2501_v58, %v2500_v49  ;;  %v2503_v51 = vpop.f32.mrb[74].mxu0 }
 0x545   : > { %v2504_v62 = vpop.f32.mrb[75].mxu0 }
 0x546   : > { %v2505_v56 = vadd.f32 %v2504_v62, %v2503_v51 }
 0x548   : > { %v1931_v1 = vpack.c.bf16 %v2505_v56, %v2502_v29 }
 0x54a   : > { %v2506_v8 = vpop.f32.mrb[76].mxu0  ;;  %2709 = vmatprep.mubr.msk.bf16.mxu1 %vm355_vm1, %v1931_v1 }
 0x54b   : > { %v2507_v41 = vpop.f32.mrb[77].mxu0 }
 0x54c   : > { %v2508_v30 = vadd.f32 %v2507_v41, %v2506_v8  ;;  %v2509_v31 = vpop.f32.mrb[78].mxu0 }
 0x54d   : > { %v2510_v59 = vpop.f32.mrb[79].mxu0 }
 0x54e   : > { %v2511_v44 = vadd.f32 %v2510_v59, %v2509_v31 }
 0x550   : > { %v1932_v45 = vpack.c.bf16 %v2511_v44, %v2508_v30 }
 0x552   : > { %v2512_v39 = vpop.f32.mrb[80].mxu0  ;;  %2710 = vmatmul.mubr.msk.bf16.gmra.mrb[100].mxu1 %vm355_vm1, %v1932_v45 }
 0x553   : > { %v2513_v42 = vpop.f32.mrb[81].mxu0 }
 0x554   : > { %v2514_v60 = vadd.f32 %v2513_v42, %v2512_v39  ;;  %v2515_v4 = vpop.f32.mrb[82].mxu0 }
 0x555   : > { %v2516_v5 = vpop.f32.mrb[83].mxu0 }
 0x556   : > { %v2517_v11 = vadd.f32 %v2516_v5, %v2515_v4 }
 0x558   : > { %v1933_v63 = vpack.c.bf16 %v2517_v11, %v2514_v60 }
 0x55a   : > { %v2518_v48 = vpop.f32.mrb[84].mxu0  ;;  %2713 = vmatprep.mubr.msk.bf16.mxu1 %vm355_vm1, %v1933_v63 }
 0x55b   : > { %v2519_v27 = vpop.f32.mrb[85].mxu0 }
 0x55c   : > { %v2520_v43 = vadd.f32 %v2519_v27, %v2518_v48  ;;  %v2521_v14 = vpop.f32.mrb[86].mxu0 }
 0x55d   : > { %v2522_v15 = vpop.f32.mrb[87].mxu0 }
 0x55e   : > { %v2523_v7 = vadd.f32 %v2522_v15, %v2521_v14 }
 0x560   : > { %v1934_v12 = vpack.c.bf16 %v2523_v7, %v2520_v43 }
 0x562   : > { %v2524_v21 = vpop.f32.mrb[88].mxu0  ;;  %2714 = vmatmul.mubr.msk.bf16.gmra.mrb[104].mxu1 %vm355_vm1, %v1934_v12 }
 0x563   : > { %v2525_v47 = vpop.f32.mrb[89].mxu0 }
 0x564   : > { %v2526_v37 = vadd.f32 %v2525_v47, %v2524_v21  ;;  %v2527_v53 = vpop.f32.mrb[90].mxu0 }
 0x565   : > { %v2528_v3 = vpop.f32.mrb[91].mxu0 }
 0x566   : > { %v2529_v34 = vadd.f32 %v2528_v3, %v2527_v53 }
 0x568   : > { %v1935_v10 = vpack.c.bf16 %v2529_v34, %v2526_v37 }
 0x56a   : > { %v2530_v25 = vpop.f32.mrb[92].mxu0  ;;  %2717 = vmatprep.mubr.msk.bf16.mxu1 %vm355_vm1, %v1935_v10 }
 0x56b   : > { %v2531_v50 = vpop.f32.mrb[93].mxu0 }
 0x56c   : > { %v2532_v22 = vadd.f32 %v2531_v50, %v2530_v25  ;;  %v2533_v13 = vpop.f32.mrb[94].mxu0  ;;  %v4283_v50 = vld [vmem:[#allocation2_spill] sm:$0xff] }
 0x56d   : > { %v2534_v40 = vpop.f32.mrb[95].mxu0 }
 0x56e   : > { %v2535_v24 = vadd.f32 %v2534_v40, %v2533_v13 }
 0x570   : > { %v1936_v38 = vpack.c.bf16 %v2535_v24, %v2532_v22  ;;  %v4284_v24 = vld [vmem:[#allocation3_spill] sm:$0xff] }
 0x572   : > { %v2536_v23 = vpop.f32.mrb[96].mxu0  ;;  %2718 = vmatmul.mubr.msk.bf16.gmra.mrb[108].mxu1 %vm355_vm1, %v1936_v38 }
 0x573   : > { %v2537_v18 = vpop.f32.mrb[97].mxu0 }
 0x574   : > { %v2538_v16 = vadd.f32 %v2537_v18, %v2536_v23  ;;  %v2539_v17 = vpop.f32.mrb[98].mxu0  ;;  %v4285_v23 = vld [vmem:[#allocation4_spill] sm:$0xff] }
 0x575   : > { %v2540_v26 = vpop.f32.mrb[99].mxu0 }
 0x576   : > { %v2541_v54 = vadd.f32 %v2540_v26, %v2539_v17 }
 0x578   : > { %v1937_v46 = vpack.c.bf16 %v2541_v54, %v2538_v16  ;;  %v4286_v16 = vld [vmem:[#allocation5_spill] sm:$0xff] }
 0x57a   : > { %v2542_v20 = vpop.f32.mrb[100].mxu0  ;;  %2721 = vmatprep.mubr.msk.bf16.mxu1 %vm355_vm1, %v1937_v46  ;;  %v4287_v46 = vld [vmem:[#allocation6_spill] sm:$0xff] }
 0x57b   : > { %v2543_v9 = vpop.f32.mrb[101].mxu0 }
 0x57c   : > { %v2544_v0 = vadd.f32 %v2543_v9, %v2542_v20  ;;  %v2545_v61 = vpop.f32.mrb[102].mxu0 }
 0x57d   : > { %v2546_v52 = vpop.f32.mrb[103].mxu0 }
 0x57e   : > { %v2547_v19 = vadd.f32 %v2546_v52, %v2545_v61  ;;  %v4288_v61 = vld [vmem:[#allocation7_spill] sm:$0xff] }
 0x580   : > { %v1938_v35 = vpack.c.bf16 %v2547_v19, %v2544_v0  ;;  %v4289_v19 = vld [vmem:[#allocation8_spill] sm:$0xff] }
 0x582   : > { %v2548_v36 = vpop.f32.mrb[104].mxu0  ;;  %2722 = vmatmul.mubr.msk.bf16.gmra.mrb[112].mxu1 %vm355_vm1, %v1938_v35 }
 0x583   : > { %v2549_v33 = vpop.f32.mrb[105].mxu0 }
 0x584   : > { %v2550_v2 = vadd.f32 %v2549_v33, %v2548_v36  ;;  %v2551_v55 = vpop.f32.mrb[106].mxu0  ;;  %v4290_v36 = vld [vmem:[#allocation9_spill] sm:$0xff] }
 0x585   : > { %v2552_v57 = vpop.f32.mrb[107].mxu0 }
 0x586   : > { %v2553_v28 = vadd.f32 %v2552_v57, %v2551_v55  ;;  %v4291_v57 = vld [vmem:[#allocation10_spill] sm:$0xff] }
 0x588   : > { %v1939_v32 = vpack.c.bf16 %v2553_v28, %v2550_v2 }
 0x58a   : > { %v2554_v6 = vpop.f32.mrb[108].mxu0  ;;  %2725 = vmatprep.mubr.msk.bf16.mxu1 %vm355_vm1, %v1939_v32 }
 0x58b   : > { %v2555_v49 = vpop.f32.mrb[109].mxu0 }
 0x58c   : > { %v2556_v58 = vadd.f32 %v2555_v49, %v2554_v6  ;;  %v2557_v29 = vpop.f32.mrb[110].mxu0  ;;  %v4292_v49 = vld [vmem:[#allocation11_spill] sm:$0xff] }
 0x58d   : > { %v2558_v51 = vpop.f32.mrb[111].mxu0 }
 0x58e   : > { %v2559_v62 = vadd.f32 %v2558_v51, %v2557_v29  ;;  %v4293_v29 = vld [vmem:[#allocation12_spill] sm:$0xff] }
 0x590   : > { %v1940_v56 = vpack.c.bf16 %v2559_v62, %v2556_v58  ;;  %v4294_v62 = vld [vmem:[#allocation13_spill] sm:$0xff] }
 0x592   : > { %2726 = vmatmul.mubr.msk.bf16.gmra.mrb[116].mxu1 %vm355_vm1, %v1940_v56 }
 0x5d2   : > { %v2560_v1 = vpop.f32.mrb[112].mxu0 }
 0x5d3   : > { %v2561_v8 = vpop.f32.mrb[113].mxu0 }
 0x5d4   : > { %v2562_v41 = vadd.f32 %v2561_v8, %v2560_v1  ;;  %v2563_v30 = vpop.f32.mrb[114].mxu0 }
 0x5d5   : > { %v2564_v31 = vpop.f32.mrb[115].mxu0 }
 0x5d6   : > { %v2565_v59 = vadd.f32 %v2564_v31, %v2563_v30 }
 0x5d8   : > { %v1941_v44 = vpack.c.bf16 %v2565_v59, %v2562_v41  ;;  %v4295_v41 = vld [vmem:[#allocation14_spill] sm:$0xff] }
 0x5da   : > { %2729 = vmatprep.mubr.msk.bf16.mxu1 %vm355_vm1, %v1941_v44  ;;  %v4296_v44 = vld [vmem:[#allocation15_spill] sm:$0xff] }
 0x5dc   : > { %v2566_v45 = vpop.f32.mrb[116].mxu0 }
 0x5dd   : > { %v2567_v39 = vpop.f32.mrb[117].mxu0 }
 0x5de   : > { %v2568_v42 = vadd.f32 %v2567_v39, %v2566_v45  ;;  %v2569_v60 = vpop.f32.mrb[118].mxu0  ;;  %v4297_v39 = vld [vmem:[#allocation16_spill] sm:$0xff] }
 0x5df   : > { %v2570_v4 = vpop.f32.mrb[119].mxu0 }
 0x5e0   : > { %v2571_v5 = vadd.f32 %v2570_v4, %v2569_v60  ;;  %v4298_v60 = vld [vmem:[#allocation17_spill] sm:$0xff] }
 0x5e2   : > { %v1942_v11 = vpack.c.bf16 %v2571_v5, %v2568_v42 }
 0x5e4   : > { %v2572_v63 = vpop.f32.mrb[120].mxu0  ;;  %2730 = vmatmul.mubr.msk.bf16.gmra.mrb[120].mxu1 %vm355_vm1, %v1942_v11 }
 0x5e5   : > { %v2573_v48 = vpop.f32.mrb[121].mxu0 }
 0x5e6   : > { %v2574_v27 = vadd.f32 %v2573_v48, %v2572_v63  ;;  %v2575_v43 = vpop.f32.mrb[122].mxu0  ;;  %v4299_v63 = vld [vmem:[#allocation18_spill] sm:$0xff] }
 0x5e7   : > { %v2576_v14 = vpop.f32.mrb[123].mxu0 }
 0x5e8   : > { %v2577_v15 = vadd.f32 %v2576_v14, %v2575_v43  ;;  %v4300_v14 = vld [vmem:[#allocation19_spill] sm:$0xff] }
 0x5ea   : > { %v1943_v7 = vpack.c.bf16 %v2577_v15, %v2574_v27 }
 0x5ec   : > { %v2578_v12 = vpop.f32.mrb[124].mxu0  ;;  %2733 = vmatprep.mubr.msk.bf16.mxu1 %vm355_vm1, %v1943_v7  ;;  %v4301_v7 = vld [vmem:[#allocation20_spill] sm:$0xff] }
 0x5ed   : > { %v2579_v21 = vpop.f32.mrb[125].mxu0 }
 0x5ee   : > { %v2580_v47 = vadd.f32 %v2579_v21, %v2578_v12  ;;  %v2581_v37 = vpop.f32.mrb[126].mxu0  ;;  %v4302_v21 = vld [vmem:[#allocation21_spill] sm:$0xff] }
 0x5ef   : > { %v2582_v53 = vpop.f32.mrb[127].mxu0 }
 0x5f0   : > { %v2583_v3 = vadd.f32 %v2582_v53, %v2581_v37 }
 0x5f2   : > { %v1944_v34 = vpack.c.bf16 %v2583_v3, %v2580_v47  ;;  %v4303_v3 = vld [vmem:[#allocation22_spill] sm:$0xff] }
 0x5f4   : > { %2734 = vmatmul.mubr.msk.bf16.gmra.mrb[124].mxu1 %vm355_vm1, %v1944_v34 }
 0x614   : > { %v2707_v10 = vpop.f32.mrb[96].mxu1 }
 0x615   : > { %v2031_v25 = vpop.f32.mrb[97].mxu1  ;;  %v2160_v18 = vadd.f32 %v2707_v10, %v4285_v23 }
 0x616   : > { %v2158_v22 = vadd.f32 %v2031_v25, %v4283_v50  ;;  %v2708_v13 = vpop.f32.mrb[98].mxu1  ;;  %v4304_v50 = vld [vmem:[#allocation23_spill] sm:$0xff] }
 0x617   : > { %v2034_v40 = vpop.f32.mrb[99].mxu1  ;;  %v2161_v17 = vadd.f32 %v2708_v13, %v4286_v16  ;;  %v4305_v13 = vld [vmem:[#allocation24_spill] sm:$0xff]  ;;  %v4307_v16 = vld [vmem:[#allocation26_spill] sm:$0xff] }
 0x618   : > { %2190 = vxpose.xlu1.b32.start [1/16] (narrow) %v2158_v22, 8  ;;  %v2159_v38 = vadd.f32 %v2034_v40, %v4284_v24  ;;  %v4306_v24 = vld [vmem:[#allocation25_spill] sm:$0xff] }
 0x61c   : > { %2191 = vxpose.xlu1.b32.cont [2/16] (narrow) %v2159_v38, 8 }
 0x620   : > { %2192 = vxpose.xlu1.b32.cont [3/16] (narrow) %v2160_v18, 8 }
 0x624   : > { %2193 = vxpose.xlu1.b32.cont [4/16] (narrow) %v2161_v17, 8 }
 0x625   : > { %v2711_v26 = vpop.f32.mrb[100].mxu1 }
 0x626   : > { %v2047_v54 = vpop.f32.mrb[101].mxu1  ;;  %v2164_v35 = vadd.f32 %v2711_v26, %v4289_v19 }
 0x627   : > { %v2162_v20 = vadd.f32 %v2047_v54, %v4287_v46  ;;  %v2712_v9 = vpop.f32.mrb[102].mxu1  ;;  %v4308_v46 = vld [vmem:[#allocation27_spill] sm:$0xff] }
 0x628   : > { %v2050_v0 = vpop.f32.mrb[103].mxu1  ;;  %v2165_v33 = vadd.f32 %v2712_v9, %v4290_v36  ;;  %v4309_v9 = vld [vmem:[#allocation28_spill] sm:$0xff]  ;;  %v4311_v36 = vld [vmem:[#allocation30_spill] sm:$0xff] }
 0x629   : > { %2194 = vxpose.xlu1.b32.cont [5/16] (narrow) %v2162_v20, 8  ;;  %v2163_v52 = vadd.f32 %v2050_v0, %v4288_v61  ;;  %v4310_v61 = vld [vmem:[#allocation29_spill] sm:$0xff] }
 0x62d   : > { %2195 = vxpose.xlu1.b32.cont [6/16] (narrow) %v2163_v52, 8 }
 0x631   : > { %2196 = vxpose.xlu1.b32.cont [7/16] (narrow) %v2164_v35, 8 }
 0x635   : > { %2197 = vxpose.xlu1.b32.cont [8/16] (narrow) %v2165_v33, 8  ;;  %v2715_v2 = vpop.f32.mrb[104].mxu1 }
 0x636   : > { %v2063_v55 = vpop.f32.mrb[105].mxu1  ;;  %v2168_v51 = vadd.f32 %v2715_v2, %v4293_v29 }
 0x637   : > { %v2166_v28 = vadd.f32 %v2063_v55, %v4291_v57  ;;  %v2716_v32 = vpop.f32.mrb[106].mxu1  ;;  %v4312_v57 = vld [vmem:[#allocation31_spill] sm:$0xff] }
 0x638   : > { %v2066_v6 = vpop.f32.mrb[107].mxu1  ;;  %v2169_v56 = vadd.f32 %v2716_v32, %v4294_v62  ;;  %v4313_v32 = vld [vmem:[#allocation32_spill] sm:$0xff] }
 0x639   : > { %2198 = vxpose.xlu1.b32.cont [9/16] (narrow) %v2166_v28, 8  ;;  %v2167_v58 = vadd.f32 %v2066_v6, %v4292_v49  ;;  %v4314_v49 = vld [vmem:[#allocation33_spill] sm:$0xff] }
 0x63d   : > { %2199 = vxpose.xlu1.b32.cont [10/16] (narrow) %v2167_v58, 8 }
 0x641   : > { %2200 = vxpose.xlu1.b32.cont [11/16] (narrow) %v2168_v51, 8 }
 0x645   : > { %2201 = vxpose.xlu1.b32.cont [12/16] (narrow) %v2169_v56, 8  ;;  %v2719_v1 = vpop.f32.mrb[108].mxu1 }
 0x646   : > { %v2079_v8 = vpop.f32.mrb[109].mxu1  ;;  %v2172_v42 = vadd.f32 %v2719_v1, %v4297_v39 }
 0x647   : > { %v2170_v30 = vadd.f32 %v2079_v8, %v4295_v41  ;;  %v2720_v31 = vpop.f32.mrb[110].mxu1 }
 0x648   : > { %v2082_v59 = vpop.f32.mrb[111].mxu1  ;;  %v2173_v4 = vadd.f32 %v2720_v31, %v4298_v60 }
 0x649   : > { %2202 = vxpose.xlu1.b32.cont [13/16] (narrow) %v2170_v30, 8  ;;  %v2171_v45 = vadd.f32 %v2082_v59, %v4296_v44 }
 0x64d   : > { %2203 = vxpose.xlu1.b32.cont [14/16] (narrow) %v2171_v45, 8 }
 0x651   : > { %2204 = vxpose.xlu1.b32.cont [15/16] (narrow) %v2172_v42, 8 }
 0x655   : > { %2205 = vxpose.xlu1.b32.end [16/16] (narrow) %v2173_v4, 8  ;;  %v2723_v5 = vpop.f32.mrb[112].mxu1 }
 0x656   : > { %v2095_v11 = vpop.f32.mrb[113].mxu1  ;;  %v2176_v12 = vadd.f32 %v2723_v5, %v4301_v7 }
 0x657   : > { %v2174_v48 = vadd.f32 %v2095_v11, %v4299_v63  ;;  %v2724_v27 = vpop.f32.mrb[114].mxu1 }
 0x658   : > { %v2098_v43 = vpop.f32.mrb[115].mxu1  ;;  %v2177_v47 = vadd.f32 %v2724_v27, %v4302_v21 }
 0x659   : > { %2222 = vxpose.xlu0.b32.start [1/16] (narrow) %v2174_v48, 8  ;;  %v2175_v15 = vadd.f32 %v2098_v43, %v4300_v14 }
 0x65d   : > { %2223 = vxpose.xlu0.b32.cont [2/16] (narrow) %v2175_v15, 8 }
 0x661   : > { %2224 = vxpose.xlu0.b32.cont [3/16] (narrow) %v2176_v12, 8 }
 0x665   : > { %2225 = vxpose.xlu0.b32.cont [4/16] (narrow) %v2177_v47, 8  ;;  %v2727_v37 = vpop.f32.mrb[116].mxu1 }
 0x666   : > { %v2111_v53 = vpop.f32.mrb[117].mxu1  ;;  %v2180_v40 = vadd.f32 %v2727_v37, %v4305_v13 }
 0x667   : > { %v2178_v34 = vadd.f32 %v2111_v53, %v4303_v3  ;;  %v2728_v10 = vpop.f32.mrb[118].mxu1 }
 0x668   : > { %v2114_v25 = vpop.f32.mrb[119].mxu1  ;;  %v2181_v38 = vadd.f32 %v2728_v10, %v4306_v24 }
 0x669   : > { %2226 = vxpose.xlu0.b32.cont [5/16] (narrow) %v2178_v34, 8  ;;  %v2179_v22 = vadd.f32 %v2114_v25, %v4304_v50 }
 0x66d   : > { %2227 = vxpose.xlu0.b32.cont [6/16] (narrow) %v2179_v22, 8 }
 0x671   : > { %2228 = vxpose.xlu0.b32.cont [7/16] (narrow) %v2180_v40, 8 }
 0x675   : > { %2229 = vxpose.xlu0.b32.cont [8/16] (narrow) %v2181_v38, 8 }
 0x699   : > { %v2206_v29 = vpop.trf.xlu1 }
 0x6b7   : > { %v2731_v23 = vpop.f32.mrb[120].mxu1 }
 0x6b8   : > { %v2127_v18 = vpop.f32.mrb[121].mxu1  ;;  %v2184_v0 = vadd.f32 %v2731_v23, %v4309_v9 }
 0x6b9   : > { %v2182_v17 = vadd.f32 %v2127_v18, %v4307_v16  ;;  %v2732_v26 = vpop.f32.mrb[122].mxu1 }
 0x6ba   : > { %v2130_v54 = vpop.f32.mrb[123].mxu1  ;;  %v2185_v52 = vadd.f32 %v2732_v26, %v4310_v61 }
 0x6bb   : > { %2230 = vxpose.xlu0.b32.cont [9/16] (narrow) %v2182_v17, 8  ;;  %v2183_v20 = vadd.f32 %v2130_v54, %v4308_v46 }
 0x6bf   : > { %2231 = vxpose.xlu0.b32.cont [10/16] (narrow) %v2183_v20, 8 }
 0x6c3   : > { %2232 = vxpose.xlu0.b32.cont [11/16] (narrow) %v2184_v0, 8 }
 0x6c7   : > { %2233 = vxpose.xlu0.b32.cont [12/16] (narrow) %v2185_v52, 8  ;;  %v2735_v19 = vpop.f32.mrb[124].mxu1 }
 0x6c8   : > { %v2143_v35 = vpop.f32.mrb[125].mxu1  ;;  %v2188_v6 = vadd.f32 %v2735_v19, %v4313_v32 }
 0x6c9   : > { %v2186_v33 = vadd.f32 %v2143_v35, %v4311_v36  ;;  %v2736_v2 = vpop.f32.mrb[126].mxu1 }
 0x6ca   : > { %v2146_v55 = vpop.f32.mrb[127].mxu1  ;;  %v2189_v58 = vadd.f32 %v2736_v2, %v4314_v49 }
 0x6cb   : > { %2234 = vxpose.xlu0.b32.cont [13/16] (narrow) %v2186_v33, 8  ;;  %v2187_v28 = vadd.f32 %v2146_v55, %v4312_v57 }
 0x6cf   : > { %2235 = vxpose.xlu0.b32.cont [14/16] (narrow) %v2187_v28, 8 }
 0x6d3   : > { %2236 = vxpose.xlu0.b32.cont [15/16] (narrow) %v2188_v6, 8 }
 0x6d7   : > { %2237 = vxpose.xlu0.b32.end [16/16] (narrow) %v2189_v58, 8 }
 0x71b   : > { %v2238_v51 = vpop.trf.xlu0 }
 0x71c   : > { %v2256_v62 = vcombine.low %v2206_v29, %v2238_v51 }
 0x71e   : > { %2258 = vst [vmem:[%s268_s17] sm:$0xff] %v2256_v62 }
 0x71f PF: > { %s16_s21 = sadd.s32 1, %s2987_s21  }
 0x720   : > { %p13_p4 = scmp.ge.s32.totalorder %s16_s21, 4  }
 0x722   :  { %15 = sbr.rel (!%p13_p4) target bundleno = 1 (0x1), region = 77 }

// kernel: res_decoder_block_forward.2
= control target key start
LH: loop header
LB: loop body
LE: loop exit
PB: predicated region body
PF: predicated region fallthrough
CT: control target
= control target key end

     0   :  { %s3769_s25 = smov 0   ;;  %s4489_s0 = inlined_call_operand.vmem [shape: f32[2,4,290], index: 0, kind: input, shape index: {}]   ;;  %s4490_s1 = inlined_call_operand.vmem [shape: f32[2,4,290], index: 1, kind: input, shape index: {}]   ;;  %s4491_s2 = inlined_call_operand.vmem [shape: f32[3,256], index: 2, kind: input, shape index: {}]   ;;  %s4492_s3 = inlined_call_operand.vmem [shape: bf16[9,4,4], index: 3, kind: input, shape index: {}]   ;;  %s4493_s4 = inlined_call_operand.vmem [shape: f32[4,1], index: 4, kind: input, shape index: {}]   ;;  %s4494_s5 = inlined_call_operand.vmem [shape: bf16[9,4,4], index: 5, kind: input, shape index: {}]   ;;  %s4495_s6 = inlined_call_operand.vmem [shape: bf16[9,4,4], index: 6, kind: input, shape index: {}]   ;;  %s4496_s7 = inlined_call_operand.vmem [shape: f32[4,1], index: 7, kind: input, shape index: {}]   ;;  %s4497_s8 = inlined_call_operand.vmem [shape: bf16[4,4], index: 8, kind: input, shape index: {}]   ;;  %s4498_s9 = inlined_call_operand.vmem [shape: bf16[4,4], index: 9, kind: input, shape index: {}]   ;;  %s4499_s10 = inlined_call_operand.vmem [shape: f32[4,1], index: 10, kind: input, shape index: {}]   ;;  %s4500_s11 = inlined_call_operand.vmem [shape: bf16[9,4,4], index: 11, kind: input, shape index: {}]   ;;  %s4501_s12 = inlined_call_operand.vmem [shape: f32[4,1], index: 12, kind: input, shape index: {}]   ;;  %s4502_s13 = inlined_call_operand.vmem [shape: f32[2,4,256], index: 13, kind: output, shape index: {}]  }
   0x1 LB: > { %s3478_s26 = sadd.s32 4294967295, %s3681_s25   ;;  %p3482_p0 = scmp.ge.s32.totalorder %s3681_s25, 1  ;;  %s3681_s25 = sphi %s3769_s25, %s23_s25  }
   0x2   : > { %p397_p1 = scmp.lt.s32.totalorder %s3681_s25, 3 }
   0x4   : > { %p398_p2 = pnand %p3482_p0, %p397_p1 }
   0x5   : > { %v471_v0 = vlaneseq (!%p398_p2)  ;;  %p446_p3 = scmp.lt.s32.totalorder (!%p398_p2), %s3478_s26, 1  ;;  %v3492_v2 = vld [vmem:[%s4491_s2 + $0x2] ss:$4 sm:$0x3] (!%p398_p2)  ;;  %s3683_s18 = smov (!%p398_p2), 2   ;;  %v3689_v18 = vmov (!%p398_p2), 0  }
   0x6   : > { %401 = sbr.rel (%p398_p2) target bundleno = 1715 (0x6b3), region = 72  ;;  %v469_v3 = vld [vmem:[%s4491_s2] ss:$4 sm:$0x3] (!%p398_p2)  ;;  %s3684_s19 = smov (!%p398_p2), 18   ;;  %552 = vmatprep.mubr.bf16.mxu0 (!%p398_p2), %v3689_v18  ;;  %3670 = vset.pattern.permute.xlu1 (!%p398_p2), %v3689_v18  ;;  %vm628_vm0 = vcmask (!%p398_p2), 15360  }
   0x7   : > { %v472_v1 = vshrl.u32 (!%p398_p2), %v471_v0, 7  ;;  %s3685_s20 = smov (!%p398_p2), 16   ;;  %s3686_s21 = smov (!%p398_p2), 32   ;;  %1430 = vmatprep.mubr.bf16.mxu1 (!%p398_p2), %v3689_v18  ;;  %3671 = vset.pattern.permute.xlu0 (!%p398_p2), %v3689_v18  ;;  %vm711_vm1 = vcmask (!%p398_p2), 130048   ;;  %vm868_vm2 = vcmask (!%p398_p2), 146432   ;;  %vm506_vm3 = vcmask (!%p398_p2), 1039360  }
   0x8   : > { %s3687_s22 = smov (!%p398_p2), 34   ;;  %s3688_s23 = smov (!%p398_p2), 127   ;;  %vm513_vm4 = vcmask (!%p398_p2), 1041408   ;;  %v3487_v54 = vld [vmem:[%s4492_s3 + $0x2] sm:$0x3] (!%p398_p2)  ;;  %vm509_vm5 = vcmask (!%p398_p2), 31744  }
   0x9   : > { %v3783_v4 = vsub.s32 (!%p398_p2), 0, %v472_v1  ;;  %v3785_v5 = vsub.s32 (!%p398_p2), 1, %v472_v1  ;;  %s3690_s24 = smov (!%p398_p2), 126   ;;  %s4517_s27 = smov (!%p398_p2), 112   ;;  %vm4520_vm6 = vcmask (!%p398_p2), 261120   ;;  %vm4519_vm7 = vcmask (!%p398_p2), 277504  }
   0xa   : > { %s4513_s30 = smov (!%p398_p2), 111   ;;  %s4503_s28 = smov (!%p398_p2), 110   ;;  %vm651_vm8 = vcmask (!%p398_p2), 1031168   ;;  %vm734_vm9 = vcmask (!%p398_p2), 916480   ;;  %vm808_vm10 = vcmask (!%p398_p2), 908288   ;;  %vm4512_vm11 = vcmask (!%p398_p2), 900096  }
   0xb   : > { %v619_v6 = vrot.slane (!%p398_p2), %v3492_v2, %v3783_v4  ;;  %v623_v7 = vrot.slane (!%p398_p2), %v3492_v2, %v3785_v5  ;;  %v474_v8 = vrot.slane (!%p398_p2), %v469_v3, %v3783_v4  ;;  %v478_v9 = vrot.slane (!%p398_p2), %v469_v3, %v3785_v5  ;;  %v482_v2 = vld [vmem:[%s4492_s3] sm:$0x3] (!%p398_p2)  ;;  %s4507_s29 = smov (!%p398_p2), 96   ;;  %s4515_s15 = smov (!%p398_p2), 95  }
   0xc   : > { %s4505_s16 = smov (!%p398_p2), 94   ;;  %vm4510_vm12 = vcmask (!%p398_p2), 785408   ;;  %vm4511_vm13 = vcmask (!%p398_p2), 777216   ;;  %vm4509_vm14 = vcmask (!%p398_p2), 769024   ;;  %vm462_vm15 = vcmask (!%p398_p2), 134144  }
   0xd   : > { %s4556_s26 = smov (!%p446_p3, %s3478_s26), 1  ;;  %v624_v10 = vcombine.low %v619_v6, %v623_v7  ;;  %v479_v11 = vcombine.low %v474_v8, %v478_v9 }
   0xe   : > { %s3645_s14 = smul.u32 12, %s4556_s26 }
   0xf   : > { %625 = vrot.lane.b32.xlu0 %v624_v10, %s3683_s18  ;;  %865 = vrot.lane.b32.xlu1 %v624_v10, %s3684_s19 }
  0x10   : > { %s3799_s17 = scalar_lea.vmem %s4489_s0, %s3645_s14 }
  0x11   : > { %v3804_v12 = vld [vmem:[%s3799_s17] sm:$0xff]  ;;  %v488_v15 = vld [vmem:[%s3799_s17 + $0x8] sm:$0xf] }
  0x12   : > { %v3810_v13 = vpack.c.bf16 %v3804_v12, %v3804_v12  ;;  %v492_v14 = vcombine.high %v3804_v12, %v3804_v12  ;;  %v496_v16 = vpack.c.bf16 %v488_v15, %v488_v15  ;;  %v612_v23 = vld [vmem:[%s3799_s17 + $0x8] sm:$0xf]  ;;  %v481_v24 = vmul.f32 %v479_v11, %v3804_v12 }
  0x13   : > { %708 = vrot.lane.b32.xlu0 %v479_v11, %s3685_s20  ;;  %948 = vrot.lane.b32.xlu1 %v479_v11, %s3686_s21  ;;  %v707_v38 = vld [vmem:[%s3799_s17 + $0x8] sm:$0xf] }
  0x14   : > { %v3818_v17 = vpack.c.bf16 %v492_v14, %v492_v14  ;;  %v484_v37 = vcombine.high %v481_v24, %v481_v24  ;;  %v486_v48 = vpack.c.bf16 %v481_v24, %v481_v24  ;;  %v790_v58 = vld [vmem:[%s3799_s17 + $0x8] sm:$0xf] }
  0x15   : > { %v864_v60 = vld [vmem:[%s3799_s17 + $0x8] sm:$0xf]  ;;  %v798_v61 = vpack.c.bf16 %v790_v58, %v790_v58 }
  0x16   : > { %v487_v47 = vpack.c.bf16 %v484_v37, %v484_v37  ;;  %v565_v57 = vsel %vm513_vm4, %v486_v48, 0  ;;  %v947_v6 = vld [vmem:[%s3799_s17 + $0x8] sm:$0xf] }
  0x17   : > { %1105 = vrot.lane.b32.xlu0 %v624_v10, %s3687_s22  ;;  %500 = vrot.lane.b32.xlu1 %v3810_v13, %s3688_s23 }
  0x1b   : > { %504 = vrot.lane.b32.xlu1 %v496_v16, %s3688_s23  ;;  %502 = vrot.lane.b32.xlu0 %v3818_v17, %s3688_s23 }
  0x81   : > { %v626_v19 = vpop.permute.xlu0 %625  ;;  %v3827_v20 = vpop.permute.xlu1 %865 }
  0x82   : > { %v627_v21 = vrot.slane %v626_v19, 4  ;;  %v867_v39 = vrot.slane %v3827_v20, 4 }
  0x84   : > { %v629_v22 = vsel %vm628_vm0, %v627_v21, %v626_v19  ;;  %v633_v31 = vmul.f32 %v627_v21, %v612_v23  ;;  %v869_v49 = vsel %vm868_vm2, %v867_v39, %v3827_v20  ;;  %v873_v1 = vmul.f32 %v867_v39, %v864_v60  ;;  %v1030_v20 = vld [vmem:[%s3799_s17 + $0x8] sm:$0xf] }
  0x85   : > { %v632_v25 = vmul.f32 %v629_v22, %v3804_v12  ;;  %v709_v26 = vpop.permute.xlu0 %708  ;;  %v3833_v27 = vpop.permute.xlu1 %948  ;;  %v872_v56 = vmul.f32 %v869_v49, %v3804_v12  ;;  %v1104_v21 = vld [vmem:[%s3799_s17 + $0x8] sm:$0xf]  ;;  %v1038_v22 = vpack.c.bf16 %v1030_v20, %v1030_v20  ;;  %s4018_s17 = scalar_lea.vmem %s4490_s1, %s3645_s14  ;;  %s4523_s14 = smov 96  }
  0x86   : > { %v710_v28 = vrot.slane %v709_v26, 4  ;;  %v641_v40 = vpack.c.bf16 %v633_v31, %v633_v31  ;;  %v950_v53 = vrot.slane %v3833_v27, 4  ;;  %v881_v7 = vpack.c.bf16 %v873_v1, %v873_v1 }
  0x87   : > { %v639_v29 = vpack.c.bf16 %v632_v25, %v632_v25  ;;  %v637_v30 = vcombine.high %v632_v25, %v632_v25  ;;  %v877_v62 = vcombine.high %v872_v56, %v872_v56  ;;  %v879_v0 = vpack.c.bf16 %v872_v56, %v872_v56 }
  0x88   : > { %v712_v32 = vsel %vm711_vm1, %v710_v28, %v709_v26  ;;  %v716_v44 = vmul.f32 %v710_v28, %v707_v38  ;;  %v952_v59 = vsel %vm4520_vm6, %v950_v53, %v3833_v27  ;;  %v956_v11 = vmul.f32 %v950_v53, %v947_v6 }
  0x89   : > { %v715_v33 = vmul.f32 %v712_v32, %v3804_v12  ;;  %645 = vrot.lane.b32.xlu0 %v639_v29, %s3690_s24  ;;  %v640_v34 = vpack.c.bf16 %v637_v30, %v637_v30  ;;  %v3838_v35 = vpop.permute.xlu0 %1105  ;;  %v501_v36 = vpop.permute.xlu1 %500  ;;  %v955_v63 = vmul.f32 %v952_v59, %v3804_v12  ;;  %v880_v3 = vpack.c.bf16 %v877_v62, %v877_v62  ;;  %v3502_v59 = vld [vmem:[%s4492_s3 + $0xa] sm:$0x3] }
  0x8a   : > { %v724_v55 = vpack.c.bf16 %v716_v44, %v716_v44  ;;  %v1107_v9 = vrot.slane %v3838_v35, 4  ;;  %v964_v16 = vpack.c.bf16 %v956_v11, %v956_v11 }
  0x8b   : > { %647 = vrot.lane.b32.xlu1 %v640_v34, %s3690_s24  ;;  %v722_v41 = vpack.c.bf16 %v715_v33, %v715_v33  ;;  %v720_v42 = vcombine.high %v715_v33, %v715_v33  ;;  %v960_v8 = vcombine.high %v955_v63, %v955_v63  ;;  %v962_v10 = vpack.c.bf16 %v955_v63, %v955_v63  ;;  %v3493_v33 = vld [vmem:[%s4492_s3 + $0x4] sm:$0x3] }
  0x8c   : > { %v1109_v15 = vsel %vm4519_vm7, %v1107_v9, %v3838_v35  ;;  %v1113_v25 = vmul.f32 %v1107_v9, %v1104_v21 }
  0x8d   : > { %649 = vrot.lane.b32.xlu0 %v641_v40, %s3690_s24  ;;  %v723_v43 = vpack.c.bf16 %v720_v42, %v720_v42  ;;  %v505_v45 = vpop.permute.xlu1 %504  ;;  %v503_v46 = vpop.permute.xlu0 %502  ;;  %v963_v14 = vpack.c.bf16 %v960_v8, %v960_v8  ;;  %v1112_v19 = vmul.f32 %v1109_v15, %v3804_v12  ;;  %v3496_v42 = vld [vmem:[%s4492_s3 + $0x6] sm:$0x3] }
  0x8e   : > { %v508_v50 = vsel %vm506_vm3, %v503_v46, %v505_v45  ;;  %v507_v51 = vsel %vm506_vm3, %v501_v36, %v503_v46  ;;  %v1121_v12 = vpack.c.bf16 %v1113_v25, %v1113_v25 }
  0x8f   : > { %728 = vrot.lane.b32.xlu1 %v722_v41, %s4517_s27  ;;  %3488 = vmatprep.subr.msk.bf16.mxu0 %vm513_vm4, %v508_v50  ;;  %v515_v52 = vsel %vm513_vm4, %v507_v51, 0  ;;  %v1117_v23 = vcombine.high %v1112_v19, %v1112_v19  ;;  %v1119_v24 = vpack.c.bf16 %v1112_v19, %v1112_v19  ;;  %v3499_v51 = vld [vmem:[%s4492_s3 + $0x8] sm:$0x3] }
  0x90   : > { %521 = vmatpush1.bf16.msra.mxu0 %v515_v52 }
  0x91   : > { %730 = vrot.lane.b32.xlu0 %v723_v43, %s4517_s27  ;;  %3490 = vmatprep.subr.msk.bf16.mxu0 %vm513_vm4, %v487_v47  ;;  %v1120_v26 = vpack.c.bf16 %v1117_v23, %v1117_v23 }
  0x93   : > { %732 = vrot.lane.b32.xlu1 %v724_v55, %s4517_s27  ;;  %3489 = vmatmul.mubr.msk.bf16.vlgmr.msra.gmra.mrb[0].mxu0 %vm509_vm5, %v3487_v54 }
  0x94   : > { %571 = vmatpush1.bf16.msra.mxu0 %v565_v57  ;;  %602 = vmatprep.mubr.bf16.mxu0 %v3689_v18 }
  0x95   : > { %802 = vrot.lane.b32.xlu0 %v3810_v13, %s4513_s30 }
  0x97   : > { %804 = vrot.lane.b32.xlu1 %v3818_v17, %s4513_s30 }
  0x99   : > { %806 = vrot.lane.b32.xlu0 %v798_v61, %s4513_s30 }
  0x9b   : > { %885 = vrot.lane.b32.xlu1 %v879_v0, %s4503_s28  ;;  %3491 = vmatmul.mubr.msk.bf16.vlgmr.msra.gmra.mrb[4].mxu0 %vm509_vm5, %v482_v2 }
  0x9c   : > { %695 = vmatprep.mubr.bf16.mxu0 %v3689_v18 }
  0x9d   : > { %887 = vrot.lane.b32.xlu0 %v880_v3, %s4503_s28  ;;  %v3505_v3 = vld [vmem:[%s4492_s3 + $0xc] sm:$0x3] }
  0x9f   : > { %889 = vrot.lane.b32.xlu1 %v881_v7, %s4503_s28  ;;  %s3698_s28 = smov 17  }
  0xa1   : > { %968 = vrot.lane.b32.xlu0 %v962_v10, %s4507_s29  ;;  %v3508_v10 = vld [vmem:[%s4492_s3 + $0xe] sm:$0x3] }
  0xa3   : > { %970 = vrot.lane.b32.xlu1 %v963_v14, %s4507_s29  ;;  %v3511_v14 = vld [vmem:[%s4492_s3 + $0x10] sm:$0x3] }
  0xa5   : > { %972 = vrot.lane.b32.xlu0 %v964_v16, %s4507_s29  ;;  %s4524_s29 = smov 110  }
  0xa7   : > { %1042 = vrot.lane.b32.xlu1 %v3810_v13, %s4515_s15  ;;  %v1186_v13 = vld [vmem:[%s4493_s4] sm:$0xf] }
  0xa9   : > { %1044 = vrot.lane.b32.xlu0 %v3818_v17, %s4515_s15 }
  0xab   : > { %1046 = vrot.lane.b32.xlu1 %v1038_v22, %s4515_s15 }
  0xad   : > { %1125 = vrot.lane.b32.xlu0 %v1119_v24, %s4505_s16 }
  0xaf   : > { %1127 = vrot.lane.b32.xlu1 %v1120_v26, %s4505_s16 }
  0xb1   : > { %1129 = vrot.lane.b32.xlu0 %v1121_v12, %s4505_s16  ;;  %v3519_v12 = vld [vmem:[%s4491_s2 + $0x2] ss:$4 sm:$0x3]  ;;  %s4525_s16 = smov 94  }
  0xb3   : > { %1189 = vperm.xlu1 %3670, %v1186_v13   ;;  %v1356_v13 = vrot.slane %v3519_v12, %v3783_v4 }
  0xfb   : > { %v646_v27 = vpop.permute.xlu0 %645 }
  0xfd   : > { %v648_v17 = vpop.permute.xlu1 %647 }
  0xfe   : > { %v652_v28 = vsel %vm651_vm8, %v646_v27, %v648_v17  ;;  %v1360_v27 = vrot.slane %v3519_v12, %v3785_v5 }
  0xff   : > { %v650_v29 = vpop.permute.xlu0 %649  ;;  %v658_v32 = vsel %vm513_vm4, %v652_v28, 0  ;;  %v3697_v28 = vmov 0.0  }
 0x100   : > { %v653_v30 = vsel %vm651_vm8, %v648_v17, %v650_v29  ;;  %v1361_v17 = vcombine.low %v1356_v13, %v1360_v27  ;;  %463 = vst.msk [vmem:[#allocation2] sm:$0xf] %vm462_vm15, %v3697_v28  ;;  %466 = vst.msk [vmem:[#allocation3] sm:$0xf] %vm462_vm15, %v3697_v28 }
 0x101   : > { %v729_v31 = vpop.permute.xlu1 %728  ;;  %3494 = vmatprep.subr.msk.bf16.mxu0 %vm513_vm4, %v653_v30 }
 0x102   : > { %664 = vmatpush1.bf16.msra.mxu0 %v658_v32  ;;  %1362 = vrot.lane.b32.xlu1 %v1361_v17, %s3683_s18 }
 0x103   : > { %v731_v34 = vpop.permute.xlu0 %730 }
 0x104   : > { %v735_v35 = vsel %vm734_vm9, %v729_v31, %v731_v34 }
 0x105   : > { %v733_v36 = vpop.permute.xlu1 %732  ;;  %3495 = vmatmul.mubr.msk.bf16.vlgmr.msra.gmra.mrb[8].mxu0 %vm509_vm5, %v3493_v33  ;;  %v741_v39 = vsel %vm513_vm4, %v735_v35, 0 }
 0x106   : > { %v736_v37 = vsel %vm734_vm9, %v731_v34, %v733_v36  ;;  %778 = vmatprep.mubr.bf16.mxu0 %v3689_v18  ;;  %1597 = vrot.lane.b32.xlu1 %v1361_v17, %s3684_s19 }
 0x107   : > { %v803_v38 = vpop.permute.xlu0 %802  ;;  %3497 = vmatprep.subr.msk.bf16.mxu0 %vm513_vm4, %v736_v37 }
 0x108   : > { %747 = vmatpush1.bf16.msra.mxu0 %v741_v39 }
 0x109   : > { %v805_v40 = vpop.permute.xlu1 %804 }
 0x10a   : > { %v809_v41 = vsel %vm808_vm10, %v803_v38, %v805_v40  ;;  %1832 = vrot.lane.b32.xlu1 %v1361_v17, %s3687_s22 }
 0x10b   : > { %v807_v43 = vpop.permute.xlu0 %806  ;;  %v815_v44 = vsel %vm513_vm4, %v809_v41, 0 }
 0x10c   : > { %v810_v45 = vsel %vm808_vm10, %v805_v40, %v807_v43 }
 0x10d   : > { %3498 = vmatmul.mubr.msk.bf16.vlgmr.msra.gmra.mrb[12].mxu0 %vm509_vm5, %v3496_v42  ;;  %3500 = vmatprep.subr.msk.bf16.mxu0 %vm513_vm4, %v810_v45  ;;  %v886_v46 = vpop.permute.xlu1 %885 }
 0x10e   : > { %821 = vmatpush1.bf16.msra.mxu0 %v815_v44  ;;  %852 = vmatprep.mubr.bf16.mxu0 %v3689_v18 }
 0x10f   : > { %v888_v47 = vpop.permute.xlu0 %887 }
 0x110   : > { %v892_v48 = vsel %vm4512_vm11, %v886_v46, %v888_v47 }
 0x111   : > { %v890_v49 = vpop.permute.xlu1 %889  ;;  %v898_v52 = vsel %vm513_vm4, %v892_v48, 0 }
 0x112   : > { %v893_v50 = vsel %vm4512_vm11, %v888_v47, %v890_v49 }
 0x113   : > { %3503 = vmatprep.subr.msk.bf16.mxu0 %vm513_vm4, %v893_v50  ;;  %v969_v53 = vpop.permute.xlu0 %968 }
 0x115   : > { %3501 = vmatmul.mubr.msk.bf16.vlgmr.msra.gmra.mrb[16].mxu0 %vm509_vm5, %v3499_v51  ;;  %v971_v54 = vpop.permute.xlu1 %970 }
 0x116   : > { %904 = vmatpush1.bf16.msra.mxu0 %v898_v52  ;;  %935 = vmatprep.mubr.bf16.mxu0 %v3689_v18  ;;  %v975_v56 = vsel %vm4510_vm12, %v969_v53, %v971_v54 }
 0x117   : > { %v973_v55 = vpop.permute.xlu0 %972  ;;  %v981_v60 = vsel %vm513_vm4, %v975_v56, 0 }
 0x118   : > { %v976_v57 = vsel %vm4510_vm12, %v971_v54, %v973_v55  ;;  %vm1205_vm12 = vcmask 1047556  }
 0x119   : > { %3506 = vmatprep.subr.msk.bf16.mxu0 %vm513_vm4, %v976_v57  ;;  %v1043_v58 = vpop.permute.xlu1 %1042 }
 0x11b   : > { %v1045_v61 = vpop.permute.xlu0 %1044 }
 0x11c   : > { %v1049_v1 = vsel %vm4511_vm13, %v1043_v58, %v1045_v61 }
 0x11d   : > { %3504 = vmatmul.mubr.msk.bf16.vlgmr.msra.gmra.mrb[20].mxu0 %vm509_vm5, %v3502_v59  ;;  %v1047_v62 = vpop.permute.xlu1 %1046  ;;  %v1055_v6 = vsel %vm513_vm4, %v1049_v1, 0 }
 0x11e   : > { %987 = vmatpush1.bf16.msra.mxu0 %v981_v60  ;;  %v1050_v63 = vsel %vm4511_vm13, %v1045_v61, %v1047_v62  ;;  %1018 = vmatprep.mubr.bf16.mxu0 %v3689_v18  ;;  %vm1200_vm13 = vcmask 138240  }
 0x11f   : > { %3509 = vmatprep.subr.msk.bf16.mxu0 %vm513_vm4, %v1050_v63  ;;  %v1126_v0 = vpop.permute.xlu0 %1125 }
 0x121   : > { %v1128_v2 = vpop.permute.xlu1 %1127 }
 0x122   : > { %v1132_v9 = vsel %vm4509_vm14, %v1126_v0, %v1128_v2 }
 0x123   : > { %v1130_v7 = vpop.permute.xlu0 %1129  ;;  %v1138_v11 = vsel %vm513_vm4, %v1132_v9, 0 }
 0x124   : > { %v1133_v8 = vsel %vm4509_vm14, %v1128_v2, %v1130_v7  ;;  %vm464_vm14 = vcmask 273544   ;;  %v1210_v7 = vld [vmem:[%s4491_s2] ss:$4 sm:$0x3] }
 0x125   : > { %3507 = vmatmul.mubr.msk.bf16.vlgmr.msra.gmra.mrb[24].mxu0 %vm509_vm5, %v3505_v3  ;;  %465 = vst.msk [vmem:[#allocation2 + $0x8] sm:$0xf] %vm464_vm14, %v3697_v28  ;;  %467 = vst.msk [vmem:[#allocation3 + $0x8] sm:$0xf] %vm464_vm14, %v3697_v28  ;;  %vm1204_vm14 = vcmask 1043592  }
 0x126   : > { %1061 = vmatpush1.bf16.msra.mxu0 %v1055_v6  ;;  %1092 = vmatprep.mubr.bf16.mxu0 %v3689_v18  ;;  %vm3992_vm11 = vmor %vm1205_vm12, %vm1204_vm14  ;;  %vm4526_vm12 = vcmask 900096  }
 0x127   : > { %3512 = vmatprep.subr.msk.bf16.mxu0 %vm513_vm4, %v1133_v8  ;;  %vm4527_vm14 = vmmov %vm4526_vm12 }
 0x12d   : > { %3510 = vmatmul.mubr.msk.bf16.vlgmr.msra.gmra.mrb[28].mxu0 %vm509_vm5, %v3508_v10 }
 0x12e   : > { %1144 = vmatpush1.bf16.msra.mxu0 %v1138_v11  ;;  %1175 = vmatprep.mubr.bf16.mxu0 %v3689_v18 }
 0x132   : > { %v1190_v2 = vpop.permute.xlu1 %1189 }
 0x135   : > { %3513 = vmatmul.mubr.msk.bf16.vlgmr.msra.gmra.mrb[32].mxu0 %vm509_vm5, %v3511_v14 }
 0x136   : > { %1290 = vmatprep.mubr.bf16.mxu0 %v3689_v18 }
 0x166   : > { %v554_v15 = vpop.f32.mrb[0].mxu0 }
 0x167   : > { %v556_v16 = vpop.f32.mrb[1].mxu0 }
 0x168   : > { %v558_v19 = vpop.f32.mrb[2].mxu0 }
 0x169   : > { %v559_v20 = vpop.f32.mrb[3].mxu0 }
 0x16e   : > { %v604_v21 = vpop.f32.mrb[4].mxu0 }
 0x16f   : > { %v605_v22 = vadd.f32 %v604_v21, %v554_v15  ;;  %v606_v23 = vpop.f32.mrb[5].mxu0  ;;  %v1215_v15 = vrot.slane %v1210_v7, %v3783_v4 }
 0x170   : > { %v607_v24 = vadd.f32 %v606_v23, %v556_v16  ;;  %v608_v25 = vpop.f32.mrb[6].mxu0  ;;  %v1219_v16 = vrot.slane %v1210_v7, %v3785_v5 }
 0x171   : > { %v609_v26 = vpop.f32.mrb[7].mxu0 }
 0x172   : > { %v3986_v20 = vcombine.low %v1215_v15, %v1219_v16 }
 0x174   : > { %v1363_v26 = vpop.permute.xlu1 %1362 }
 0x175   : > { %v4000_v27 = vrot.slane %v1363_v26, 4 }
 0x1d8   : > { %v697_v29 = vpop.f32.mrb[8].mxu0 }
 0x1d9   : > { %v704_v30 = vadd.f32 %v697_v29, %v605_v22  ;;  %v699_v31 = vpop.f32.mrb[9].mxu0 }
 0x1da   : > { %v705_v32 = vadd.f32 %v699_v31, %v607_v24  ;;  %v701_v33 = vpop.f32.mrb[10].mxu0 }
 0x1db   : > { %v702_v34 = vpop.f32.mrb[11].mxu0 }
 0x1e0   : > { %v780_v35 = vpop.f32.mrb[12].mxu0 }
 0x1e1   : > { %v787_v36 = vadd.f32 %v780_v35, %v704_v30  ;;  %v782_v37 = vpop.f32.mrb[13].mxu0 }
 0x1e2   : > { %v788_v38 = vadd.f32 %v782_v37, %v705_v32  ;;  %v784_v39 = vpop.f32.mrb[14].mxu0 }
 0x1e3   : > { %v785_v40 = vpop.f32.mrb[15].mxu0 }
 0x1e8   : > { %v854_v41 = vpop.f32.mrb[16].mxu0 }
 0x1e9   : > { %v861_v42 = vadd.f32 %v854_v41, %v787_v36  ;;  %v856_v43 = vpop.f32.mrb[17].mxu0 }
 0x1ea   : > { %v862_v44 = vadd.f32 %v856_v43, %v788_v38  ;;  %v858_v45 = vpop.f32.mrb[18].mxu0  ;;  %v1598_v38 = vpop.permute.xlu1 %1597  ;;  %v2343_v43 = vld [vmem:[%s4018_s17 + $0x8] sm:$0xf] }
 0x1eb   : > { %v859_v46 = vpop.f32.mrb[19].mxu0  ;;  %v4020_v39 = vrot.slane %v1598_v38, 4 }
 0x1f0   : > { %v937_v47 = vpop.f32.mrb[20].mxu0 }
 0x1f1   : > { %v944_v48 = vadd.f32 %v937_v47, %v861_v42  ;;  %v939_v49 = vpop.f32.mrb[21].mxu0 }
 0x1f2   : > { %v945_v50 = vadd.f32 %v939_v49, %v862_v44  ;;  %v941_v51 = vpop.f32.mrb[22].mxu0 }
 0x1f3   : > { %v942_v52 = vpop.f32.mrb[23].mxu0 }
 0x1f8   : > { %v1020_v53 = vpop.f32.mrb[24].mxu0 }
 0x1f9   : > { %v1027_v54 = vadd.f32 %v1020_v53, %v944_v48  ;;  %v1022_v55 = vpop.f32.mrb[25].mxu0 }
 0x1fa   : > { %v1028_v56 = vadd.f32 %v1022_v55, %v945_v50  ;;  %v1024_v57 = vpop.f32.mrb[26].mxu0  ;;  %v1365_v50 = vsel %vm628_vm0, %v4000_v27, %v1363_v26 }
 0x1fb   : > { %v1025_v58 = vpop.f32.mrb[27].mxu0  ;;  %v1833_v57 = vpop.permute.xlu1 %1832 }
 0x200   : > { %v1094_v59 = vpop.f32.mrb[28].mxu0 }
 0x201   : > { %v1101_v60 = vadd.f32 %v1094_v59, %v1027_v54  ;;  %v1096_v61 = vpop.f32.mrb[29].mxu0 }
 0x202   : > { %v1102_v62 = vadd.f32 %v1096_v61, %v1028_v56  ;;  %v1098_v63 = vpop.f32.mrb[30].mxu0  ;;  %v4048_v61 = vsel %vm868_vm2, %v4020_v39, %v1598_v38 }
 0x203   : > { %v1099_v0 = vpop.f32.mrb[31].mxu0 }
 0x208   : > { %v1177_v1 = vpop.f32.mrb[32].mxu0 }
 0x209   : > { %v1184_v3 = vadd.f32 %v1177_v1, %v1101_v60  ;;  %v1179_v6 = vpop.f32.mrb[33].mxu0 }
 0x20a   : > { %v1185_v8 = vadd.f32 %v1179_v6, %v1102_v62  ;;  %v1181_v9 = vpop.f32.mrb[34].mxu0  ;;  %v4050_v62 = vrot.slane %v1833_v57, 4 }
 0x20b   : > { %v3977_v10 = vadd.f32 %v1190_v2, %v1184_v3  ;;  %v1182_v11 = vpop.f32.mrb[35].mxu0 }
 0x20c   : > { %v3979_v14 = vadd.f32 %v1190_v2, %v1185_v8  ;;  %v4058_v1 = vsel %vm4519_vm7, %v4050_v62, %v1833_v57  ;;  %vm4528_vm7 = vcmask 777216  }
 0x20e   : > { %v1196_v19 = vcombine.low %v3977_v10, %v3979_v14 }
 0x210   : > { %1197 = vrot.lane.b32.xlu0 %v1196_v19, %s3698_s28 }
 0x214   : > { %1443 = vrot.lane.b32.xlu0 %v3986_v20, %s3685_s20 }
 0x218   : > { %1678 = vrot.lane.b32.xlu0 %v3986_v20, %s3686_s21 }
 0x282   : > { %v1198_v21 = vpop.permute.xlu0 %1197 }
 0x283   : > { %v1199_v23 = vrot.slane %v1198_v21, 4 }
 0x285   : > { %v1201_v24 = vsel %vm1200_vm13, %v1199_v23, %v1198_v21  ;;  %1208 = vst.msk [vmem:[#allocation2 + $0x8] sm:$0xf] %vm462_vm15, %v1199_v23  ;;  %v4070_v23 = vld [vmem:[%s4018_s17] sm:$0xff] }
 0x286   : > { %1207 = vst.msk [vmem:[#allocation2] sm:$0xff] %vm3992_vm11, %v1201_v24  ;;  %v1444_v25 = vpop.permute.xlu0 %1443  ;;  %v4076_v24 = vpack.c.bf16 %v4070_v23, %v4070_v23 }
 0x287   : > { %v4006_v32 = vrot.slane %v1444_v25, 4 }
 0x289   : > { %v1446_v51 = vsel %vm711_vm1, %v4006_v32, %v1444_v25  ;;  %v1972_v25 = vld [vmem:[%s4018_s17 + $0x8] sm:$0xf] }
 0x28a   : > { %v1679_v30 = vpop.permute.xlu0 %1678  ;;  %v2121_v38 = vmul.f32 %v4070_v23, %v1446_v51 }
 0x28b   : > { %v1680_v33 = vrot.slane %v1679_v30, 4 }
 0x28c   : > { %v1523_v12 = vld [vmem:[#allocation2 + $0x8] sm:$0xf] }
 0x28d   : > { %v1229_v13 = vld [vmem:[#allocation2 + $0x8] sm:$0xf]  ;;  %v1531_v17 = vpack.c.bf16 %v1523_v12, %v1523_v12  ;;  %v4002_v29 = vld [vmem:[#allocation2] sm:$0xff]  ;;  %v4026_v45 = vmul.f32 %v2343_v43, %v1680_v33  ;;  %v4040_v56 = vsel %vm4520_vm6, %v1680_v33, %v1679_v30  ;;  %vm4529_vm6 = vmmov %vm4528_vm7 }
 0x28e   : > { %v1237_v28 = vpack.c.bf16 %v1229_v13, %v1229_v13  ;;  %v1350_v31 = vld [vmem:[#allocation2 + $0x8] sm:$0xf]  ;;  %v1529_v34 = vpack.c.bf16 %v4002_v29, %v4002_v29  ;;  %v1233_v49 = vcombine.high %v4002_v29, %v4002_v29  ;;  %v1449_v52 = vmul.f32 %v4002_v29, %v1446_v51 }
 0x28f   : > { %1539 = vrot.lane.b32.xlu1 %v1531_v17, %s4513_s30  ;;  %v1369_v35 = vmul.f32 %v4000_v27, %v1350_v31  ;;  %v1442_v36 = vld [vmem:[#allocation2 + $0x8] sm:$0xf]  ;;  %v1368_v55 = vmul.f32 %v4002_v29, %v1365_v50  ;;  %v1684_v58 = vmul.f32 %v4040_v56, %v4002_v29  ;;  %v1603_v63 = vmul.f32 %v4048_v61, %v4002_v29 }
 0x290   : > { %1245 = vrot.lane.b32.xlu0 %v1237_v28, %s3688_s23  ;;  %v1677_v37 = vld [vmem:[#allocation2 + $0x8] sm:$0xf]  ;;  %v1450_v41 = vmul.f32 %v4006_v32, %v1442_v36  ;;  %v1236_v54 = vpack.c.bf16 %v1233_v49, %v1233_v49  ;;  %v1456_v59 = vpack.c.bf16 %v1449_v52, %v1449_v52  ;;  %v1838_v2 = vmul.f32 %v4058_v1, %v4002_v29 }
 0x291   : > { %v1377_v40 = vpack.c.bf16 %v1369_v35, %v1369_v35  ;;  %v1685_v42 = vmul.f32 %v1680_v33, %v1677_v37  ;;  %v1596_v44 = vld [vmem:[#allocation2 + $0x8] sm:$0xf]  ;;  %v1375_v60 = vpack.c.bf16 %v1368_v55, %v1368_v55  ;;  %v1691_v0 = vpack.c.bf16 %v1684_v58, %v1684_v58 }
 0x292   : > { %v1458_v46 = vpack.c.bf16 %v1450_v41, %v1450_v41  ;;  %v1604_v48 = vmul.f32 %v4020_v39, %v1596_v44  ;;  %v1610_v3 = vpack.c.bf16 %v1603_v63, %v1603_v63  ;;  %v1373_v6 = vcombine.high %v1368_v55, %v1368_v55  ;;  %v1758_v11 = vld [vmem:[#allocation2 + $0x8] sm:$0xf] }
 0x293   : > { %1535 = vrot.lane.b32.xlu1 %v1529_v34, %s4513_s30  ;;  %v1693_v47 = vpack.c.bf16 %v1685_v42, %v1685_v42  ;;  %v1845_v8 = vpack.c.bf16 %v1838_v2, %v1838_v2  ;;  %v1454_v9 = vcombine.high %v1449_v52, %v1449_v52  ;;  %v1831_v15 = vld [vmem:[#allocation2 + $0x8] sm:$0xf]  ;;  %v1766_v16 = vpack.c.bf16 %v1758_v11, %v1758_v11 }
 0x294   : > { %1241 = vrot.lane.b32.xlu0 %v1529_v34, %s3688_s23  ;;  %v1612_v53 = vpack.c.bf16 %v1604_v48, %v1604_v48  ;;  %v1376_v7 = vpack.c.bf16 %v1373_v6, %v1373_v6  ;;  %v1839_v21 = vmul.f32 %v4050_v62, %v1831_v15  ;;  %v1608_v12 = vcombine.high %v1603_v63, %v1603_v63  ;;  %v2045_v36 = vld [vmem:[%s4018_s17 + $0x8] sm:$0xf] }
 0x295   : > { %v1457_v19 = vpack.c.bf16 %v1454_v9, %v1454_v9  ;;  %v1980_v13 = vpack.c.bf16 %v1972_v25, %v1972_v25  ;;  %v1976_v17 = vcombine.high %v4070_v23, %v4070_v23  ;;  %v2046_v28 = vmul.f32 %v4070_v23, %v1365_v50  ;;  %v2195_v50 = vld [vmem:[%s4018_s17 + $0x8] sm:$0xf] }
 0x296   : > { %v1847_v26 = vpack.c.bf16 %v1839_v21, %v1839_v21  ;;  %v1611_v30 = vpack.c.bf16 %v1608_v12, %v1608_v12  ;;  %v1689_v31 = vcombine.high %v1684_v58, %v1684_v58  ;;  %v2047_v37 = vmul.f32 %v2045_v36, %v4000_v27  ;;  %v2268_v55 = vld [vmem:[%s4018_s17 + $0x8] sm:$0xf] }
 0x297   : > { %1385 = vrot.lane.b32.xlu1 %v1377_v40, %s3690_s24  ;;  %v1979_v33 = vpack.c.bf16 %v1976_v17, %v1976_v17  ;;  %v2051_v35 = vcombine.high %v2046_v28, %v2046_v28  ;;  %v2053_v40 = vpack.c.bf16 %v2046_v28, %v2046_v28  ;;  %v1843_v42 = vcombine.high %v1838_v2, %v1838_v2 }
 0x298   : > { %1770 = vrot.lane.b32.xlu0 %v1529_v34, %s4515_s15  ;;  %v1692_v34 = vpack.c.bf16 %v1689_v31, %v1689_v31  ;;  %v2055_v43 = vpack.c.bf16 %v2047_v37, %v2047_v37  ;;  %v2128_v48 = vpack.c.bf16 %v2121_v38, %v2121_v38  ;;  %v2269_v51 = vmul.f32 %v4070_v23, %v4048_v61 }
 0x299   : > { %v2054_v41 = vpack.c.bf16 %v2051_v35, %v2051_v35  ;;  %v1846_v44 = vpack.c.bf16 %v1843_v42, %v1843_v42  ;;  %v2492_v2 = vmul.f32 %v4070_v23, %v4058_v1  ;;  %v2565_v1 = vld [vmem:[%s4496_s7] sm:$0xf]  ;;  %v1222_v25 = vmul.f32 %v4002_v29, %v3986_v20 }
 0x29a   : > { %v2276_v58 = vpack.c.bf16 %v2269_v51, %v2269_v51  ;;  %v3514_v29 = vld [vmem:[%s4494_s5 + $0x2] sm:$0x3]  ;;  %v1223_v42 = vld [vmem:[%s4494_s5] sm:$0x3] }
 0x29b   : > { %1701 = vrot.lane.b32.xlu1 %v1693_v47, %s4523_s14  ;;  %v2120_v47 = vld [vmem:[%s4018_s17 + $0x8] sm:$0xf]  ;;  %v1227_v35 = vpack.c.bf16 %v1222_v25, %v1222_v25 }
 0x29c   : > { %1466 = vrot.lane.b32.xlu0 %v1458_v46, %s4517_s27  ;;  %v2126_v46 = vcombine.high %v2121_v38, %v2121_v38  ;;  %v2122_v49 = vmul.f32 %v2120_v47, %v4006_v32  ;;  %v2344_v32 = vmul.f32 %v4070_v23, %v4040_v56 }
 0x29d   : > { %v1303_v38 = vsel %vm513_vm4, %v1227_v35, 0 }
 0x29e   : > { %v2129_v27 = vpack.c.bf16 %v2126_v46, %v2126_v46  ;;  %v2130_v52 = vpack.c.bf16 %v2122_v49, %v2122_v49  ;;  %v2349_v63 = vcombine.high %v2344_v32, %v2344_v32 }
 0x29f   : > { %1243 = vrot.lane.b32.xlu1 %v1236_v54, %s3688_s23 }
 0x2a0   : > { %1620 = vrot.lane.b32.xlu0 %v1612_v53, %s4524_s29  ;;  %v2203_v53 = vpack.c.bf16 %v2195_v50, %v2195_v50  ;;  %v2352_v56 = vpack.c.bf16 %v2349_v63, %v2349_v63  ;;  %v1912_v63 = vmul.f32 %v4070_v23, %v3986_v20 }
 0x2a3   : > { %1381 = vrot.lane.b32.xlu1 %v1375_v60, %s3690_s24  ;;  %v2351_v60 = vpack.c.bf16 %v2344_v32, %v2344_v32 }
 0x2a4   : > { %1462 = vrot.lane.b32.xlu0 %v1456_v59, %s4517_s27  ;;  %v2270_v59 = vmul.f32 %v2268_v55, %v4020_v39  ;;  %v2418_v39 = vld [vmem:[%s4018_s17 + $0x8] sm:$0xf] }
 0x2a5   : > { %v2426_v6 = vpack.c.bf16 %v2418_v39, %v2418_v39 }
 0x2a6   : > { %v2278_v61 = vpack.c.bf16 %v2270_v59, %v2270_v59  ;;  %v3523_v59 = vld [vmem:[%s4494_s5 + $0x6] sm:$0x3] }
 0x2a7   : > { %1697 = vrot.lane.b32.xlu1 %v1691_v0, %s4523_s14  ;;  %v2353_v0 = vpack.c.bf16 %v4026_v45, %v4026_v45  ;;  %v2497_v45 = vcombine.high %v2492_v2, %v2492_v2 }
 0x2a8   : > { %1537 = vrot.lane.b32.xlu0 %v1236_v54, %s4513_s30 }
 0x2a9   : > { %v2500_v11 = vpack.c.bf16 %v2497_v45, %v2497_v45 }
 0x2ab   : > { %1772 = vrot.lane.b32.xlu1 %v1236_v54, %s4515_s15  ;;  %v2274_v54 = vcombine.high %v2269_v51, %v2269_v51 }
 0x2ac   : > { %1616 = vrot.lane.b32.xlu0 %v1610_v3, %s4524_s29  ;;  %v2491_v3 = vld [vmem:[%s4018_s17 + $0x8] sm:$0xf] }
 0x2ad   : > { %v2277_v57 = vpack.c.bf16 %v2274_v54, %v2274_v54 }
 0x2af   : > { %1851 = vrot.lane.b32.xlu1 %v1845_v8, %s4525_s16  ;;  %v2493_v8 = vmul.f32 %v2491_v3, %v4050_v62 }
 0x2b0   : > { %1383 = vrot.lane.b32.xlu0 %v1376_v7, %s3690_s24  ;;  %v2499_v7 = vpack.c.bf16 %v2492_v2, %v2492_v2  ;;  %v1915_v2 = vcombine.high %v1912_v63, %v1912_v63 }
 0x2b1   : > { %v2501_v9 = vpack.c.bf16 %v2493_v8, %v2493_v8  ;;  %v3529_v8 = vld [vmem:[%s4494_s5 + $0xa] sm:$0x3] }
 0x2b3   : > { %1464 = vrot.lane.b32.xlu1 %v1457_v19, %s4517_s27 }
 0x2b4   : > { %1774 = vrot.lane.b32.xlu0 %v1766_v16, %s4515_s15 }
 0x2b7   : > { %1855 = vrot.lane.b32.xlu1 %v1847_v26, %s4525_s16 }
 0x2b8   : > { %1984 = vrot.lane.b32.xlu0 %v4076_v24, %s3688_s23 }
 0x2bb   : > { %1618 = vrot.lane.b32.xlu1 %v1611_v30, %s4524_s29 }
 0x2bc   : > { %1988 = vrot.lane.b32.xlu0 %v1980_v13, %s3688_s23  ;;  %v1225_v13 = vcombine.high %v1222_v25, %v1222_v25  ;;  %v1917_v25 = vpack.c.bf16 %v1912_v63, %v1912_v63 }
 0x2bf   : > { %1986 = vrot.lane.b32.xlu1 %v1979_v33, %s3688_s23 }
 0x2c0   : > { %1699 = vrot.lane.b32.xlu0 %v1692_v34, %s4523_s14  ;;  %v1228_v34 = vpack.c.bf16 %v1225_v13, %v1225_v13 }
 0x2c3   : > { %2059 = vrot.lane.b32.xlu1 %v2053_v40, %s3690_s24 }
 0x2c4   : > { %2061 = vrot.lane.b32.xlu0 %v2054_v41, %s3690_s24 }
 0x2c7   : > { %2063 = vrot.lane.b32.xlu1 %v2055_v43, %s3690_s24 }
 0x2c8   : > { %1853 = vrot.lane.b32.xlu0 %v1846_v44, %s4525_s16 }
 0x2cb   : > { %2136 = vrot.lane.b32.xlu1 %v2129_v27, %s4517_s27 }
 0x2cc   : > { %2134 = vrot.lane.b32.xlu0 %v2128_v48, %s4517_s27 }
 0x2cf   : > { %2207 = vrot.lane.b32.xlu1 %v4076_v24, %s4513_s30 }
 0x2d0   : > { %2138 = vrot.lane.b32.xlu0 %v2130_v52, %s4517_s27  ;;  %v3520_v52 = vld [vmem:[%s4494_s5 + $0x4] sm:$0x3] }
 0x2d3   : > { %2211 = vrot.lane.b32.xlu1 %v2203_v53, %s4513_s30 }
 0x2d4   : > { %2209 = vrot.lane.b32.xlu0 %v1979_v33, %s4513_s30 }
 0x2d7   : > { %2284 = vrot.lane.b32.xlu1 %v2277_v57, %s4524_s29 }
 0x2d8   : > { %2282 = vrot.lane.b32.xlu0 %v2276_v58, %s4524_s29 }
 0x2db   : > { %2357 = vrot.lane.b32.xlu1 %v2351_v60, %s4523_s14 }
 0x2dc   : > { %2286 = vrot.lane.b32.xlu0 %v2278_v61, %s4524_s29 }
 0x2df   : > { %2361 = vrot.lane.b32.xlu1 %v2353_v0, %s4523_s14  ;;  %v3526_v0 = vld [vmem:[%s4494_s5 + $0x8] sm:$0x3] }
 0x2e0   : > { %2359 = vrot.lane.b32.xlu0 %v2352_v56, %s4523_s14 }
 0x2e3   : > { %2432 = vrot.lane.b32.xlu1 %v1979_v33, %s4515_s15 }
 0x2e4   : > { %2430 = vrot.lane.b32.xlu0 %v4076_v24, %s4515_s15 }
 0x2e7   : > { %2505 = vrot.lane.b32.xlu1 %v2499_v7, %s4525_s16 }
 0x2e8   : > { %2434 = vrot.lane.b32.xlu0 %v2426_v6, %s4515_s15 }
 0x2eb   : > { %2509 = vrot.lane.b32.xlu1 %v2501_v9, %s4525_s16 }
 0x2ec   : > { %2507 = vrot.lane.b32.xlu0 %v2500_v11, %s4525_s16  ;;  %v1918_v11 = vpack.c.bf16 %v1915_v2, %v1915_v2 }
 0x2f0   : > { %2568 = vperm.xlu0 %3671, %v2565_v1  }
 0x301   : > { %v1540_v15 = vpop.permute.xlu1 %1539 }
 0x302   : > { %v1246_v16 = vpop.permute.xlu0 %1245 }
 0x305   : > { %v1536_v19 = vpop.permute.xlu1 %1535 }
 0x306   : > { %v1242_v62 = vpop.permute.xlu0 %1241 }
 0x309   : > { %v1386_v21 = vpop.permute.xlu1 %1385 }
 0x30a   : > { %v4135_v24 = vpop.permute.xlu0 %1770 }
 0x30d   : > { %v4139_v26 = vpop.permute.xlu1 %1701 }
 0x30e   : > { %v1467_v12 = vpop.permute.xlu0 %1466 }
 0x311   : > { %v1244_v17 = vpop.permute.xlu1 %1243 }
 0x312   : > { %v1621_v28 = vpop.permute.xlu0 %1620  ;;  %v1247_v30 = vsel %vm506_vm3, %v1242_v62, %v1244_v17  ;;  %v1248_v31 = vsel %vm506_vm3, %v1244_v17, %v1246_v16  ;;  %v3532_v62 = vld [vmem:[%s4494_s5 + $0xc] sm:$0x3]  ;;  %v1923_v17 = vsel %vm513_vm4, %v1917_v25, 0  ;;  %v2577_v25 = vpack.c.bf16 %v3979_v14, %v3979_v14  ;;  %v2578_v14 = vld [vmem:[%s4498_s9] sm:$0x3] }
 0x313   : > { %v1253_v33 = vsel %vm513_vm4, %v1247_v30, 0  ;;  %3515 = vmatprep.subr.msk.bf16.mxu0 %vm513_vm4, %v1248_v31 }
 0x314   : > { %1259 = vmatpush1.bf16.msra.mxu0 %v1253_v33 }
 0x315   : > { %v1382_v36 = vpop.permute.xlu1 %1381  ;;  %3517 = vmatprep.subr.msk.bf16.mxu0 %vm513_vm4, %v1228_v34 }
 0x316   : > { %v1463_v37 = vpop.permute.xlu0 %1462 }
 0x317   : > { %3516 = vmatmul.mubr.msk.bf16.vlgmr.msra.gmra.mrb[36].mxu0 %vm509_vm5, %v3514_v29  ;;  %v3538_v29 = vld [vmem:[%s4494_s5 + $0x10] sm:$0x3] }
 0x318   : > { %1309 = vmatpush1.bf16.msra.mxu0 %v1303_v38  ;;  %1340 = vmatprep.mubr.bf16.mxu0 %v3689_v18 }
 0x319   : > { %v1698_v40 = vpop.permute.xlu1 %1697 }
 0x31a   : > { %v1538_v41 = vpop.permute.xlu0 %1537 }
 0x31b   : > { %v1541_v50 = vsel %vm808_vm10, %v1536_v19, %v1538_v41  ;;  %v1542_v51 = vsel %vm808_vm10, %v1538_v41, %v1540_v15  ;;  %v1913_v41 = vld [vmem:[%s4495_s6] sm:$0x3] }
 0x31c   : > { %v1547_v57 = vsel %vm513_vm4, %v1541_v50, 0 }
 0x31d   : > { %v1773_v43 = vpop.permute.xlu1 %1772 }
 0x31e   : > { %v1617_v44 = vpop.permute.xlu0 %1616  ;;  %v1776_v20 = vsel %vm4528_vm7, %v4135_v24, %v1773_v43 }
 0x31f   : > { %3518 = vmatmul.mubr.msk.bf16.vlgmr.msra.gmra.mrb[40].mxu0 %vm509_vm5, %v1223_v42  ;;  %v1782_v16 = vsel %vm513_vm4, %v1776_v20, 0 }
 0x320   : > { %1511 = vmatprep.mubr.bf16.mxu0 %v3689_v18 }
 0x321   : > { %v4157_v46 = vpop.permute.xlu1 %1851 }
 0x322   : > { %v1384_v47 = vpop.permute.xlu0 %1383 }
 0x323   : > { %v1388_v27 = vsel %vm651_vm8, %v1384_v47, %v1386_v21  ;;  %v1387_v48 = vsel %vm651_vm8, %v1382_v36, %v1384_v47 }
 0x324   : > { %3521 = vmatprep.subr.msk.bf16.mxu1 %vm513_vm4, %v1388_v27  ;;  %v1393_v49 = vsel %vm513_vm4, %v1387_v48, 0  ;;  %v3543_v27 = vld [vmem:[%s4495_s6 + $0x2] sm:$0x3] }
 0x325   : > { %1399 = vmatpush1.bf16.msra.mxu1 %v1393_v49  ;;  %v1465_v53 = vpop.permute.xlu1 %1464 }
 0x326   : > { %3527 = vmatprep.subr.msk.bf16.mxu1 %vm513_vm4, %v1542_v51  ;;  %v1775_v54 = vpop.permute.xlu0 %1774  ;;  %v1468_v55 = vsel %vm734_vm9, %v1463_v37, %v1465_v53  ;;  %v1469_v32 = vsel %vm734_vm9, %v1465_v53, %v1467_v12  ;;  %v3546_v53 = vld [vmem:[%s4495_s6 + $0x4] sm:$0x3] }
 0x327   : > { %v1474_v58 = vsel %vm513_vm4, %v1468_v55, 0  ;;  %3524 = vmatprep.subr.msk.bf16.mxu0 %vm513_vm4, %v1469_v32  ;;  %v1777_v23 = vsel %vm4529_vm6, %v1773_v43, %v1775_v54  ;;  %vm4532_vm6 = vcmask 769024  }
 0x328   : > { %3522 = vmatmul.mubr.msk.bf16.vlgmr.msra.gmra.mrb[0].mxu1 %vm509_vm5, %v3520_v52  ;;  %1480 = vmatpush1.bf16.msra.mxu0 %v1474_v58  ;;  %vm4533_vm7 = vmmov %vm4532_vm6  ;;  %v3549_v58 = vld [vmem:[%s4495_s6 + $0x6] sm:$0x3] }
 0x329   : > { %1553 = vmatpush1.bf16.msra.mxu1 %v1547_v57  ;;  %v1856_v60 = vpop.permute.xlu1 %1855  ;;  %1584 = vmatprep.mubr.bf16.mxu1 %v3689_v18 }
 0x32a   : > { %v1985_v61 = vpop.permute.xlu0 %1984 }
 0x32b   : > { %3525 = vmatmul.mubr.msk.bf16.vlgmr.msra.gmra.mrb[44].mxu0 %vm509_vm5, %v3523_v59 }
 0x32c   : > { %1665 = vmatprep.mubr.bf16.mxu0 %v3689_v18 }
 0x32d   : > { %v1619_v56 = vpop.permute.xlu1 %1618 }
 0x32e   : > { %v1989_v39 = vpop.permute.xlu0 %1988  ;;  %v1622_v3 = vsel %vm4526_vm12, %v1617_v44, %v1619_v56  ;;  %v1623_v6 = vsel %vm4527_vm14, %v1619_v56, %v1621_v28  ;;  %vm4530_vm12 = vcmask 785408  }
 0x32f   : > { %v1628_v7 = vsel %vm513_vm4, %v1622_v3, 0  ;;  %3530 = vmatprep.subr.msk.bf16.mxu0 %vm513_vm4, %v1623_v6  ;;  %vm4531_vm14 = vmmov %vm4530_vm12 }
 0x330   : > { %3528 = vmatmul.mubr.msk.bf16.vlgmr.msra.gmra.mrb[4].mxu1 %vm509_vm5, %v3526_v0  ;;  %1634 = vmatpush1.bf16.msra.mxu0 %v1628_v7  ;;  %v3552_v0 = vld [vmem:[%s4495_s6 + $0x8] sm:$0x3]  ;;  %v3555_v7 = vld [vmem:[%s4495_s6 + $0xa] sm:$0x3] }
 0x331   : > { %1746 = vmatprep.mubr.bf16.mxu1 %v3689_v18  ;;  %v1987_v45 = vpop.permute.xlu1 %1986  ;;  %3536 = vmatprep.subr.msk.bf16.mxu0 %vm513_vm4, %v1777_v23 }
 0x332   : > { %v1700_v9 = vpop.permute.xlu0 %1699  ;;  %v1990_v34 = vsel %vm506_vm3, %v1985_v61, %v1987_v45  ;;  %v1991_v35 = vsel %vm506_vm3, %v1987_v45, %v1989_v39  ;;  %v3558_v45 = vld [vmem:[%s4495_s6 + $0xc] sm:$0x3] }
 0x333   : > { %v1703_v1 = vsel %vm4530_vm12, %v1698_v40, %v1700_v9  ;;  %v1704_v15 = vsel %vm4531_vm14, %v1700_v9, %v4139_v26  ;;  %3531 = vmatmul.mubr.msk.bf16.vlgmr.msra.gmra.mrb[48].mxu0 %vm509_vm5, %v3529_v8  ;;  %v3535_v26 = vld [vmem:[%s4494_s5 + $0xe] sm:$0x3]  ;;  %v1996_v38 = vsel %vm513_vm4, %v1990_v34, 0  ;;  %vm4534_vm12 = vcmask 900096  }
 0x334   : > { %v1709_v19 = vsel %vm513_vm4, %v1703_v1, 0  ;;  %3533 = vmatprep.subr.msk.bf16.mxu1 %vm513_vm4, %v1704_v15  ;;  %1788 = vmatpush1.bf16.msra.mxu0 %v1782_v16  ;;  %vm4535_vm14 = vmmov %vm4534_vm12  ;;  %v3561_v16 = vld [vmem:[%s4495_s6 + $0xe] sm:$0x3] }
 0x335   : > { %1715 = vmatpush1.bf16.msra.mxu1 %v1709_v19  ;;  %v2060_v21 = vpop.permute.xlu1 %2059  ;;  %1819 = vmatprep.mubr.bf16.mxu0 %v3689_v18 }
 0x336   : > { %v2062_v24 = vpop.permute.xlu0 %2061  ;;  %3541 = vmatprep.subr.msk.bf16.mxu0 %vm513_vm4, %v1918_v11 }
 0x337   : > { %v2065_v40 = vsel %vm651_vm8, %v2060_v21, %v2062_v24 }
 0x338   : > { %3534 = vmatmul.mubr.msk.bf16.vlgmr.msra.gmra.mrb[8].mxu1 %vm509_vm5, %v3532_v62 }
 0x339   : > { %1900 = vmatprep.mubr.bf16.mxu1 %v3689_v18  ;;  %v2064_v12 = vpop.permute.xlu1 %2063 }
 0x33a   : > { %v1854_v13 = vpop.permute.xlu0 %1853  ;;  %v2066_v28 = vsel %vm651_vm8, %v2062_v24, %v2064_v12  ;;  %v3564_v12 = vld [vmem:[%s4495_s6 + $0x10] sm:$0x3] }
 0x33b   : > { %v1857_v30 = vsel %vm4532_vm6, %v4157_v46, %v1854_v13  ;;  %v1858_v31 = vsel %vm4533_vm7, %v1854_v13, %v1856_v60  ;;  %3537 = vmatmul.mubr.msk.bf16.vlgmr.msra.gmra.mrb[52].mxu0 %vm509_vm5, %v3535_v26  ;;  %v2071_v46 = vsel %vm513_vm4, %v2065_v40, 0  ;;  %vm4536_vm6 = vcmask 785408  }
 0x33c   : > { %v1863_v33 = vsel %vm513_vm4, %v1857_v30, 0  ;;  %3539 = vmatprep.subr.msk.bf16.mxu1 %vm513_vm4, %v1858_v31  ;;  %1929 = vmatpush1.bf16.msra.mxu0 %v1923_v17  ;;  %vm4537_vm7 = vmmov %vm4536_vm6  ;;  %v2576_v13 = vpack.c.bf16 %v3977_v10, %v3977_v10 }
 0x33d   : > { %1869 = vmatpush1.bf16.msra.mxu1 %v1863_v33  ;;  %3547 = vmatprep.subr.msk.bf16.mxu0 %vm513_vm4, %v2066_v28  ;;  %v2137_v36 = vpop.permute.xlu1 %2136  ;;  %v2693_v28 = vld [vmem:[%s4491_s2] ss:$4 sm:$0x3] }
 0x33e   : > { %3544 = vmatprep.subr.msk.bf16.mxu1 %vm513_vm4, %v1991_v35  ;;  %v2135_v37 = vpop.permute.xlu0 %2134  ;;  %1960 = vmatprep.mubr.bf16.mxu0 %v3689_v18  ;;  %v2627_v17 = vsel %vm513_vm4, %v2576_v13, 0  ;;  %v2698_v30 = vrot.slane %v2693_v28, %v3783_v4  ;;  %v2702_v10 = vrot.slane %v2693_v28, %v3785_v5 }
 0x33f   : > { %v2140_v47 = vsel %vm734_vm9, %v2135_v37, %v2137_v36 }
 0x340   : > { %3540 = vmatmul.mubr.msk.bf16.vlgmr.msra.gmra.mrb[12].mxu1 %vm509_vm5, %v3538_v29  ;;  %v2146_v51 = vsel %vm513_vm4, %v2140_v47, 0  ;;  %v4322_v31 = vcombine.low %v2698_v30, %v2702_v10 }
 0x341   : > { %2002 = vmatpush1.bf16.msra.mxu1 %v1996_v38  ;;  %2033 = vmatprep.mubr.bf16.mxu1 %v3689_v18  ;;  %v2208_v42 = vpop.permute.xlu1 %2207 }
 0x342   : > { %v2139_v43 = vpop.permute.xlu0 %2138  ;;  %2926 = vrot.lane.b32.xlu0 %v4322_v31, %s3685_s20  ;;  %s3600_s20 = sshll.u32 %s4556_s26, 3 }
 0x343   : > { %v2141_v44 = vsel %vm734_vm9, %v2137_v36, %v2139_v43  ;;  %3542 = vmatmul.mubr.msk.bf16.vlgmr.msra.gmra.mrb[56].mxu0 %vm509_vm5, %v1913_v41 }
 0x344   : > { %3550 = vmatprep.subr.msk.bf16.mxu1 %vm513_vm4, %v2141_v44  ;;  %2077 = vmatpush1.bf16.msra.mxu0 %v2071_v46 }
 0x345   : > { %2108 = vmatprep.mubr.bf16.mxu0 %v3689_v18  ;;  %v2212_v48 = vpop.permute.xlu1 %2211 }
 0x346   : > { %v2210_v49 = vpop.permute.xlu0 %2209 }
 0x347   : > { %v2214_v50 = vsel %vm808_vm10, %v2210_v49, %v2212_v48  ;;  %v2213_v52 = vsel %vm808_vm10, %v2208_v42, %v2210_v49 }
 0x348   : > { %3545 = vmatmul.mubr.msk.bf16.vlgmr.msra.gmra.mrb[16].mxu1 %vm509_vm5, %v3543_v27  ;;  %3553 = vmatprep.subr.msk.bf16.mxu0 %vm513_vm4, %v2214_v50  ;;  %v2219_v32 = vsel %vm513_vm4, %v2213_v52, 0 }
 0x349   : > { %2152 = vmatpush1.bf16.msra.mxu1 %v2146_v51  ;;  %2183 = vmatprep.mubr.bf16.mxu1 %v3689_v18  ;;  %v2285_v54 = vpop.permute.xlu1 %2284 }
 0x34a   : > { %v2283_v55 = vpop.permute.xlu0 %2282 }
 0x34b   : > { %3548 = vmatmul.mubr.msk.bf16.vlgmr.msra.gmra.mrb[60].mxu0 %vm509_vm5, %v3546_v53  ;;  %v2288_v57 = vsel %vm4534_vm12, %v2283_v55, %v2285_v54  ;;  %vm4538_vm12 = vcmask 777216  }
 0x34c   : > { %2225 = vmatpush1.bf16.msra.mxu0 %v2219_v32  ;;  %2256 = vmatprep.mubr.bf16.mxu0 %v3689_v18  ;;  %v2294_v63 = vsel %vm513_vm4, %v2288_v57, 0 }
 0x34d   : > { %v2358_v59 = vpop.permute.xlu1 %2357 }
 0x34e   : > { %v2287_v60 = vpop.permute.xlu0 %2286 }
 0x34f   : > { %v2289_v61 = vsel %vm4535_vm14, %v2285_v54, %v2287_v60  ;;  %vm4539_vm14 = vmmov %vm4538_vm12 }
 0x350   : > { %3551 = vmatmul.mubr.msk.bf16.vlgmr.msra.gmra.mrb[20].mxu1 %vm509_vm5, %v3549_v58  ;;  %3556 = vmatprep.subr.msk.bf16.mxu1 %vm513_vm4, %v2289_v61 }
 0x351   : > { %2300 = vmatpush1.bf16.msra.mxu1 %v2294_v63  ;;  %2331 = vmatprep.mubr.bf16.mxu1 %v3689_v18  ;;  %v2362_v56 = vpop.permute.xlu1 %2361 }
 0x352   : > { %v2360_v39 = vpop.permute.xlu0 %2359 }
 0x353   : > { %v2363_v2 = vsel %vm4536_vm6, %v2358_v59, %v2360_v39  ;;  %v2364_v3 = vsel %vm4537_vm7, %v2360_v39, %v2362_v56  ;;  %3554 = vmatmul.mubr.msk.bf16.vlgmr.msra.gmra.mrb[64].mxu0 %vm509_vm5, %v3552_v0  ;;  %vm4540_vm6 = vcmask 769024  }
 0x354   : > { %v2369_v6 = vsel %vm513_vm4, %v2363_v2, 0  ;;  %3559 = vmatprep.subr.msk.bf16.mxu0 %vm513_vm4, %v2364_v3  ;;  %2406 = vmatprep.mubr.bf16.mxu0 %v3689_v18  ;;  %vm4541_vm7 = vmmov %vm4540_vm6 }
 0x355   : > { %2375 = vmatpush1.bf16.msra.mxu0 %v2369_v6  ;;  %v2433_v20 = vpop.permute.xlu1 %2432 }
 0x356   : > { %v2431_v23 = vpop.permute.xlu0 %2430 }
 0x357   : > { %v2436_v8 = vsel %vm4538_vm12, %v2431_v23, %v2433_v20 }
 0x358   : > { %3557 = vmatmul.mubr.msk.bf16.vlgmr.msra.gmra.mrb[24].mxu1 %vm509_vm5, %v3555_v7  ;;  %v2442_v15 = vsel %vm513_vm4, %v2436_v8, 0 }
 0x359   : > { %2479 = vmatprep.mubr.bf16.mxu1 %v3689_v18  ;;  %v2506_v9 = vpop.permute.xlu1 %2505 }
 0x35a   : > { %v2435_v11 = vpop.permute.xlu0 %2434 }
 0x35b   : > { %v2437_v1 = vsel %vm4539_vm14, %v2433_v20, %v2435_v11  ;;  %3560 = vmatmul.mubr.msk.bf16.vlgmr.msra.gmra.mrb[68].mxu0 %vm509_vm5, %v3558_v45 }
 0x35c   : > { %3562 = vmatprep.subr.msk.bf16.mxu1 %vm513_vm4, %v2437_v1  ;;  %2554 = vmatprep.mubr.bf16.mxu0 %v3689_v18 }
 0x35d   : > { %2448 = vmatpush1.bf16.msra.mxu1 %v2442_v15  ;;  %v2510_v19 = vpop.permute.xlu1 %2509 }
 0x35e   : > { %3567 = vmatprep.subr.msk.bf16.mxu1 %vm513_vm4, %v2214_v50  ;;  %v2508_v62 = vpop.permute.xlu0 %2507 }
 0x35f   : > { %v2511_v21 = vsel %vm4540_vm6, %v2506_v9, %v2508_v62  ;;  %v2512_v24 = vsel %vm4541_vm7, %v2508_v62, %v2510_v19 }
 0x360   : > { %v2517_v26 = vsel %vm513_vm4, %v2511_v21, 0  ;;  %3563 = vmatmul.mubr.msk.bf16.vlgmr.msra.gmra.mrb[28].mxu1 %vm509_vm5, %v3561_v16  ;;  %3565 = vmatprep.subr.msk.bf16.mxu0 %vm513_vm4, %v2512_v24 }
 0x361   : > { %2523 = vmatpush1.bf16.msra.mxu0 %v2517_v26  ;;  %2583 = vmatpush1.bf16.msra.mxu1 %v2219_v32 }
 0x362   : > { %3569 = vmatprep.subr.msk.bf16.mxu1 %vm513_vm4, %v2577_v25  ;;  %2614 = vmatprep.mubr.bf16.mxu1 %v3689_v18 }
 0x364   : > { %3566 = vmatmul.mubr.msk.bf16.vlgmr.msra.gmra.mrb[72].mxu0 %vm509_vm5, %v3564_v12 }
 0x368   : > { %3568 = vmatmul.mubr.msk.bf16.vlgmr.msra.gmra.mrb[32].mxu1 %vm509_vm5, %v2578_v14 }
 0x369   : > { %2633 = vmatpush1.bf16.msra.mxu1 %v2627_v17  ;;  %2664 = vmatprep.mubr.bf16.mxu1 %v3689_v18 }
 0x3ea   : > { %v1292_v33 = vpop.f32.mrb[36].mxu0 }
 0x3eb   : > { %v1294_v34 = vpop.f32.mrb[37].mxu0 }
 0x3ec   : > { %v1296_v35 = vpop.f32.mrb[38].mxu0 }
 0x3ed   : > { %v1297_v29 = vpop.f32.mrb[39].mxu0 }
 0x3f2   : > { %v1342_v36 = vpop.f32.mrb[40].mxu0 }
 0x3f3   : > { %v1343_v37 = vadd.f32 %v1342_v36, %v1292_v33  ;;  %v1344_v38 = vpop.f32.mrb[41].mxu0 }
 0x3f4   : > { %v1345_v40 = vadd.f32 %v1344_v38, %v1294_v34  ;;  %v1346_v41 = vpop.f32.mrb[42].mxu0 }
 0x3f5   : > { %v1347_v42 = vpop.f32.mrb[43].mxu0 }
 0x3fb   : > { %v1432_v43 = vpop.f32.mrb[0].mxu1 }
 0x3fc   : > { %v1439_v44 = vadd.f32 %v1432_v43, %v1343_v37  ;;  %v1434_v46 = vpop.f32.mrb[1].mxu1 }
 0x3fd   : > { %v1440_v47 = vadd.f32 %v1434_v46, %v1345_v40  ;;  %v1436_v27 = vpop.f32.mrb[2].mxu1 }
 0x3fe   : > { %v1437_v48 = vpop.f32.mrb[3].mxu1  ;;  %v1513_v49 = vpop.f32.mrb[44].mxu0 }
 0x3ff   : > { %v1520_v50 = vadd.f32 %v1513_v49, %v1439_v44  ;;  %v1515_v51 = vpop.f32.mrb[45].mxu0 }
 0x400   : > { %v1521_v52 = vadd.f32 %v1515_v51, %v1440_v47  ;;  %v1517_v53 = vpop.f32.mrb[46].mxu0 }
 0x401   : > { %v1518_v54 = vpop.f32.mrb[47].mxu0 }
 0x403   : > { %v1586_v55 = vpop.f32.mrb[4].mxu1 }
 0x404   : > { %v1593_v32 = vadd.f32 %v1586_v55, %v1520_v50  ;;  %v1588_v57 = vpop.f32.mrb[5].mxu1 }
 0x405   : > { %v1594_v58 = vadd.f32 %v1588_v57, %v1521_v52  ;;  %v1590_v59 = vpop.f32.mrb[6].mxu1 }
 0x406   : > { %v1591_v60 = vpop.f32.mrb[7].mxu1  ;;  %v1667_v61 = vpop.f32.mrb[48].mxu0 }
 0x407   : > { %v1674_v63 = vadd.f32 %v1667_v61, %v1593_v32  ;;  %v1669_v0 = vpop.f32.mrb[49].mxu0 }
 0x408   : > { %v1675_v56 = vadd.f32 %v1669_v0, %v1594_v58  ;;  %v1671_v39 = vpop.f32.mrb[50].mxu0 }
 0x409   : > { %v1672_v2 = vpop.f32.mrb[51].mxu0 }
 0x40b   : > { %v1748_v3 = vpop.f32.mrb[8].mxu1 }
 0x40c   : > { %v1755_v6 = vadd.f32 %v1748_v3, %v1674_v63  ;;  %v1750_v7 = vpop.f32.mrb[9].mxu1 }
 0x40d   : > { %v1756_v20 = vadd.f32 %v1750_v7, %v1675_v56  ;;  %v1752_v23 = vpop.f32.mrb[10].mxu1 }
 0x40e   : > { %v1753_v8 = vpop.f32.mrb[11].mxu1  ;;  %v1821_v45 = vpop.f32.mrb[52].mxu0 }
 0x40f   : > { %v1828_v9 = vadd.f32 %v1821_v45, %v1755_v6  ;;  %v1823_v11 = vpop.f32.mrb[53].mxu0 }
 0x410   : > { %v1829_v1 = vadd.f32 %v1823_v11, %v1756_v20  ;;  %v1825_v15 = vpop.f32.mrb[54].mxu0  ;;  %v2569_v11 = vpop.permute.xlu0 %2568 }
 0x411   : > { %v1826_v16 = vpop.f32.mrb[55].mxu0 }
 0x413   : > { %v1902_v19 = vpop.f32.mrb[12].mxu1 }
 0x414   : > { %v1909_v62 = vadd.f32 %v1902_v19, %v1828_v9  ;;  %v1904_v21 = vpop.f32.mrb[13].mxu1 }
 0x415   : > { %v1910_v24 = vadd.f32 %v1904_v21, %v1829_v1  ;;  %v1906_v25 = vpop.f32.mrb[14].mxu1 }
 0x416   : > { %v1907_v26 = vpop.f32.mrb[15].mxu1  ;;  %v1962_v12 = vpop.f32.mrb[56].mxu0 }
 0x417   : > { %v1969_v13 = vadd.f32 %v1962_v12, %v1909_v62  ;;  %v1964_v14 = vpop.f32.mrb[57].mxu0 }
 0x418   : > { %v1970_v17 = vadd.f32 %v1964_v14, %v1910_v24  ;;  %v1966_v28 = vpop.f32.mrb[58].mxu0  ;;  %v3576_v24 = vld [vmem:[%s4491_s2 + $0x2] ss:$4 sm:$0x3] }
 0x419   : > { %v1967_v30 = vpop.f32.mrb[59].mxu0  ;;  %v2843_v14 = vrot.slane %v3576_v24, %v3785_v5 }
 0x41a   : > { %v2575_v30 = vld [vmem:[%s4497_s8] sm:$0x3] }
 0x41b   : > { %v2035_v10 = vpop.f32.mrb[16].mxu1  ;;  %3570 = vmatmul.mubr.msk.bf16.vlgmr.msra.gmra.mrb[32].mxu1 %vm509_vm5, %v2575_v30 }
 0x41c   : > { %v2042_v33 = vadd.f32 %v2035_v10, %v1969_v13  ;;  %v2037_v34 = vpop.f32.mrb[17].mxu1  ;;  %v2839_v13 = vrot.slane %v3576_v24, %v3783_v4  ;;  %2773 = vmatprep.mubr.bf16.mxu1 %v3689_v18 }
 0x41d   : > { %v2043_v35 = vadd.f32 %v2037_v34, %v1970_v17  ;;  %v2039_v29 = vpop.f32.mrb[18].mxu1 }
 0x41e   : > { %v2040_v36 = vpop.f32.mrb[19].mxu1  ;;  %v2110_v37 = vpop.f32.mrb[60].mxu0  ;;  %v2844_v28 = vcombine.low %v2839_v13, %v2843_v14 }
 0x41f   : > { %v2117_v38 = vadd.f32 %v2110_v37, %v2042_v33  ;;  %v2112_v40 = vpop.f32.mrb[61].mxu0  ;;  %v2927_v37 = vpop.permute.xlu0 %2926 }
 0x420   : > { %v2118_v41 = vadd.f32 %v2112_v40, %v2043_v35  ;;  %v2114_v42 = vpop.f32.mrb[62].mxu0 }
 0x421   : > { %v2115_v43 = vpop.f32.mrb[63].mxu0  ;;  %v2928_v42 = vrot.slane %v2927_v37, 4 }
 0x423   : > { %v2185_v44 = vpop.f32.mrb[20].mxu1 }
 0x424   : > { %v2192_v46 = vadd.f32 %v2185_v44, %v2117_v38  ;;  %v2187_v47 = vpop.f32.mrb[21].mxu1 }
 0x425   : > { %v2193_v27 = vadd.f32 %v2187_v47, %v2118_v41  ;;  %v2189_v48 = vpop.f32.mrb[22].mxu1 }
 0x426   : > { %v2190_v49 = vpop.f32.mrb[23].mxu1  ;;  %v2258_v50 = vpop.f32.mrb[64].mxu0 }
 0x427   : > { %v2265_v51 = vadd.f32 %v2258_v50, %v2192_v46  ;;  %v2260_v52 = vpop.f32.mrb[65].mxu0 }
 0x428   : > { %v2266_v53 = vadd.f32 %v2260_v52, %v2193_v27  ;;  %v2262_v54 = vpop.f32.mrb[66].mxu0  ;;  %v2929_v27 = vsel %vm711_vm1, %v2928_v42, %v2927_v37  ;;  %vm4545_vm1 = vcmask 277504  }
 0x429   : > { %v2263_v55 = vpop.f32.mrb[67].mxu0 }
 0x42b   : > { %v2333_v32 = vpop.f32.mrb[24].mxu1 }
 0x42c   : > { %v2340_v57 = vadd.f32 %v2333_v32, %v2265_v51  ;;  %v2335_v58 = vpop.f32.mrb[25].mxu1 }
 0x42d   : > { %v2341_v59 = vadd.f32 %v2335_v58, %v2266_v53  ;;  %v2337_v60 = vpop.f32.mrb[26].mxu1 }
 0x42e   : > { %v2338_v61 = vpop.f32.mrb[27].mxu1  ;;  %v2408_v63 = vpop.f32.mrb[68].mxu0 }
 0x42f   : > { %v2415_v0 = vadd.f32 %v2408_v63, %v2340_v57  ;;  %v2410_v56 = vpop.f32.mrb[69].mxu0 }
 0x430   : > { %v2416_v39 = vadd.f32 %v2410_v56, %v2341_v59  ;;  %v2412_v2 = vpop.f32.mrb[70].mxu0 }
 0x431   : > { %v2413_v3 = vpop.f32.mrb[71].mxu0 }
 0x433   : > { %v2481_v6 = vpop.f32.mrb[28].mxu1 }
 0x434   : > { %v2488_v7 = vadd.f32 %v2481_v6, %v2415_v0  ;;  %v2483_v20 = vpop.f32.mrb[29].mxu1 }
 0x435   : > { %v2489_v23 = vadd.f32 %v2483_v20, %v2416_v39  ;;  %v2485_v8 = vpop.f32.mrb[30].mxu1 }
 0x436   : > { %v2486_v45 = vpop.f32.mrb[31].mxu1 }
 0x437   : > { %v2556_v9 = vpop.f32.mrb[72].mxu0 }
 0x438   : > { %v2563_v1 = vadd.f32 %v2556_v9, %v2488_v7  ;;  %v2558_v15 = vpop.f32.mrb[73].mxu0 }
 0x439   : > { %v2564_v16 = vadd.f32 %v2558_v15, %v2489_v23  ;;  %v2560_v19 = vpop.f32.mrb[74].mxu0 }
 0x43a   : > { %v2571_v62 = vadd.f32 %v2569_v11, %v2563_v1  ;;  %v2561_v21 = vpop.f32.mrb[75].mxu0 }
 0x43b   : > { %v2572_v25 = vadd.f32 %v2569_v11, %v2564_v16 }
 0x43c   : > { %v2573_v26 = vmax.f32 %v2571_v62, 0.0 }
 0x43d   : > { %v2574_v12 = vmax.f32 %v2572_v25, 0.0 }
 0x43f   : > { %v2683_v17 = vcombine.low %v2573_v26, %v2574_v12 }
 0x441   : > { %2684 = vrot.lane.b32.xlu1 %v2683_v17, %s3698_s28  ;;  %s4546_s28 = smov 95  }
 0x445   : > { %2845 = vrot.lane.b32.xlu1 %v2844_v28, %s3683_s18  ;;  %s4542_s18 = smov 112  }
 0x449   : > { %3080 = vrot.lane.b32.xlu1 %v2844_v28, %s3684_s19  ;;  %s4543_s19 = smov 111  }
 0x4b3   : > { %v2685_v10 = vpop.permute.xlu1 %2684 }
 0x4b4   : > { %v2686_v4 = vrot.slane %v2685_v10, 4 }
 0x4b6   : > { %v2687_v5 = vsel %vm1200_vm13, %v2686_v4, %v2685_v10  ;;  %2691 = vst.msk [vmem:[#allocation3 + $0x8] sm:$0xf] %vm462_vm15, %v2686_v4  ;;  %vm4553_vm13 = vmmov %vm4540_vm6 }
 0x4b7   : > { %2690 = vst.msk [vmem:[#allocation3] sm:$0xff] %vm3992_vm11, %v2687_v5  ;;  %v2846_v33 = vpop.permute.xlu1 %2845  ;;  %vm4554_vm15 = vmmov %vm4540_vm6 }
 0x4b8   : > { %v2847_v34 = vrot.slane %v2846_v33, 4 }
 0x4ba   : > { %v2848_v29 = vsel %vm628_vm0, %v2847_v34, %v2846_v33  ;;  %vm4544_vm0 = vcmask 261120  }
 0x4bb   : > { %v3081_v52 = vpop.permute.xlu1 %3080 }
 0x4bc   : > { %v3082_v55 = vrot.slane %v3081_v52, 4 }
 0x4bd   : > { %v2712_v40 = vld [vmem:[#allocation3 + $0x8] sm:$0xf] }
 0x4be   : > { %v4343_v35 = vld [vmem:[#allocation3] sm:$0xff]  ;;  %v2720_v43 = vpack.c.bf16 %v2712_v40, %v2712_v40  ;;  %v2833_v44 = vld [vmem:[#allocation3 + $0x8] sm:$0xf]  ;;  %v3083_v59 = vsel %vm868_vm2, %v3082_v55, %v3081_v52  ;;  %vm4547_vm2 = vcmask 900096  }
 0x4bf   : > { %v4348_v36 = vpack.c.bf16 %v4343_v35, %v4343_v35  ;;  %v2716_v38 = vcombine.high %v4343_v35, %v4343_v35  ;;  %v2851_v22 = vmul.f32 %v2848_v29, %v4343_v35  ;;  %v2852_v47 = vmul.f32 %v2847_v34, %v2833_v44  ;;  %v2925_v53 = vld [vmem:[#allocation3 + $0x8] sm:$0xf] }
 0x4c0   : > { %v2932_v49 = vmul.f32 %v2929_v27, %v4343_v35  ;;  %v2933_v32 = vmul.f32 %v2928_v42, %v2925_v53  ;;  %v3086_v61 = vmul.f32 %v3083_v59, %v4343_v35  ;;  %v3006_v63 = vld [vmem:[#allocation3 + $0x8] sm:$0xf]  ;;  %v2705_v20 = vmul.f32 %v4343_v35, %v4322_v31  ;;  %v2706_v42 = vld [vmem:[%s4500_s11] sm:$0x3] }
 0x4c1   : > { %2724 = vrot.lane.b32.xlu0 %v4348_v36, %s3688_s23  ;;  %v4355_v41 = vpack.c.bf16 %v2716_v38, %v2716_v38  ;;  %v2856_v46 = vcombine.high %v2851_v22, %v2851_v22  ;;  %v2858_v48 = vpack.c.bf16 %v2851_v22, %v2851_v22  ;;  %v2860_v51 = vpack.c.bf16 %v2852_v47, %v2852_v47  ;;  %v3079_v0 = vld [vmem:[#allocation3 + $0x8] sm:$0xf] }
 0x4c2   : > { %v2937_v54 = vcombine.high %v2932_v49, %v2932_v49  ;;  %v2939_v57 = vpack.c.bf16 %v2932_v49, %v2932_v49  ;;  %v2941_v60 = vpack.c.bf16 %v2933_v32, %v2933_v32  ;;  %v3091_v56 = vcombine.high %v3086_v61, %v3086_v61  ;;  %v3160_v14 = vld [vmem:[#allocation3 + $0x8] sm:$0xf] }
 0x4c3   : > { %2726 = vrot.lane.b32.xlu1 %v4355_v41, %s3688_s23  ;;  %v2859_v50 = vpack.c.bf16 %v2856_v46, %v2856_v46  ;;  %v3014_v39 = vpack.c.bf16 %v3006_v63, %v3006_v63  ;;  %v3087_v2 = vmul.f32 %v3082_v55, %v3079_v0  ;;  %v3093_v3 = vpack.c.bf16 %v3086_v61, %v3086_v61  ;;  %v3241_v46 = vld [vmem:[#allocation3 + $0x8] sm:$0xf]  ;;  %v3577_v55 = vld [vmem:[%s4500_s11 + $0x4] sm:$0x3]  ;;  %v3580_v0 = vld [vmem:[%s4500_s11 + $0x6] sm:$0x3] }
 0x4c4   : > { %v2940_v58 = vpack.c.bf16 %v2937_v54, %v2937_v54  ;;  %v3094_v6 = vpack.c.bf16 %v3091_v56, %v3091_v56  ;;  %v2708_v8 = vcombine.high %v2705_v20, %v2705_v20  ;;  %v2710_v19 = vpack.c.bf16 %v2705_v20, %v2705_v20  ;;  %v3314_v49 = vld [vmem:[#allocation3 + $0x8] sm:$0xf] }
 0x4c5   : > { %2728 = vrot.lane.b32.xlu0 %v2720_v43, %s3688_s23  ;;  %v3095_v7 = vpack.c.bf16 %v3087_v2, %v3087_v2 }
 0x4c6   : > { %v2711_v16 = vpack.c.bf16 %v2708_v8, %v2708_v8  ;;  %v2786_v26 = vsel %vm513_vm4, %v2710_v19, 0  ;;  %v3589_v19 = vld [vmem:[%s4500_s11 + $0xc] sm:$0x3] }
 0x4c7   : > { %3161 = vrot.lane.b32.xlu1 %v4322_v31, %s3686_s21  ;;  %v3571_v31 = vld [vmem:[%s4500_s11 + $0x2] sm:$0x3] }
 0x4c9   : > { %2864 = vrot.lane.b32.xlu0 %v2858_v48, %s3690_s24 }
 0x4cb   : > { %2866 = vrot.lane.b32.xlu1 %v2859_v50, %s3690_s24 }
 0x4cd   : > { %2868 = vrot.lane.b32.xlu0 %v2860_v51, %s3690_s24 }
 0x4cf   : > { %3315 = vrot.lane.b32.xlu1 %v2844_v28, %s3687_s22 }
 0x4d1   : > { %2945 = vrot.lane.b32.xlu0 %v2939_v57, %s4542_s18 }
 0x4d3   : > { %2947 = vrot.lane.b32.xlu1 %v2940_v58, %s4542_s18  ;;  %v3394_v58 = vld [vmem:[%s4501_s12] sm:$0xf] }
 0x4d5   : > { %2949 = vrot.lane.b32.xlu0 %v2941_v60, %s4542_s18 }
 0x4d7   : > { %3018 = vrot.lane.b32.xlu1 %v4348_v36, %s4543_s19 }
 0x4d9   : > { %3020 = vrot.lane.b32.xlu0 %v4355_v41, %s4543_s19 }
 0x4db   : > { %3022 = vrot.lane.b32.xlu1 %v3014_v39, %s4543_s19 }
 0x4dd   : > { %3099 = vrot.lane.b32.xlu0 %v3093_v3, %s4524_s29 }
 0x4df   : > { %3101 = vrot.lane.b32.xlu1 %v3094_v6, %s4524_s29 }
 0x4e1   : > { %3103 = vrot.lane.b32.xlu0 %v3095_v7, %s4524_s29  ;;  %v3583_v7 = vld [vmem:[%s4500_s11 + $0x8] sm:$0x3] }
 0x533   : > { %v2725_v23 = vpop.permute.xlu0 %2724 }
 0x535   : > { %v2727_v45 = vpop.permute.xlu1 %2726 }
 0x536   : > { %v2730_v9 = vsel %vm506_vm3, %v2725_v23, %v2727_v45  ;;  %v3586_v23 = vld [vmem:[%s4500_s11 + $0xa] sm:$0x3] }
 0x537   : > { %v2729_v11 = vpop.permute.xlu0 %2728  ;;  %v2736_v15 = vsel %vm513_vm4, %v2730_v9, 0 }
 0x538   : > { %v2731_v1 = vsel %vm506_vm3, %v2727_v45, %v2729_v11  ;;  %vm4548_vm3 = vmmov %vm4547_vm2 }
 0x539   : > { %3572 = vmatprep.subr.msk.bf16.mxu1 %vm513_vm4, %v2731_v1  ;;  %v3162_v62 = vpop.permute.xlu1 %3161 }
 0x53a   : > { %2742 = vmatpush1.bf16.msra.mxu1 %v2736_v15  ;;  %v3163_v21 = vrot.slane %v3162_v62, 4 }
 0x53b   : > { %3574 = vmatprep.subr.msk.bf16.mxu1 %vm513_vm4, %v2711_v16  ;;  %v2865_v24 = vpop.permute.xlu0 %2864 }
 0x53c   : > { %v3164_v25 = vsel %vm4544_vm0, %v3163_v21, %v3162_v62  ;;  %v3168_v28 = vmul.f32 %v3163_v21, %v3160_v14 }
 0x53d   : > { %3573 = vmatmul.mubr.msk.bf16.vlgmr.msra.gmra.mrb[32].mxu1 %vm509_vm5, %v3571_v31  ;;  %v3167_v12 = vmul.f32 %v3164_v25, %v4343_v35  ;;  %v2867_v13 = vpop.permute.xlu1 %2866 }
 0x53e   : > { %2792 = vmatpush1.bf16.msra.mxu1 %v2786_v26  ;;  %2823 = vmatprep.mubr.bf16.mxu1 %v3689_v18  ;;  %v3176_v37 = vpack.c.bf16 %v3168_v28, %v3168_v28  ;;  %v2870_v40 = vsel %vm651_vm8, %v2865_v24, %v2867_v13  ;;  %v3592_v28 = vld [vmem:[%s4500_s11 + $0xe] sm:$0x3] }
 0x53f   : > { %v2869_v17 = vpop.permute.xlu0 %2868  ;;  %v3172_v30 = vcombine.high %v3167_v12, %v3167_v12  ;;  %v3174_v10 = vpack.c.bf16 %v3167_v12, %v3167_v12  ;;  %v2876_v27 = vsel %vm513_vm4, %v2870_v40, 0 }
 0x540   : > { %v2871_v4 = vsel %vm651_vm8, %v2867_v13, %v2869_v17  ;;  %vm4549_vm8 = vcmask 785408  }
 0x541   : > { %3578 = vmatprep.subr.msk.bf16.mxu1 %vm513_vm4, %v2871_v4  ;;  %v3175_v5 = vpack.c.bf16 %v3172_v30, %v3172_v30  ;;  %v3316_v33 = vpop.permute.xlu1 %3315  ;;  %3180 = vrot.lane.b32.xlu1 %v3174_v10, %s4523_s14  ;;  %v3595_v10 = vld [vmem:[%s4500_s11 + $0x10] sm:$0x3] }
 0x542   : > { %v3317_v34 = vrot.slane %v3316_v33, 4 }
 0x543   : > { %v2946_v29 = vpop.permute.xlu0 %2945  ;;  %3182 = vrot.lane.b32.xlu0 %v3175_v5, %s4523_s14 }
 0x544   : > { %v3318_v38 = vsel %vm4545_vm1, %v3317_v34, %v3316_v33  ;;  %v3322_v50 = vmul.f32 %v3317_v34, %v3314_v49 }
 0x545   : > { %v3321_v22 = vmul.f32 %v3318_v38, %v4343_v35  ;;  %3184 = vrot.lane.b32.xlu1 %v3176_v37, %s4523_s14  ;;  %v2948_v43 = vpop.permute.xlu1 %2947  ;;  %v3249_v35 = vpack.c.bf16 %v3241_v46, %v3241_v46 }
 0x546   : > { %v3330_v53 = vpack.c.bf16 %v3322_v50, %v3322_v50  ;;  %v2951_v54 = vsel %vm734_vm9, %v2946_v29, %v2948_v43 }
 0x547   : > { %v2950_v44 = vpop.permute.xlu0 %2949  ;;  %3253 = vrot.lane.b32.xlu0 %v4348_v36, %s4546_s28  ;;  %v3326_v48 = vcombine.high %v3321_v22, %v3321_v22  ;;  %v3328_v51 = vpack.c.bf16 %v3321_v22, %v3321_v22  ;;  %v2957_v59 = vsel %vm513_vm4, %v2951_v54, 0 }
 0x548   : > { %v2952_v47 = vsel %vm734_vm9, %v2948_v43, %v2950_v44  ;;  %vm4550_vm9 = vmmov %vm4549_vm8 }
 0x549   : > { %3575 = vmatmul.mubr.msk.bf16.vlgmr.msra.gmra.mrb[32].mxu1 %vm509_vm5, %v2706_v42  ;;  %3255 = vrot.lane.b32.xlu1 %v4355_v41, %s4546_s28  ;;  %v3019_v36 = vpop.permute.xlu1 %3018  ;;  %v3329_v52 = vpack.c.bf16 %v3326_v48, %v3326_v48  ;;  %v2673_v41 = vld [vmem:[%s4499_s10] sm:$0xf] }
 0x54a   : > { %2882 = vmatpush1.bf16.msra.mxu1 %v2876_v27  ;;  %2913 = vmatprep.mubr.bf16.mxu1 %v3689_v18 }
 0x54b   : > { %3581 = vmatprep.subr.msk.bf16.mxu1 %vm513_vm4, %v2952_v47  ;;  %3257 = vrot.lane.b32.xlu0 %v3249_v35, %s4546_s28  ;;  %v3021_v32 = vpop.permute.xlu0 %3020 }
 0x54c   : > { %v3024_v63 = vsel %vm808_vm10, %v3019_v36, %v3021_v32 }
 0x54d   : > { %3334 = vrot.lane.b32.xlu1 %v3328_v51, %s4525_s16  ;;  %v3023_v57 = vpop.permute.xlu1 %3022  ;;  %v3030_v39 = vsel %vm513_vm4, %v3024_v63, 0 }
 0x54e   : > { %v3025_v60 = vsel %vm808_vm10, %v3021_v32, %v3023_v57  ;;  %vm4551_vm10 = vmmov %vm4538_vm12 }
 0x54f   : > { %3336 = vrot.lane.b32.xlu0 %v3329_v52, %s4525_s16  ;;  %v3100_v61 = vpop.permute.xlu0 %3099  ;;  %vm4552_vm11 = vmmov %vm4551_vm10 }
 0x551   : > { %3338 = vrot.lane.b32.xlu1 %v3330_v53, %s4525_s16  ;;  %v3102_v2 = vpop.permute.xlu1 %3101  ;;  %s460_s16 = scalar_lea.vmem %s4502_s13, %s3600_s20 }
 0x552   : > { %v3105_v6 = vsel %vm4548_vm3, %v3100_v61, %v3102_v2 }
 0x553   : > { %2676 = vperm.xlu0 %3671, %v2673_v41   ;;  %v3104_v56 = vpop.permute.xlu0 %3103  ;;  %v3111_v20 = vsel %vm513_vm4, %v3105_v6, 0 }
 0x554   : > { %v3106_v3 = vsel %vm4547_vm2, %v3102_v2, %v3104_v56 }
 0x555   : > { %3579 = vmatmul.mubr.msk.bf16.vlgmr.msra.gmra.mrb[32].mxu1 %vm509_vm5, %v3577_v55  ;;  %3397 = vperm.xlu1 %3670, %v3394_v58  }
 0x556   : > { %2963 = vmatpush1.bf16.msra.mxu1 %v2957_v59  ;;  %2994 = vmatprep.mubr.bf16.mxu1 %v3689_v18 }
 0x557   : > { %3584 = vmatprep.subr.msk.bf16.mxu1 %vm513_vm4, %v3025_v60 }
 0x561   : > { %3582 = vmatmul.mubr.msk.bf16.vlgmr.msra.gmra.mrb[32].mxu1 %vm509_vm5, %v3580_v0 }
 0x562   : > { %3036 = vmatpush1.bf16.msra.mxu1 %v3030_v39  ;;  %3067 = vmatprep.mubr.bf16.mxu1 %v3689_v18 }
 0x563   : > { %3587 = vmatprep.subr.msk.bf16.mxu1 %vm513_vm4, %v3106_v3 }
 0x56d   : > { %3585 = vmatmul.mubr.msk.bf16.vlgmr.msra.gmra.mrb[32].mxu1 %vm509_vm5, %v3583_v7 }
 0x56e   : > { %3117 = vmatpush1.bf16.msra.mxu1 %v3111_v20  ;;  %3148 = vmatprep.mubr.bf16.mxu1 %v3689_v18 }
 0x579   : > { %3588 = vmatmul.mubr.msk.bf16.vlgmr.msra.gmra.mrb[32].mxu1 %vm509_vm5, %v3586_v23 }
 0x57a   : > { %3229 = vmatprep.mubr.bf16.mxu1 %v3689_v18 }
 0x5b3   : > { %v3181_v8 = vpop.permute.xlu1 %3180 }
 0x5b5   : > { %v3183_v45 = vpop.permute.xlu0 %3182 }
 0x5b6   : > { %v3186_v9 = vsel %vm4549_vm8, %v3181_v8, %v3183_v45 }
 0x5b7   : > { %v3185_v11 = vpop.permute.xlu1 %3184  ;;  %v3192_v15 = vsel %vm513_vm4, %v3186_v9, 0 }
 0x5b8   : > { %v3187_v1 = vsel %vm4550_vm9, %v3183_v45, %v3185_v11 }
 0x5b9   : > { %3590 = vmatprep.subr.msk.bf16.mxu1 %vm513_vm4, %v3187_v1  ;;  %v3254_v16 = vpop.permute.xlu0 %3253 }
 0x5ba   : > { %3198 = vmatpush1.bf16.msra.mxu1 %v3192_v15 }
 0x5bb   : > { %v3256_v62 = vpop.permute.xlu1 %3255 }
 0x5bc   : > { %v3259_v31 = vsel %vm4551_vm10, %v3254_v16, %v3256_v62 }
 0x5bd   : > { %3591 = vmatmul.mubr.msk.bf16.vlgmr.msra.gmra.mrb[32].mxu1 %vm509_vm5, %v3589_v19  ;;  %v3258_v21 = vpop.permute.xlu0 %3257  ;;  %v3265_v25 = vsel %vm513_vm4, %v3259_v31, 0 }
 0x5be   : > { %v3260_v24 = vsel %vm4552_vm11, %v3256_v62, %v3258_v21  ;;  %3302 = vmatprep.mubr.bf16.mxu1 %v3689_v18 }
 0x5bf   : > { %v3335_v26 = vpop.permute.xlu1 %3334  ;;  %3593 = vmatprep.subr.msk.bf16.mxu1 %vm513_vm4, %v3260_v24 }
 0x5c0   : > { %3271 = vmatpush1.bf16.msra.mxu1 %v3265_v25 }
 0x5c1   : > { %v3337_v12 = vpop.permute.xlu0 %3336 }
 0x5c2   : > { %v3340_v17 = vsel %vm4554_vm15, %v3335_v26, %v3337_v12 }
 0x5c3   : > { %v3339_v13 = vpop.permute.xlu1 %3338  ;;  %v3346_v30 = vsel %vm513_vm4, %v3340_v17, 0 }
 0x5c4   : > { %v3341_v14 = vsel %vm4553_vm13, %v3337_v12, %v3339_v13 }
 0x5c5   : > { %3596 = vmatprep.subr.msk.bf16.mxu1 %vm513_vm4, %v3341_v14 }
 0x5c9   : > { %3594 = vmatmul.mubr.msk.bf16.vlgmr.msra.gmra.mrb[32].mxu1 %vm509_vm5, %v3592_v28 }
 0x5ca   : > { %3352 = vmatpush1.bf16.msra.mxu1 %v3346_v30  ;;  %3383 = vmatprep.mubr.bf16.mxu1 %v3689_v18 }
 0x5d2   : > { %v2677_v4 = vpop.permute.xlu0 %2676 }
 0x5d4   : > { %v3398_v29 = vpop.permute.xlu1 %3397 }
 0x5d5   : > { %3597 = vmatmul.mubr.msk.bf16.vlgmr.msra.gmra.mrb[32].mxu1 %vm509_vm5, %v3595_v10 }
 0x6a8   : > { %v3385_v5 = vpop.f32.mrb[32].mxu1 }
 0x6a9   : > { %v3601_v33 = vadd.f32 %v3385_v5, %v2677_v4  ;;  %v3387_v34 = vpop.f32.mrb[33].mxu1 }
 0x6aa   : > { %v3603_v37 = vadd.f32 %v3387_v34, %v2677_v4  ;;  %v3389_v38 = vpop.f32.mrb[34].mxu1 }
 0x6ab   : > { %v3602_v40 = vadd.f32 %v3601_v33, %v3398_v29  ;;  %v3390_v22 = vpop.f32.mrb[35].mxu1 }
 0x6ac   : > { %v3604_v42 = vadd.f32 %v3603_v37, %v3398_v29 }
 0x6ad   : > { %v3404_v43 = vmax.f32 %v3602_v40, 0.0 }
 0x6ae   : > { %v3405_v44 = vmax.f32 %v3604_v42, 0.0 }
 0x6b0   : > { %v3408_v18 = vcombine.low %v3404_v43, %v3405_v44 }
 0x6b2   : > { %3410 = vst [vmem:[%s460_s16] sm:$0xff] %v3408_v18 }
 0x6b3 PF: > { %s23_s25 = sadd.s32 1, %s3681_s25  }
 0x6b4   : > { %p20_p4 = scmp.ge.s32.totalorder %s23_s25, 4  }
 0x6b6   :  { %22 = sbr.rel (!%p20_p4) target bundleno = 1 (0x1), region = 138 }

</bundles_post_ra>
